<compile_context>
chip_gen: v7x
topology: tpu7x:2x2x1
jax: 0.10.0
libtpu: 0.0.40
codegen_flags: <defaults>
</compile_context>

<pallas_src>
import functools
import math

import numpy as np
import jax
import jax.numpy as jnp
from jax import lax
from jax.experimental import pallas as pl
from jax.experimental.pallas import tpu as pltpu


# ----------------------------------------------------------------------------
# Fused kernel: projections + multi-head attention weights + selection + SSE.
# Grid: one axis over batch blocks (size bn).
# ----------------------------------------------------------------------------
def _cfml_kernel(ft_ref, fs_ref, lt_ref, ls_ref,
                 wq_ref, bq_ref, wk_ref, bk_ref, wl_ref, bl_ref, beta_ref,
                 attens_ref, ssef_ref, ssel_ref, *, num_heads):
    L, bn, E = ft_ref.shape          # seq-major block (L, bn, E)
    S = fs_ref.shape[0]
    C = lt_ref.shape[2]
    H = num_heads
    Dh = E // H
    scale = Dh ** -0.5
    f32 = jnp.float32
    bf16 = jnp.bfloat16

    ft = ft_ref[...]                 # (L, bn, E)
    fs = fs_ref[...]                 # (S, bn, E)

    # ---- fused linear projections (f32 MXU) --------------------------------
    # bn is a multiple of 8, so these leading-dim merges are layout no-ops.
    ft2 = ft.reshape(L * bn, E)
    fs2 = fs.reshape(S * bn, E)

    trans_b = (((1,), (1,)), ((), ()))          # x @ W.T  (weights kept untransposed)
    q2 = lax.dot_general(fs2, wq_ref[...], trans_b,
                         preferred_element_type=f32) + bq_ref[...]
    k2 = lax.dot_general(ft2, wk_ref[...], trans_b,
                         preferred_element_type=f32) + bk_ref[...]
    # diff fused in-kernel: no HBM materialization of (feature_t - feature_s)
    a2 = jax.nn.sigmoid(
        lax.dot_general(ft2 - fs2, wl_ref[...], trans_b,
                        preferred_element_type=f32) + bl_ref[...])

    # ---- VMEM-local seq-major -> batch-major relayouts ----------------------
    qb = pltpu.einshape("sbe->bse", q2.reshape(S, bn, E))    # (bn, S, E)
    kb = pltpu.einshape("lbe->ble", k2.reshape(L, bn, E))    # (bn, L, E)
    ab = pltpu.einshape("lbe->ble", a2.reshape(L, bn, E))    # (bn, L, E)
    ftb = pltpu.einshape("lbe->ble", ft)                     # (bn, L, E)
    fsb = pltpu.einshape("sbe->bse", fs)                     # (bn, S, E)
    ltb = pltpu.einshape("lbc->blc", lt_ref[...])            # (bn, L, C)
    lsb = pltpu.einshape("sbc->bsc", ls_ref[...])            # (bn, S, C)

    # ---- multi-head attention weights, head-averaged ------------------------
    # bf16 MXU operands, f32 softmax / accumulation.
    q_bf = qb.astype(bf16)
    k_bf = kb.astype(bf16)
    p_sum = jnp.zeros((bn, S, L), f32)
    for h in range(H):                                       # static unroll (H small)
        qh = q_bf[:, :, h * Dh:(h + 1) * Dh]                 # (bn, S, Dh)
        kh = k_bf[:, :, h * Dh:(h + 1) * Dh]                 # (bn, L, Dh)
        s = jnp.einsum('bsd,bld->bsl', qh, kh,
                       preferred_element_type=f32) * scale   # (bn, S, L)
        m = jnp.max(s, axis=-1, keepdims=True)
        e = jnp.exp(s - m)                                   # EUP
        p_sum = p_sum + e / jnp.sum(e, axis=-1, keepdims=True)
    ori = p_sum * (1.0 / H)                                  # (bn, S, L)
    attens_ref[...] = ori  # last dim is L (semantics-mandated); written once per block

    # ---- selection matmuls + squared-error partial sums ---------------------
    assigns = ori * beta_ref[...]                            # (1,L) broadcasts -> (bn,S,L)
    # one fused (S,L)x(L, 2E+C) contraction instead of three separate matmuls
    rhs = jnp.concatenate([ab, ftb, ltb], axis=-1)           # (bn, L, 2E+C)
    sel = jnp.einsum('bsl,blf->bsf', assigns.astype(bf16), rhs.astype(bf16),
                     preferred_element_type=f32)             # (bn, S, 2E+C)
    attens_v = sel[:, :, :E]
    feat_sel = sel[:, :, E:2 * E]
    logit_sel = sel[:, :, 2 * E:]

    diff_f = attens_v * (fsb - feat_sel)                     # a*(x-y), one mul saved
    diff_l = lsb - logit_sel

    # lane-dense per-block partial sums (reduced to scalars in the wrapper)
    ssef_ref[...] = jnp.broadcast_to(jnp.sum(diff_f * diff_f), ssef_ref.shape)
    ssel_ref[...] = jnp.broadcast_to(jnp.sum(diff_l * diff_l), ssel_ref.shape)


# ----------------------------------------------------------------------------
# Wrapper.
# ----------------------------------------------------------------------------
def cfml_loss_pallas(feature_t, feature_s, logits_t, logits_s, beta, params,
                     num_heads=4, alpha=0.5, batch_block=8):
    L, N, E = feature_t.shape
    S = feature_s.shape[0]
    C = logits_t.shape[-1]
    assert L == S, "feature_t - feature_s (as in the PyTorch module) requires L == S"
    assert E % num_heads == 0
    f32 = jnp.float32

    # Batch block size: multiple of 8 (sublane rule + layout-no-op reshapes).
    # Sweepable per generation; VMEM per block is tiny at realistic sizes.
    if N % 8 == 0:
        bb = max(8, (batch_block // 8) * 8)
        bn = math.gcd(N, bb)
    else:
        bn = N  # TODO(synk): N not a multiple of 8 relies on Mosaic relayout reshapes.
    G = N // bn

    wq = params["wq"].astype(f32)
    wk = params["wk"].astype(f32)
    wl = params["wl"].astype(f32)
    bq = params["bq"].reshape(1, E).astype(f32)
    bk = params["bk"].reshape(1, E).astype(f32)
    bl = params["bl"].reshape(1, E).astype(f32)
    beta2 = beta.reshape(1, L).astype(f32)

    kernel = functools.partial(_cfml_kernel, num_heads=num_heads)
    const2 = lambda g: (0, 0)

    attens, ssef, ssel = pl.pallas_call(
        kernel,
        out_shape=(jax.ShapeDtypeStruct((N, S, L), f32),
                   jax.ShapeDtypeStruct((G, 8, 128), f32),
                   jax.ShapeDtypeStruct((G, 8, 128), f32)),
        grid=(G,),
        in_specs=[
            pl.BlockSpec((L, bn, E), lambda g: (0, g, 0)),   # feature_t (seq-major)
            pl.BlockSpec((S, bn, E), lambda g: (0, g, 0)),   # feature_s
            pl.BlockSpec((L, bn, C), lambda g: (0, g, 0)),   # logits_t
            pl.BlockSpec((S, bn, C), lambda g: (0, g, 0)),   # logits_s
            pl.BlockSpec((E, E), const2),                    # Wq
            pl.BlockSpec((1, E), const2),                    # bq
            pl.BlockSpec((E, E), const2),                    # Wk
            pl.BlockSpec((1, E), const2),                    # bk
            pl.BlockSpec((E, E), const2),                    # Wl
            pl.BlockSpec((1, E), const2),                    # bl
            pl.BlockSpec((1, L), const2),                    # beta
        ],
        out_specs=(pl.BlockSpec((bn, S, L), lambda g: (g, 0, 0)),
                   pl.BlockSpec((1, 8, 128), lambda g: (g, 0, 0)),
                   pl.BlockSpec((1, 8, 128), lambda g: (g, 0, 0))),
        compiler_params=pltpu.CompilerParams(
            dimension_semantics=("parallel",),           # megacore-shardable on v7x
            vmem_limit_bytes=32 * 1024 * 1024),          # explicit, fits every gen
    )(feature_t.astype(f32), feature_s.astype(f32),
      logits_t.astype(f32), logits_s.astype(f32),
      wq, bq, wk, bk, wl, bl, beta2)

    d_f = jnp.sum(ssef[:, 0, 0]) / (N * S * E)
    d_l = jnp.sum(ssel[:, 0, 0]) / (N * S * C)
    d_loss = alpha * d_f + (1.0 - alpha) * d_l
    return {"d_loss": d_loss, "d_feat_loss": d_f, "d_logit_loss": d_l,
            "attens": attens}


# ----------------------------------------------------------------------------
# Pure numpy reference (float64) for a sanity check.
# ----------------------------------------------------------------------------
def cfml_loss_reference(ft, fs, lt, ls, beta, params, num_heads=4, alpha=0.5):
    ft = np.asarray(ft, np.float64); fs = np.asarray(fs, np.float64)
    lt = np.asarray(lt, np.float64); ls = np.asarray(ls, np.float64)
    beta = np.asarray(beta, np.float64)
    wq = np.asarray(params["wq"], np.float64); bq = np.asarray(params["bq"], np.float64)
    wk = np.asarray(params["wk"], np.float64); bk = np.asarray(params["bk"], np.float64)
    wl = np.asarray(params["wl"], np.float64); bl = np.asarray(params["bl"], np.float64)

    L, N, E = ft.shape
    S = fs.shape[0]
    H = num_heads
    Dh = E // H

    q = fs.reshape(S * N, E) @ wq.T + bq
    k = ft.reshape(L * N, E) @ wk.T + bk
    qh = q.reshape(S, N, H, Dh).transpose(1, 2, 0, 3)
    kh = k.reshape(L, N, H, Dh).transpose(1, 2, 0, 3)
    scores = np.einsum("nhsd,nhld->nhsl", qh, kh) * (Dh ** -0.5)
    scores = scores - scores.max(axis=-1, keepdims=True)
    e = np.exp(scores)
    p = e / e.sum(axis=-1, keepdims=True)
    ori = p.mean(axis=1)                                      # (N, S, L)

    assigns = ori * beta.reshape(1, 1, L)
    a = 1.0 / (1.0 + np.exp(-((ft - fs).reshape(-1, E) @ wl.T + bl)))
    a = a.reshape(-1, N, E)
    attens = np.einsum("nsl,nle->nse", assigns, a.transpose(1, 0, 2))
    feat_sel = np.einsum("nsl,nle->nse", assigns, ft.transpose(1, 0, 2))
    d_f = np.mean((attens * fs.transpose(1, 0, 2) - attens * feat_sel) ** 2)
    logit_sel = np.einsum("nsl,nlc->nsc", assigns, lt.transpose(1, 0, 2))
    d_l = np.mean((ls.transpose(1, 0, 2) - logit_sel) ** 2)
    d_loss = alpha * d_f + (1 - alpha) * d_l
    return d_loss, d_f, d_l, ori


if __name__ == "__main__":
    # L source models, S target models, batch N, feature E, classes C, heads H.
    L, S, N, E, C, H = 4, 4, 16, 32, 16, 4

    key = jax.random.PRNGKey(0)
    keys = jax.random.split(key, 11)
    feature_t = jax.random.normal(keys[0], (L, N, E), jnp.float32)
    feature_s = jax.random.normal(keys[1], (S, N, E), jnp.float32)
    logits_t = jax.random.normal(keys[2], (L, N, C), jnp.float32)
    logits_s = jax.random.normal(keys[3], (S, N, C), jnp.float32)
    beta = jax.random.uniform(keys[4], (1, 1, L), jnp.float32)

    w_scale = E ** -0.5
    params = {
        "wq": jax.random.normal(keys[5], (E, E), jnp.float32) * w_scale,
        "bq": jax.random.normal(keys[6], (E,), jnp.float32) * 0.1,
        "wk": jax.random.normal(keys[7], (E, E), jnp.float32) * w_scale,
        "bk": jax.random.normal(keys[8], (E,), jnp.float32) * 0.1,
        "wl": jax.random.normal(keys[9], (E, E), jnp.float32) * w_scale,
        "bl": jax.random.normal(keys[10], (E,), jnp.float32) * 0.1,
    }

    fn = jax.jit(functools.partial(cfml_loss_pallas, num_heads=H, alpha=0.5,
                                   batch_block=8))
    out = fn(feature_t, feature_s, logits_t, logits_s, beta, params)
    out = jax.block_until_ready(out)

    ref_loss, ref_df, ref_dl, ref_attens = cfml_loss_reference(
        feature_t, feature_s, logits_t, logits_s, beta, params,
        num_heads=H, alpha=0.5)

    # Tolerances account for the bf16 MXU operand casts (f32 accumulation).
    np.testing.assert_allclose(np.asarray(out["attens"]), ref_attens,
                               rtol=5e-2, atol=2e-3)
    np.testing.assert_allclose(float(out["d_feat_loss"]), ref_df, rtol=5e-2, atol=1e-5)
    np.testing.assert_allclose(float(out["d_logit_loss"]), ref_dl, rtol=5e-2, atol=1e-5)
    np.testing.assert_allclose(float(out["d_loss"]), ref_loss, rtol=5e-2, atol=1e-5)

    print("KERNEL_OK")
</pallas_src>

<mosaic_0001>
module attributes {stable_mosaic.version = 11 : i64} {
  func.func @_cfml_kernel(%arg0: i32, %arg1: memref<4x8x32xf32, #tpu.memory_space<vmem>>, %arg2: memref<4x8x32xf32, #tpu.memory_space<vmem>>, %arg3: memref<4x8x16xf32, #tpu.memory_space<vmem>>, %arg4: memref<4x8x16xf32, #tpu.memory_space<vmem>>, %arg5: memref<32x32xf32, #tpu.memory_space<vmem>>, %arg6: memref<1x32xf32, #tpu.memory_space<vmem>>, %arg7: memref<32x32xf32, #tpu.memory_space<vmem>>, %arg8: memref<1x32xf32, #tpu.memory_space<vmem>>, %arg9: memref<32x32xf32, #tpu.memory_space<vmem>>, %arg10: memref<1x32xf32, #tpu.memory_space<vmem>>, %arg11: memref<1x4xf32, #tpu.memory_space<vmem>>, %arg12: memref<8x4x4xf32, #tpu.memory_space<vmem>>, %arg13: memref<1x8x128xf32, #tpu.memory_space<vmem>>, %arg14: memref<1x8x128xf32, #tpu.memory_space<vmem>>) attributes {dimension_semantics = [#tpu.dimension_semantics<parallel>], iteration_bounds = array<i64: 2>, scalar_prefetch = 0 : i64, scratch_operands = 0 : i64, tpu.core_type = #tpu.core_type<tc>, window_params = [{transform_indices = @transform_0, window_bounds = array<i64: 4, 8, 32>}, {transform_indices = @transform_1, window_bounds = array<i64: 4, 8, 32>}, {transform_indices = @transform_2, window_bounds = array<i64: 4, 8, 16>}, {transform_indices = @transform_3, window_bounds = array<i64: 4, 8, 16>}, {pipeline_mode = #tpu.pipeline_mode<synchronous>, transform_indices = @transform_4, window_bounds = array<i64: 32, 32>}, {pipeline_mode = #tpu.pipeline_mode<synchronous>, transform_indices = @transform_5, window_bounds = array<i64: 1, 32>}, {pipeline_mode = #tpu.pipeline_mode<synchronous>, transform_indices = @transform_6, window_bounds = array<i64: 32, 32>}, {pipeline_mode = #tpu.pipeline_mode<synchronous>, transform_indices = @transform_7, window_bounds = array<i64: 1, 32>}, {pipeline_mode = #tpu.pipeline_mode<synchronous>, transform_indices = @transform_8, window_bounds = array<i64: 32, 32>}, {pipeline_mode = #tpu.pipeline_mode<synchronous>, transform_indices = @transform_9, window_bounds = array<i64: 1, 32>}, {pipeline_mode = #tpu.pipeline_mode<synchronous>, transform_indices = @transform_10, window_bounds = array<i64: 1, 4>}, {transform_indices = @transform_11, window_bounds = array<i64: 8, 4, 4>}, {transform_indices = @transform_12, window_bounds = array<i64: 1, 8, 128>}, {transform_indices = @transform_13, window_bounds = array<i64: 1, 8, 128>}]} {
    %c0 = arith.constant 0 : index
    %c0_0 = arith.constant 0 : index
    %c0_1 = arith.constant 0 : index
    %0 = vector.load %arg1[%c0, %c0_0, %c0_1] : memref<4x8x32xf32, #tpu.memory_space<vmem>>, vector<4x8x32xf32>
    %c0_2 = arith.constant 0 : index
    %c0_3 = arith.constant 0 : index
    %c0_4 = arith.constant 0 : index
    %1 = vector.load %arg2[%c0_2, %c0_3, %c0_4] : memref<4x8x32xf32, #tpu.memory_space<vmem>>, vector<4x8x32xf32>
    %2 = vector.shape_cast %0 : vector<4x8x32xf32> to vector<32x32xf32>
    %3 = vector.shape_cast %1 : vector<4x8x32xf32> to vector<32x32xf32>
    %c0_5 = arith.constant 0 : index
    %c0_6 = arith.constant 0 : index
    %4 = vector.load %arg5[%c0_5, %c0_6] : memref<32x32xf32, #tpu.memory_space<vmem>>, vector<32x32xf32>
    %cst = arith.constant dense<0.000000e+00> : vector<32x32xf32>
    %5 = tpu.matmul %3, %4, %cst {dimension_numbers = #tpu.dot_dimension_numbers<[1], [1], [0], [0], [0, 0, 1, 0], [], []>} : vector<32x32xf32>, vector<32x32xf32>, vector<32x32xf32> -> vector<32x32xf32>
    %c0_7 = arith.constant 0 : index
    %c0_8 = arith.constant 0 : index
    %6 = vector.load %arg6[%c0_7, %c0_8] : memref<1x32xf32, #tpu.memory_space<vmem>>, vector<1x32xf32>
    %7 = vector.broadcast %6 : vector<1x32xf32> to vector<32x32xf32>
    %8 = arith.addf %5, %7 : vector<32x32xf32>
    %c0_9 = arith.constant 0 : index
    %c0_10 = arith.constant 0 : index
    %9 = vector.load %arg7[%c0_9, %c0_10] : memref<32x32xf32, #tpu.memory_space<vmem>>, vector<32x32xf32>
    %cst_11 = arith.constant dense<0.000000e+00> : vector<32x32xf32>
    %10 = tpu.matmul %2, %9, %cst_11 {dimension_numbers = #tpu.dot_dimension_numbers<[1], [1], [0], [0], [0, 0, 1, 0], [], []>} : vector<32x32xf32>, vector<32x32xf32>, vector<32x32xf32> -> vector<32x32xf32>
    %c0_12 = arith.constant 0 : index
    %c0_13 = arith.constant 0 : index
    %11 = vector.load %arg8[%c0_12, %c0_13] : memref<1x32xf32, #tpu.memory_space<vmem>>, vector<1x32xf32>
    %12 = vector.broadcast %11 : vector<1x32xf32> to vector<32x32xf32>
    %13 = arith.addf %10, %12 : vector<32x32xf32>
    %14 = arith.subf %2, %3 : vector<32x32xf32>
    %c0_14 = arith.constant 0 : index
    %c0_15 = arith.constant 0 : index
    %15 = vector.load %arg9[%c0_14, %c0_15] : memref<32x32xf32, #tpu.memory_space<vmem>>, vector<32x32xf32>
    %cst_16 = arith.constant dense<0.000000e+00> : vector<32x32xf32>
    %16 = tpu.matmul %14, %15, %cst_16 {dimension_numbers = #tpu.dot_dimension_numbers<[1], [1], [0], [0], [0, 0, 1, 0], [], []>} : vector<32x32xf32>, vector<32x32xf32>, vector<32x32xf32> -> vector<32x32xf32>
    %c0_17 = arith.constant 0 : index
    %c0_18 = arith.constant 0 : index
    %17 = vector.load %arg10[%c0_17, %c0_18] : memref<1x32xf32, #tpu.memory_space<vmem>>, vector<1x32xf32>
    %18 = vector.broadcast %17 : vector<1x32xf32> to vector<32x32xf32>
    %19 = arith.addf %16, %18 : vector<32x32xf32>
    %20 = arith.negf %19 : vector<32x32xf32>
    %21 = math.exp %20 : vector<32x32xf32>
    %cst_19 = arith.constant 1.000000e+00 : f32
    %22 = vector.broadcast %cst_19 : f32 to vector<32x32xf32>
    %23 = arith.addf %22, %21 : vector<32x32xf32>
    %24 = arith.divf %22, %23 : vector<32x32xf32>
    %25 = vector.shape_cast %8 : vector<32x32xf32> to vector<4x8x32xf32>
    %26 = tpu.transpose %25, [1, 0, 2] : vector<4x8x32xf32> -> vector<8x4x32xf32>
    %27 = vector.shape_cast %13 : vector<32x32xf32> to vector<4x8x32xf32>
    %28 = tpu.transpose %27, [1, 0, 2] : vector<4x8x32xf32> -> vector<8x4x32xf32>
    %29 = vector.shape_cast %24 : vector<32x32xf32> to vector<4x8x32xf32>
    %30 = tpu.transpose %29, [1, 0, 2] : vector<4x8x32xf32> -> vector<8x4x32xf32>
    %31 = tpu.transpose %0, [1, 0, 2] : vector<4x8x32xf32> -> vector<8x4x32xf32>
    %32 = tpu.transpose %1, [1, 0, 2] : vector<4x8x32xf32> -> vector<8x4x32xf32>
    %c0_20 = arith.constant 0 : index
    %c0_21 = arith.constant 0 : index
    %c0_22 = arith.constant 0 : index
    %33 = vector.load %arg3[%c0_20, %c0_21, %c0_22] : memref<4x8x16xf32, #tpu.memory_space<vmem>>, vector<4x8x16xf32>
    %34 = tpu.transpose %33, [1, 0, 2] : vector<4x8x16xf32> -> vector<8x4x16xf32>
    %c0_23 = arith.constant 0 : index
    %c0_24 = arith.constant 0 : index
    %c0_25 = arith.constant 0 : index
    %35 = vector.load %arg4[%c0_23, %c0_24, %c0_25] : memref<4x8x16xf32, #tpu.memory_space<vmem>>, vector<4x8x16xf32>
    %36 = tpu.transpose %35, [1, 0, 2] : vector<4x8x16xf32> -> vector<8x4x16xf32>
    %37 = arith.truncf %26 : vector<8x4x32xf32> to vector<8x4x32xbf16>
    %38 = arith.truncf %28 : vector<8x4x32xf32> to vector<8x4x32xbf16>
    %cst_26 = arith.constant 0.000000e+00 : f32
    %39 = vector.broadcast %cst_26 : f32 to vector<8x4x4xf32>
    %40 = vector.extract_strided_slice %37 {offsets = [0, 0, 0], sizes = [8, 4, 8], strides = [1, 1, 1]} : vector<8x4x32xbf16> to vector<8x4x8xbf16>
    %41 = vector.extract_strided_slice %38 {offsets = [0, 0, 0], sizes = [8, 4, 8], strides = [1, 1, 1]} : vector<8x4x32xbf16> to vector<8x4x8xbf16>
    "tpu.trace_start"() <{level = 10 : i32, message = "bsd,bld->bsl"}> : () -> ()
    %cst_27 = arith.constant dense<0.000000e+00> : vector<8x4x4xf32>
    %42 = tpu.matmul %40, %41, %cst_27 {dimension_numbers = #tpu.dot_dimension_numbers<[2], [2], [1], [1], [0, 0, 0, 1, 1, 1], [0], [0]>} : vector<8x4x8xbf16>, vector<8x4x8xbf16>, vector<8x4x4xf32> -> vector<8x4x4xf32>
    "tpu.trace_stop"() : () -> ()
    %cst_28 = arith.constant 0.353553385 : f32
    %43 = vector.broadcast %cst_28 : f32 to vector<8x4x4xf32>
    %44 = arith.mulf %42, %43 : vector<8x4x4xf32>
    %cst_29 = arith.constant dense<0xFF800000> : vector<8x4xf32>
    %45 = vector.multi_reduction <maximumf>, %44, %cst_29 [2] : vector<8x4x4xf32> to vector<8x4xf32>
    %46 = vector.shape_cast %45 : vector<8x4xf32> to vector<8x4x1xf32>
    %47 = vector.broadcast %46 : vector<8x4x1xf32> to vector<8x4x4xf32>
    %48 = arith.subf %44, %47 : vector<8x4x4xf32>
    %49 = math.exp %48 : vector<8x4x4xf32>
    %cst_30 = arith.constant dense<0.000000e+00> : vector<8x4xf32>
    %50 = vector.multi_reduction <add>, %49, %cst_30 [2] : vector<8x4x4xf32> to vector<8x4xf32>
    %51 = vector.shape_cast %50 : vector<8x4xf32> to vector<8x4x1xf32>
    %52 = vector.broadcast %51 : vector<8x4x1xf32> to vector<8x4x4xf32>
    %53 = arith.divf %49, %52 : vector<8x4x4xf32>
    %54 = arith.addf %39, %53 : vector<8x4x4xf32>
    %55 = vector.extract_strided_slice %37 {offsets = [0, 0, 8], sizes = [8, 4, 8], strides = [1, 1, 1]} : vector<8x4x32xbf16> to vector<8x4x8xbf16>
    %56 = vector.extract_strided_slice %38 {offsets = [0, 0, 8], sizes = [8, 4, 8], strides = [1, 1, 1]} : vector<8x4x32xbf16> to vector<8x4x8xbf16>
    "tpu.trace_start"() <{level = 10 : i32, message = "bsd,bld->bsl"}> : () -> ()
    %cst_31 = arith.constant dense<0.000000e+00> : vector<8x4x4xf32>
    %57 = tpu.matmul %55, %56, %cst_31 {dimension_numbers = #tpu.dot_dimension_numbers<[2], [2], [1], [1], [0, 0, 0, 1, 1, 1], [0], [0]>} : vector<8x4x8xbf16>, vector<8x4x8xbf16>, vector<8x4x4xf32> -> vector<8x4x4xf32>
    "tpu.trace_stop"() : () -> ()
    %cst_32 = arith.constant 0.353553385 : f32
    %58 = vector.broadcast %cst_32 : f32 to vector<8x4x4xf32>
    %59 = arith.mulf %57, %58 : vector<8x4x4xf32>
    %cst_33 = arith.constant dense<0xFF800000> : vector<8x4xf32>
    %60 = vector.multi_reduction <maximumf>, %59, %cst_33 [2] : vector<8x4x4xf32> to vector<8x4xf32>
    %61 = vector.shape_cast %60 : vector<8x4xf32> to vector<8x4x1xf32>
    %62 = vector.broadcast %61 : vector<8x4x1xf32> to vector<8x4x4xf32>
    %63 = arith.subf %59, %62 : vector<8x4x4xf32>
    %64 = math.exp %63 : vector<8x4x4xf32>
    %cst_34 = arith.constant dense<0.000000e+00> : vector<8x4xf32>
    %65 = vector.multi_reduction <add>, %64, %cst_34 [2] : vector<8x4x4xf32> to vector<8x4xf32>
    %66 = vector.shape_cast %65 : vector<8x4xf32> to vector<8x4x1xf32>
    %67 = vector.broadcast %66 : vector<8x4x1xf32> to vector<8x4x4xf32>
    %68 = arith.divf %64, %67 : vector<8x4x4xf32>
    %69 = arith.addf %54, %68 : vector<8x4x4xf32>
    %70 = vector.extract_strided_slice %37 {offsets = [0, 0, 16], sizes = [8, 4, 8], strides = [1, 1, 1]} : vector<8x4x32xbf16> to vector<8x4x8xbf16>
    %71 = vector.extract_strided_slice %38 {offsets = [0, 0, 16], sizes = [8, 4, 8], strides = [1, 1, 1]} : vector<8x4x32xbf16> to vector<8x4x8xbf16>
    "tpu.trace_start"() <{level = 10 : i32, message = "bsd,bld->bsl"}> : () -> ()
    %cst_35 = arith.constant dense<0.000000e+00> : vector<8x4x4xf32>
    %72 = tpu.matmul %70, %71, %cst_35 {dimension_numbers = #tpu.dot_dimension_numbers<[2], [2], [1], [1], [0, 0, 0, 1, 1, 1], [0], [0]>} : vector<8x4x8xbf16>, vector<8x4x8xbf16>, vector<8x4x4xf32> -> vector<8x4x4xf32>
    "tpu.trace_stop"() : () -> ()
    %cst_36 = arith.constant 0.353553385 : f32
    %73 = vector.broadcast %cst_36 : f32 to vector<8x4x4xf32>
    %74 = arith.mulf %72, %73 : vector<8x4x4xf32>
    %cst_37 = arith.constant dense<0xFF800000> : vector<8x4xf32>
    %75 = vector.multi_reduction <maximumf>, %74, %cst_37 [2] : vector<8x4x4xf32> to vector<8x4xf32>
    %76 = vector.shape_cast %75 : vector<8x4xf32> to vector<8x4x1xf32>
    %77 = vector.broadcast %76 : vector<8x4x1xf32> to vector<8x4x4xf32>
    %78 = arith.subf %74, %77 : vector<8x4x4xf32>
    %79 = math.exp %78 : vector<8x4x4xf32>
    %cst_38 = arith.constant dense<0.000000e+00> : vector<8x4xf32>
    %80 = vector.multi_reduction <add>, %79, %cst_38 [2] : vector<8x4x4xf32> to vector<8x4xf32>
    %81 = vector.shape_cast %80 : vector<8x4xf32> to vector<8x4x1xf32>
    %82 = vector.broadcast %81 : vector<8x4x1xf32> to vector<8x4x4xf32>
    %83 = arith.divf %79, %82 : vector<8x4x4xf32>
    %84 = arith.addf %69, %83 : vector<8x4x4xf32>
    %85 = vector.extract_strided_slice %37 {offsets = [0, 0, 24], sizes = [8, 4, 8], strides = [1, 1, 1]} : vector<8x4x32xbf16> to vector<8x4x8xbf16>
    %86 = vector.extract_strided_slice %38 {offsets = [0, 0, 24], sizes = [8, 4, 8], strides = [1, 1, 1]} : vector<8x4x32xbf16> to vector<8x4x8xbf16>
    "tpu.trace_start"() <{level = 10 : i32, message = "bsd,bld->bsl"}> : () -> ()
    %cst_39 = arith.constant dense<0.000000e+00> : vector<8x4x4xf32>
    %87 = tpu.matmul %85, %86, %cst_39 {dimension_numbers = #tpu.dot_dimension_numbers<[2], [2], [1], [1], [0, 0, 0, 1, 1, 1], [0], [0]>} : vector<8x4x8xbf16>, vector<8x4x8xbf16>, vector<8x4x4xf32> -> vector<8x4x4xf32>
    "tpu.trace_stop"() : () -> ()
    %cst_40 = arith.constant 0.353553385 : f32
    %88 = vector.broadcast %cst_40 : f32 to vector<8x4x4xf32>
    %89 = arith.mulf %87, %88 : vector<8x4x4xf32>
    %cst_41 = arith.constant dense<0xFF800000> : vector<8x4xf32>
    %90 = vector.multi_reduction <maximumf>, %89, %cst_41 [2] : vector<8x4x4xf32> to vector<8x4xf32>
    %91 = vector.shape_cast %90 : vector<8x4xf32> to vector<8x4x1xf32>
    %92 = vector.broadcast %91 : vector<8x4x1xf32> to vector<8x4x4xf32>
    %93 = arith.subf %89, %92 : vector<8x4x4xf32>
    %94 = math.exp %93 : vector<8x4x4xf32>
    %cst_42 = arith.constant dense<0.000000e+00> : vector<8x4xf32>
    %95 = vector.multi_reduction <add>, %94, %cst_42 [2] : vector<8x4x4xf32> to vector<8x4xf32>
    %96 = vector.shape_cast %95 : vector<8x4xf32> to vector<8x4x1xf32>
    %97 = vector.broadcast %96 : vector<8x4x1xf32> to vector<8x4x4xf32>
    %98 = arith.divf %94, %97 : vector<8x4x4xf32>
    %99 = arith.addf %84, %98 : vector<8x4x4xf32>
    %cst_43 = arith.constant 2.500000e-01 : f32
    %100 = vector.broadcast %cst_43 : f32 to vector<8x4x4xf32>
    %101 = arith.mulf %99, %100 : vector<8x4x4xf32>
    %c0_44 = arith.constant 0 : index
    %c0_45 = arith.constant 0 : index
    %c0_46 = arith.constant 0 : index
    %102 = vector.load %arg12[%c0_44, %c0_45, %c0_46] : memref<8x4x4xf32, #tpu.memory_space<vmem>>, vector<8x4x4xf32>
    tpu.vector_store %arg12[%c0_44, %c0_45, %c0_46], %101 {strides = array<i32>} : memref<8x4x4xf32, #tpu.memory_space<vmem>>, vector<8x4x4xf32>,
    %c0_47 = arith.constant 0 : index
    %c0_48 = arith.constant 0 : index
    %103 = vector.load %arg11[%c0_47, %c0_48] : memref<1x4xf32, #tpu.memory_space<vmem>>, vector<1x4xf32>
    %104 = vector.shape_cast %103 : vector<1x4xf32> to vector<1x1x4xf32>
    %105 = vector.broadcast %104 : vector<1x1x4xf32> to vector<8x4x4xf32>
    %106 = arith.mulf %101, %105 : vector<8x4x4xf32>
    %107 = tpu.concatenate %30, %31, %34 in 2 : vector<8x4x32xf32>, vector<8x4x32xf32>, vector<8x4x16xf32> -> vector<8x4x80xf32>
    %108 = arith.truncf %106 : vector<8x4x4xf32> to vector<8x4x4xbf16>
    %109 = arith.truncf %107 : vector<8x4x80xf32> to vector<8x4x80xbf16>
    "tpu.trace_start"() <{level = 10 : i32, message = "bsl,blf->bsf"}> : () -> ()
    %cst_49 = arith.constant dense<0.000000e+00> : vector<8x4x80xf32>
    %110 = tpu.matmul %108, %109, %cst_49 {dimension_numbers = #tpu.dot_dimension_numbers<[2], [1], [1], [2], [0, 0, 0, 1, 1, 2], [0], [0]>} : vector<8x4x4xbf16>, vector<8x4x80xbf16>, vector<8x4x80xf32> -> vector<8x4x80xf32>
    "tpu.trace_stop"() : () -> ()
    %111 = vector.extract_strided_slice %110 {offsets = [0, 0, 0], sizes = [8, 4, 32], strides = [1, 1, 1]} : vector<8x4x80xf32> to vector<8x4x32xf32>
    %112 = vector.extract_strided_slice %110 {offsets = [0, 0, 32], sizes = [8, 4, 32], strides = [1, 1, 1]} : vector<8x4x80xf32> to vector<8x4x32xf32>
    %113 = vector.extract_strided_slice %110 {offsets = [0, 0, 64], sizes = [8, 4, 16], strides = [1, 1, 1]} : vector<8x4x80xf32> to vector<8x4x16xf32>
    %114 = arith.subf %32, %112 : vector<8x4x32xf32>
    %115 = arith.mulf %111, %114 : vector<8x4x32xf32>
    %116 = arith.subf %36, %113 : vector<8x4x16xf32>
    %117 = arith.mulf %115, %115 : vector<8x4x32xf32>
    %118 = vector.shape_cast %117 : vector<8x4x32xf32> to vector<1x8x4x32xf32>
    %cst_50 = arith.constant dense<0.000000e+00> : vector<1xf32>
    %119 = vector.multi_reduction <add>, %118, %cst_50 [1, 2, 3] : vector<1x8x4x32xf32> to vector<1xf32>
    %120 = vector.shape_cast %119 : vector<1xf32> to vector<1x1x1x1xf32>
    %121 = vector.extract %120[0, 0, 0, 0] : f32 from vector<1x1x1x1xf32>
    %122 = vector.broadcast %121 : f32 to vector<1x8x128xf32>
    %c0_51 = arith.constant 0 : index
    %c0_52 = arith.constant 0 : index
    %c0_53 = arith.constant 0 : index
    %123 = vector.load %arg13[%c0_51, %c0_52, %c0_53] : memref<1x8x128xf32, #tpu.memory_space<vmem>>, vector<1x8x128xf32>
    tpu.vector_store %arg13[%c0_51, %c0_52, %c0_53], %122 {strides = array<i32>} : memref<1x8x128xf32, #tpu.memory_space<vmem>>, vector<1x8x128xf32>,
    %124 = arith.mulf %116, %116 : vector<8x4x16xf32>
    %125 = vector.shape_cast %124 : vector<8x4x16xf32> to vector<1x8x4x16xf32>
    %cst_54 = arith.constant dense<0.000000e+00> : vector<1xf32>
    %126 = vector.multi_reduction <add>, %125, %cst_54 [1, 2, 3] : vector<1x8x4x16xf32> to vector<1xf32>
    %127 = vector.shape_cast %126 : vector<1xf32> to vector<1x1x1x1xf32>
    %128 = vector.extract %127[0, 0, 0, 0] : f32 from vector<1x1x1x1xf32>
    %129 = vector.broadcast %128 : f32 to vector<1x8x128xf32>
    %c0_55 = arith.constant 0 : index
    %c0_56 = arith.constant 0 : index
    %c0_57 = arith.constant 0 : index
    %130 = vector.load %arg14[%c0_55, %c0_56, %c0_57] : memref<1x8x128xf32, #tpu.memory_space<vmem>>, vector<1x8x128xf32>
    tpu.vector_store %arg14[%c0_55, %c0_56, %c0_57], %129 {strides = array<i32>} : memref<1x8x128xf32, #tpu.memory_space<vmem>>, vector<1x8x128xf32>,
    return
  }
  func.func @transform_0(%arg0: i32) -> (i32, i32, i32) {
    %c0_i32 = arith.constant 0 : i32
    %c0_i32_0 = arith.constant 0 : i32
    %c0_i32_1 = arith.constant 0 : i32
    return %c0_i32, %arg0, %c0_i32_0 : i32, i32, i32
  }
  func.func @transform_1(%arg0: i32) -> (i32, i32, i32) {
    %c0_i32 = arith.constant 0 : i32
    %c0_i32_0 = arith.constant 0 : i32
    %c0_i32_1 = arith.constant 0 : i32
    return %c0_i32, %arg0, %c0_i32_0 : i32, i32, i32
  }
  func.func @transform_2(%arg0: i32) -> (i32, i32, i32) {
    %c0_i32 = arith.constant 0 : i32
    %c0_i32_0 = arith.constant 0 : i32
    %c0_i32_1 = arith.constant 0 : i32
    return %c0_i32, %arg0, %c0_i32_0 : i32, i32, i32
  }
  func.func @transform_3(%arg0: i32) -> (i32, i32, i32) {
    %c0_i32 = arith.constant 0 : i32
    %c0_i32_0 = arith.constant 0 : i32
    %c0_i32_1 = arith.constant 0 : i32
    return %c0_i32, %arg0, %c0_i32_0 : i32, i32, i32
  }
  func.func @transform_4(%arg0: i32) -> (i32, i32) {
    %c0_i32 = arith.constant 0 : i32
    %c0_i32_0 = arith.constant 0 : i32
    %c0_i32_1 = arith.constant 0 : i32
    return %c0_i32, %c0_i32_0 : i32, i32
  }
  func.func @transform_5(%arg0: i32) -> (i32, i32) {
    %c0_i32 = arith.constant 0 : i32
    %c0_i32_0 = arith.constant 0 : i32
    %c0_i32_1 = arith.constant 0 : i32
    return %c0_i32, %c0_i32_0 : i32, i32
  }
  func.func @transform_6(%arg0: i32) -> (i32, i32) {
    %c0_i32 = arith.constant 0 : i32
    %c0_i32_0 = arith.constant 0 : i32
    %c0_i32_1 = arith.constant 0 : i32
    return %c0_i32, %c0_i32_0 : i32, i32
  }
  func.func @transform_7(%arg0: i32) -> (i32, i32) {
    %c0_i32 = arith.constant 0 : i32
    %c0_i32_0 = arith.constant 0 : i32
    %c0_i32_1 = arith.constant 0 : i32
    return %c0_i32, %c0_i32_0 : i32, i32
  }
  func.func @transform_8(%arg0: i32) -> (i32, i32) {
    %c0_i32 = arith.constant 0 : i32
    %c0_i32_0 = arith.constant 0 : i32
    %c0_i32_1 = arith.constant 0 : i32
    return %c0_i32, %c0_i32_0 : i32, i32
  }
  func.func @transform_9(%arg0: i32) -> (i32, i32) {
    %c0_i32 = arith.constant 0 : i32
    %c0_i32_0 = arith.constant 0 : i32
    %c0_i32_1 = arith.constant 0 : i32
    return %c0_i32, %c0_i32_0 : i32, i32
  }
  func.func @transform_10(%arg0: i32) -> (i32, i32) {
    %c0_i32 = arith.constant 0 : i32
    %c0_i32_0 = arith.constant 0 : i32
    %c0_i32_1 = arith.constant 0 : i32
    return %c0_i32, %c0_i32_0 : i32, i32
  }
  func.func @transform_11(%arg0: i32) -> (i32, i32, i32) {
    %c0_i32 = arith.constant 0 : i32
    %c0_i32_0 = arith.constant 0 : i32
    %c0_i32_1 = arith.constant 0 : i32
    return %arg0, %c0_i32, %c0_i32_0 : i32, i32, i32
  }
  func.func @transform_12(%arg0: i32) -> (i32, i32, i32) {
    %c0_i32 = arith.constant 0 : i32
    %c0_i32_0 = arith.constant 0 : i32
    %c0_i32_1 = arith.constant 0 : i32
    return %arg0, %c0_i32, %c0_i32_0 : i32, i32, i32
  }
  func.func @transform_13(%arg0: i32) -> (i32, i32, i32) {
    %c0_i32 = arith.constant 0 : i32
    %c0_i32_0 = arith.constant 0 : i32
    %c0_i32_1 = arith.constant 0 : i32
    return %arg0, %c0_i32, %c0_i32_0 : i32, i32, i32
  }
}

</mosaic_0001>

<bundles_post_ra>
// kernel: cfml_loss_pallas.1
= control target key start
LH: loop header
LB: loop body
LE: loop exit
PB: predicated region body
PF: predicated region fallthrough
CT: control target
= control target key end

     0   :  { %s6942_s0 = inlined_call_operand.hbm [shape: f32[4,16,32], index: 0, kind: input, shape index: {}]   ;;  %s6943_s1 = inlined_call_operand.hbm [shape: f32[4,16,32], index: 1, kind: input, shape index: {}]   ;;  %s6944_s2 = inlined_call_operand.hbm [shape: f32[4,16,16], index: 2, kind: input, shape index: {}]   ;;  %s6945_s3 = inlined_call_operand.hbm [shape: f32[4,16,16], index: 3, kind: input, shape index: {}]   ;;  %s6946_s4 = inlined_call_operand.vmem [shape: f32[32,32], index: 4, kind: input, shape index: {}]   ;;  %s6947_s5 = inlined_call_operand.vmem [shape: f32[1,32], index: 5, kind: input, shape index: {}]   ;;  %s6948_s6 = inlined_call_operand.hbm [shape: f32[32,32], index: 6, kind: input, shape index: {}]   ;;  %s6949_s7 = inlined_call_operand.vmem [shape: f32[1,32], index: 7, kind: input, shape index: {}]   ;;  %s6950_s8 = inlined_call_operand.hbm [shape: f32[32,32], index: 8, kind: input, shape index: {}]   ;;  %s6951_s9 = inlined_call_operand.vmem [shape: f32[1,32], index: 9, kind: input, shape index: {}]   ;;  %s6952_s10 = inlined_call_operand.vmem [shape: f32[1,4], index: 10, kind: input, shape index: {}]   ;;  %s6953_s11 = inlined_call_operand.vmem [shape: f32[16,4,4], index: 11, kind: output, shape index: {0}]   ;;  %s6954_s12 = inlined_call_operand.vmem [shape: f32[2,8,128], index: 12, kind: output, shape index: {1}]   ;;  %s6955_s13 = inlined_call_operand.vmem [shape: f32[2,8,128], index: 13, kind: output, shape index: {2}]  }
   0x1   :  { %6974 = sst [smem:[#allocation20_spill]] %s6942_s0 }
   0x2   :  { %6975 = sst [smem:[#allocation21_spill]] %s6943_s1 }
   0x3   :  { %6976 = sst [smem:[#allocation22_spill]] %s6946_s4 }
   0x4   :  { %6977 = sst [smem:[#allocation23_spill]] %s6947_s5 }
   0x5   :  { %6978 = sst [smem:[#allocation24_spill]] %s6948_s6 }
   0x6   :  { %6979 = sst [smem:[#allocation25_spill]] %s6949_s7 }
   0x7   :  { %6980 = sst [smem:[#allocation26_spill]] %s6951_s9 }
   0x8   :  { %6981 = sst [smem:[#allocation27_spill]] %s6952_s10 }
   0x9   :  { %6982 = sst [smem:[#allocation28_spill]] %s6953_s11 }
   0xa   :  { %6983 = sst [smem:[#allocation29_spill]] %s6954_s12 }
   0xb   :  { %6984 = sst [smem:[#allocation30_spill]] %s6955_s13 }
   0xc   :  { %19 = vsyncpa [#allocation3], 0 }
   0xd   :  { %21 = vsyncpa [#allocation3 + $0x1], 0 }
   0xe   :  { %22 = vsyncpa [#allocation5], 0 }
   0xf   :  { %24 = vsyncpa [#allocation5 + $0x1], 0 }
  0x10   :  { %25 = vsyncpa [#allocation8], 0 }
  0x11   :  { %27 = vsyncpa [#allocation8 + $0x1], 0 }
  0x12   :  { %28 = vsyncpa [#allocation11], 0  ;;  %s5505_s25 = smov 0   ;;  %s5507_s26 = smov 0  }
  0x13   :  { %s5509_s27 = smov 0   ;;  %s5511_s28 = smov 0  }
  0x14 LB: > { %s5524_s29 = sadd.s32 4294967295, %s5414_s28   ;;  %s5527_s30 = sadd.s32 1, %s5414_s28   ;;  %s5414_s28 = sphi %s5511_s28, %s7026_s28   ;;  %s5410_s27 = sphi %s5509_s27, %s7030_s27   ;;  %s5406_s26 = sphi %s5507_s26, %s7029_s26   ;;  %s5402_s25 = sphi %s5505_s25, %s7028_s25  }
  0x15   : > { %6985 = sst [smem:[#allocation17_spill]] %s5527_s30  ;;  %s38_s14 = ssub.s32 %s5414_s28, %s5527_s30 }
  0x16   : > { %s41_s15 = sadd.s32 1, %s5410_s27  ;;  %p39_p0 = scmp.eq.s32.totalorder %s38_s14, 0 }
  0x17   : > { %p48_p1 = scmp.ne.s32.totalorder %s5410_s27, %s5406_s26  ;;  %p49_p2 = scmp.eq.s32.totalorder %s5414_s28, 0 }
  0x18   : > { %p54_p3 = scmp.ne.s32.totalorder %s5406_s26, %s5402_s25  ;;  %p6958_p5 = scmp.eq.s32.totalorder %s5524_s29, 0 }
  0x19   : > { %s5537_s16 = scalar_select %p39_p0, %s5410_s27, %s41_s15  }
  0x1a   : > { %p5539_p4 = por %p49_p2, %p48_p1  ;;  %p4389_p6 = scmp.ge.s32.totalorder %s5414_s28, 1 }
  0x1b   : > { %6986 = sst [smem:[#allocation18_spill]] %s5537_s16  ;;  %p368_p7 = scmp.lt.s32.totalorder %s5414_s28, 3 }
  0x1c   : > { %p5548_p8 = por %p6958_p5, %p54_p3  ;;  %s5416_s20 = smov [#allocation9]  }
  0x1d   : > { %p5552_p9 = pnand %p4389_p6, %p368_p7  ;;  %s386_s21 = sshll.u32 %s5416_s20, 4  ;;  %s387_s21 = int_to_ptr.vmem [resolvable:$true] %s386_s21 }
  0x1e   : > { %s6988_s18 = scalar_select %p5548_p8, 1, 0 }
  0x1f   : > { %s6989_s19 = scalar_select %p5552_p9, 1, 0 }
  0x20   : > { %p4928_p10 = pneg %p5552_p9  ;;  %p4950_p12 = scmp.lt.s32.totalorder %s5414_s28, 2 }
  0x21   : > { %s5567_s24 = sshll.u32 %s5414_s28, 7  ;;  %s6992_s6 = sld [smem:[#allocation24_spill]] }
  0x22   : > { %p5560_p11 = pnand %p4928_p10, %p6958_p5  ;;  %p5571_p13 = pnand %p4950_p12, %p5539_p4 }
  0x24   : > { %s6990_s22 = scalar_select %p5560_p11, 1, 0 }
  0x25   : > { %s6991_s25 = scalar_select %p5571_p13, 1, 0 }
  0x26   : > { %p6965_p1 = pneg %p5560_p11 }
  0x27   : > { %s5188_s20 = scalar_lea.hbm %s6992_s6, 512 }
  0x28   : > { %p5189_p0 = scmp.ne.s32.totalorder %s6992_s6, %s5188_s20  ;;  %p5195_p4 = scmp.lt.u32.totalorder %s5188_s20, %s6992_s6 }
  0x2a   : > { %p5191_p2 = pnand %p6965_p1, %p5189_p0 }
  0x2c   : > { %p5192_p3 = pneg %p5191_p2 }
  0x2e   : > { %p5197_p6 = pnand %p5195_p4, %p5192_p3 }
  0x30   : > { %5200 = shalt.err (!%p5197_p6)
}
  0x31   : > { %s5201_s13 = scalar_lea.vmem %s387_s21, 512  ;;  %p5209_p5 = scmp.lt.s32.totalorder %s387_s21, %s387_s21 }
  0x32   : > { %p5202_p7 = scmp.ne.s32.totalorder %s387_s21, %s5201_s13  ;;  %p5210_p8 = scmp.lt.s32.totalorder %s5201_s13, %s5201_s13 }
  0x34   : > { %p5204_p10 = pnand %p5202_p7, %p6965_p1  ;;  %p5211_p9 = por %p5210_p8, %p5209_p5 }
  0x36   : > { %p5205_p12 = pneg %p5204_p10 }
  0x38   : > { %p5212_p13 = pnand %p5211_p9, %p5205_p12 }
  0x3a   : > { %5215 = shalt.err (!%p5212_p13)
}
  0x3b   : > { %s6962_s30 = smov 128   ;;  %s5418_s16 = smov 8  }
  0x3c   : > { %4931 = dma.hbm_to_vmem [thread:$0]  (!%p5560_p11), %s6992_s6, 512, %s387_s21, [#allocation8], %s6962_s30, %s6962_s30, %s5418_s16  }
  0x3d   : > { %s6993_s13 = sand.u32 1, %s5410_s27   ;;  %s6964_s20 = sand.u32 1, %s5414_s28  }
  0x3e   : > { %s5602_s15 = sshll.u32 %s6993_s13, 5  ;;  %s6994_s1 = sld [smem:[#allocation21_spill]] }
  0x3f   : > { %s446_s11 = scalar_lea.vmem [#allocation4], %s5602_s15  ;;  %s5616_s21 = scalar_lea.sflag [#allocation5], %s6964_s20 }
  0x40   : > { %s452_s9 = sshll.u32 %s446_s11, 4  ;;  %p6995_p8 = scmp.ne.s32.totalorder %s6991_s25, 0  ;;  %s5612_s9 = int_to_ptr.vmem [resolvable:$true] %s452_s9 }
  0x42   : > { %p5622_p9 = pneg %p6995_p8 }
  0x44   : > { %s5609_s10 = scalar_lea.hbm %s6994_s1, %s5567_s24  ;;  %s5221_s11 = scalar_lea.hbm %s6994_s1, 1024 }
  0x45   : > { %s5216_s23 = scalar_lea.hbm %s5609_s10, 512  ;;  %p5222_p2 = scmp.lt.u32.totalorder %s5609_s10, %s6994_s1 }
  0x46   : > { %p5217_p5 = scmp.ne.s32.totalorder %s5609_s10, %s5216_s23  ;;  %p5223_p3 = scmp.lt.u32.totalorder %s5221_s11, %s5216_s23 }
  0x47   : > { %s6996_s14 = scalar_select %p5622_p9, 1, 0 }
  0x48   : > { %p5219_p13 = pnand %p5622_p9, %p5217_p5  ;;  %p5224_p4 = por %p5223_p3, %p5222_p2 }
  0x49   : > { %p5225_p6 = scmp.lt.u32.totalorder %s5216_s23, %s5609_s10 }
  0x4a   : > { %p5220_p0 = pneg %p5219_p13 }
  0x4b   : > { %p5226_p7 = por %p5225_p6, %p5224_p4 }
  0x4d   : > { %p5227_p10 = pnand %p5226_p7, %p5220_p0 }
  0x4f   : > { %5230 = shalt.err (!%p5227_p10)
}
  0x50   : > { %s5231_s20 = scalar_lea.vmem %s5612_s9, 512  ;;  %s5419_s12 = smov [#allocation4]  }
  0x51   : > { %p5232_p12 = scmp.ne.s32.totalorder %s5612_s9, %s5231_s20  ;;  %s5236_s13 = sshll.u32 %s5419_s12, 4  ;;  %s5237_s13 = int_to_ptr.vmem [resolvable:$false] %s5236_s13 }
  0x52   : > { %s5238_s30 = scalar_lea.vmem %s5237_s13, 1024  ;;  %p5239_p1 = scmp.lt.s32.totalorder %s5612_s9, %s5237_s13 }
  0x53   : > { %p5234_p5 = pnand %p5232_p12, %p5622_p9  ;;  %p5240_p11 = scmp.lt.s32.totalorder %s5238_s30, %s5231_s20 }
  0x55   : > { %p5235_p13 = pneg %p5234_p5  ;;  %p5241_p2 = por %p5240_p11, %p5239_p1 }
  0x57   : > { %p5242_p3 = pnand %p5241_p2, %p5235_p13 }
  0x59   : > { %5245 = shalt.err (!%p5242_p3)
}
  0x5a   : > { %s5420_s23 = smov 256   ;;  %s6997_s11 = smov 128  }
  0x5b   : > { %4941 = dma.hbm_to_vmem [thread:$0]  (!%p6995_p8), %s5609_s10, 512, %s5612_s9, %s5616_s21, %s5420_s23, %s6997_s11, %s5418_s16  }
  0x5c   : > { %s5421_s17 = smov [#allocation10]   ;;  %s6998_s0 = sld [smem:[#allocation20_spill]] }
  0x5d   : > { %s402_s12 = sshll.u32 %s5421_s17, 4  ;;  %s5246_s7 = scalar_lea.hbm %s6950_s8, 512  ;;  %s403_s12 = int_to_ptr.vmem [resolvable:$true] %s402_s12 }
  0x5e   : > { %p5247_p11 = scmp.ne.s32.totalorder %s6950_s8, %s5246_s7  ;;  %p6999_p1 = scmp.ne.s32.totalorder %s6990_s22, 0 }
  0x5f   : > { %p5253_p7 = scmp.lt.u32.totalorder %s5246_s7, %s6950_s8 }
  0x60   : > { %p7000_p0 = pneg %p6999_p1 }
  0x62   : > { %s5653_s30 = scalar_lea.hbm %s6998_s0, %s5567_s24  ;;  %p5249_p4 = pnand %p5247_p11, %p7000_p0 }
  0x64   : > { %p5250_p6 = pneg %p5249_p4 }
  0x66   : > { %p5255_p10 = pnand %p5253_p7, %p5250_p6 }
  0x68   : > { %5258 = shalt.err (!%p5255_p10)
}
  0x69   : > { %s5259_s17 = scalar_lea.vmem %s403_s12, 512  ;;  %p7001_p5 = pmov %p7000_p0 }
  0x6a   : > { %p5260_p12 = scmp.ne.s32.totalorder %s403_s12, %s5259_s17  ;;  %p5267_p3 = scmp.lt.s32.totalorder %s403_s12, %s403_s12 }
  0x6b   : > { %p5268_p8 = scmp.lt.s32.totalorder %s5259_s17, %s5259_s17 }
  0x6c   : > { %p5262_p13 = pnand %p5260_p12, %p7001_p5 }
  0x6d   : > { %p5269_p9 = por %p5268_p8, %p5267_p3 }
  0x6e   : > { %p5263_p2 = pneg %p5262_p13 }
  0x70   : > { %p5270_p0 = pnand %p5269_p9, %p5263_p2 }
  0x72   : > { %5273 = shalt.err (!%p5270_p0)
}
  0x73   : > { %4934 = dma.hbm_to_vmem [thread:$0]  (!%p6999_p1), %s6950_s8, 512, %s403_s12, [#allocation11], %s6997_s11, %s6997_s11, %s5418_s16  }
  0x74   : > { %s426_s5 = scalar_lea.vmem [#allocation2], %s5602_s15  ;;  %s5685_s13 = scalar_lea.hbm %s6944_s2, %s5567_s24 }
  0x75   : > { %s432_s6 = sshll.u32 %s426_s5, 4  ;;  %s7002_s20 = sand.u32 1, %s5410_s27   ;;  %s5679_s6 = int_to_ptr.vmem [resolvable:$true] %s432_s6 }
  0x76   : > { %s5689_s9 = scalar_lea.sflag [#allocation3], %s7002_s20  ;;  %s5274_s10 = scalar_lea.hbm %s5653_s30, 512 }
  0x77   : > { %p5275_p8 = scmp.ne.s32.totalorder %s5653_s30, %s5274_s10  ;;  %p7003_p9 = scmp.ne.s32.totalorder %s6996_s14, 0 }
  0x78   : > { %s5279_s12 = scalar_lea.hbm %s6998_s0, 1024  ;;  %p5280_p1 = scmp.lt.u32.totalorder %s5653_s30, %s6998_s0 }
  0x79   : > { %p5277_p11 = pnand %p5275_p8, %p7003_p9  ;;  %p5281_p6 = scmp.lt.u32.totalorder %s5279_s12, %s5274_s10 }
  0x7a   : > { %p5283_p10 = scmp.lt.u32.totalorder %s5274_s10, %s5653_s30 }
  0x7b   : > { %p5278_p4 = pneg %p5277_p11  ;;  %p5282_p7 = por %p5281_p6, %p5280_p1 }
  0x7d   : > { %p5284_p12 = por %p5283_p10, %p5282_p7 }
  0x7f   : > { %p5285_p5 = pnand %p5284_p12, %p5278_p4 }
  0x81   : > { %5288 = shalt.err (!%p5285_p5)
}
  0x82   : > { %s5289_s7 = scalar_lea.vmem %s5679_s6, 512  ;;  %s5422_s22 = smov [#allocation2]  }
  0x83   : > { %p5290_p13 = scmp.ne.s32.totalorder %s5679_s6, %s5289_s7  ;;  %s5294_s20 = sshll.u32 %s5422_s22, 4  ;;  %s5295_s20 = int_to_ptr.vmem [resolvable:$false] %s5294_s20 }
  0x84   : > { %s5296_s17 = scalar_lea.vmem %s5295_s20, 1024  ;;  %p5297_p0 = scmp.lt.s32.totalorder %s5679_s6, %s5295_s20 }
  0x85   : > { %p5292_p2 = pnand %p5290_p13, %p7003_p9  ;;  %p5298_p8 = scmp.lt.s32.totalorder %s5296_s17, %s5289_s7 }
  0x87   : > { %p5293_p3 = pneg %p5292_p2  ;;  %p5299_p11 = por %p5298_p8, %p5297_p0 }
  0x89   : > { %p5300_p1 = pnand %p5299_p11, %p5293_p3 }
  0x8b   : > { %5303 = shalt.err (!%p5300_p1)
}
  0x8c   : > { %p7004_p4 = scmp.ne.s32.totalorder %s6991_s25, 0  ;;  %s466_s10 = scalar_lea.vmem [#allocation6], %s5602_s15 }
  0x8d   : > { %s472_s1 = sshll.u32 %s466_s10, 4  ;;  %s5723_s5 = scalar_lea.hbm %s6945_s3, %s5567_s24  ;;  %s5717_s1 = int_to_ptr.vmem [resolvable:$true] %s472_s1 }
  0x8e   : > { %4938 = dma.hbm_to_vmem [thread:$0]  (!%p7004_p4), %s5653_s30, 512, %s5679_s6, %s5689_s9, %s5420_s23, %s6997_s11, %s5418_s16  }
  0x8f   : > { %s5304_s7 = scalar_lea.hbm %s5685_s13, 512  ;;  %s5309_s17 = scalar_lea.hbm %s6944_s2, 1024 }
  0x90   : > { %p5305_p6 = scmp.ne.s32.totalorder %s5685_s13, %s5304_s7  ;;  %p5310_p12 = scmp.lt.u32.totalorder %s5685_s13, %s6944_s2 }
  0x91   : > { %p5311_p5 = scmp.lt.u32.totalorder %s5309_s17, %s5304_s7  ;;  %p5313_p2 = scmp.lt.u32.totalorder %s5304_s7, %s5685_s13 }
  0x92   : > { %p5307_p7 = pnand %p5305_p6, %p7003_p9 }
  0x93   : > { %p5312_p13 = por %p5311_p5, %p5310_p12 }
  0x94   : > { %p5308_p10 = pneg %p5307_p7 }
  0x95   : > { %p5314_p3 = por %p5313_p2, %p5312_p13 }
  0x97   : > { %p5315_p0 = pnand %p5314_p3, %p5308_p10 }
  0x99   : > { %5318 = shalt.err (!%p5315_p0)
}
  0x9a   : > { %s5319_s24 = scalar_lea.vmem %s5717_s1, 512  ;;  %s5423_s6 = smov [#allocation6]  }
  0x9b   : > { %p5320_p8 = scmp.ne.s32.totalorder %s5717_s1, %s5319_s24  ;;  %s5324_s9 = sshll.u32 %s5423_s6, 4  ;;  %s5325_s9 = int_to_ptr.vmem [resolvable:$false] %s5324_s9 }
  0x9c   : > { %s5326_s0 = scalar_lea.vmem %s5325_s9, 1024  ;;  %p5327_p6 = scmp.lt.s32.totalorder %s5717_s1, %s5325_s9 }
  0x9d   : > { %p5322_p11 = pnand %p5320_p8, %p7003_p9  ;;  %p5328_p7 = scmp.lt.s32.totalorder %s5326_s0, %s5319_s24 }
  0x9f   : > { %p5323_p1 = pneg %p5322_p11  ;;  %p5329_p12 = por %p5328_p7, %p5327_p6 }
  0xa1   : > { %p5330_p5 = pnand %p5329_p12, %p5323_p1 }
  0xa3   : > { %5333 = shalt.err (!%p5330_p5)
}
  0xa4   : > { %4944 = dma.hbm_to_vmem [thread:$0]  (!%p7004_p4), %s5685_s13, 512, %s5717_s1, %s5616_s21, %s5420_s23, %s6997_s11, %s5418_s16  }
  0xa5   : > { %s486_s10 = scalar_lea.vmem [#allocation7], %s5602_s15  ;;  %s7005_s4 = sand.u32 1, %s5414_s28  }
  0xa6   : > { %s492_s12 = sshll.u32 %s486_s10, 4  ;;  %s5755_s7 = scalar_lea.sflag [#allocation8], %s7005_s4  ;;  %s5751_s12 = int_to_ptr.vmem [resolvable:$true] %s492_s12 }
  0xa7   : > { %s5334_s22 = scalar_lea.hbm %s5723_s5, 512  ;;  %s5339_s30 = scalar_lea.hbm %s6945_s3, 1024 }
  0xa8   : > { %p5335_p10 = scmp.ne.s32.totalorder %s5723_s5, %s5334_s22  ;;  %p5340_p3 = scmp.lt.u32.totalorder %s5723_s5, %s6945_s3 }
  0xa9   : > { %p5341_p0 = scmp.lt.u32.totalorder %s5339_s30, %s5334_s22  ;;  %p5343_p11 = scmp.lt.u32.totalorder %s5334_s22, %s5723_s5 }
  0xaa   : > { %p5337_p13 = pnand %p5335_p10, %p7003_p9 }
  0xab   : > { %p5342_p8 = por %p5341_p0, %p5340_p3 }
  0xac   : > { %p5338_p2 = pneg %p5337_p13 }
  0xad   : > { %p5344_p1 = por %p5343_p11, %p5342_p8 }
  0xaf   : > { %p5345_p6 = pnand %p5344_p1, %p5338_p2 }
  0xb1   : > { %5348 = shalt.err (!%p5345_p6)
}
  0xb2   : > { %s5349_s28 = scalar_lea.vmem %s5751_s12, 512  ;;  %s5424_s15 = smov [#allocation7]  }
  0xb3   : > { %p5350_p7 = scmp.ne.s32.totalorder %s5751_s12, %s5349_s28  ;;  %s5354_s21 = sshll.u32 %s5424_s15, 4  ;;  %s5355_s21 = int_to_ptr.vmem [resolvable:$false] %s5354_s21 }
  0xb4   : > { %s5356_s13 = scalar_lea.vmem %s5355_s21, 1024  ;;  %p5357_p10 = scmp.lt.s32.totalorder %s5751_s12, %s5355_s21 }
  0xb5   : > { %p5352_p12 = pnand %p5350_p7, %p7003_p9  ;;  %p5358_p13 = scmp.lt.s32.totalorder %s5356_s13, %s5349_s28 }
  0xb7   : > { %p5353_p5 = pneg %p5352_p12  ;;  %p5359_p3 = por %p5358_p13, %p5357_p10 }
  0xb9   : > { %p5360_p0 = pnand %p5359_p3, %p5353_p5 }
  0xbb   : > { %5363 = shalt.err (!%p5360_p0)
}
  0xbc   : > { %4947 = dma.hbm_to_vmem [thread:$0]  (!%p7004_p4), %s5723_s5, 512, %s5751_s12, %s5755_s7, %s5420_s23, %s6997_s11, %s5418_s16  }
  0xbd   : > { %p7006_p9 = scmp.ne.s32.totalorder %s6989_s19, 0 }
  0xbf   : > { %504 = sbr.rel (%p7006_p9) target bundleno = 1816 (0x718), region = 64 }
  0xc6   : > { %s506_s14 = sand.u32 1, %s5406_s26   ;;  %p7007_p2 = scmp.ne.s32.totalorder %s6988_s18, 0 }
  0xc7   : > { %s4402_s1 = sshll.u32 %s506_s14, 5  ;;  %s507_s9 = scalar_lea.sflag [#allocation3], %s506_s14 }
  0xc8   : > { %s5785_s0 = scalar_lea.vmem [#allocation2], %s4402_s1 }
  0xc9   : > { %5381 = dma.done.wait (%p7007_p2), %s507_s9, 512  }
  0xca   : > { %5383 = vsyncadd (%p7007_p2), %s507_s9, 4294966784  ;;  %s515_s25 = sand.u32 1, %s5524_s29   ;;  %s5792_s16 = scalar_lea.vmem [#allocation4], %s4402_s1 }
  0xcb   : > { %s516_s10 = scalar_lea.sflag [#allocation5], %s515_s25 }
  0xcc   : > { %5385 = dma.done.wait (%p7007_p2), %s516_s10, 1024  }
  0xcd   : > { %5387 = vsyncadd (%p7007_p2), %s516_s10, 4294966272  ;;  %s5798_s19 = scalar_lea.vmem [#allocation6], %s4402_s1  ;;  %s534_s23 = scalar_lea.sflag [#allocation8], %s515_s25 }
  0xce   : > { %s5800_s11 = scalar_lea.vmem [#allocation7], %s4402_s1 }
  0xcf   : > { %5389 = dma.done.wait (%p7007_p2), %s534_s23, 512  }
  0xd0   : > { %5391 = vsyncadd (%p7007_p2), %s534_s23, 4294966784  ;;  %p7008_p4 = scmp.eq.s32.totalorder %s5524_s29, 0 }
  0xd2   : > { %5393 = dma.done.wait (%p7008_p4), [#allocation8], 512   ;;  %p7009_p8 = pmov %p7008_p4 }
  0xd3   : > { %p7010_p11 = pmov %p7008_p4 }
  0xd4   : > { %5395 = vsyncadd (%p7009_p8), [#allocation8], 4294966784 }
  0xd5   : > { %5397 = dma.done.wait (%p7010_p11), [#allocation11], 512   ;;  %p7011_p1 = pmov %p7008_p4 }
  0xd6   : > { %vm645_vm0 = vcmask 261120   ;;  %s7014_s12 = sld [smem:[#allocation22_spill]]  ;;  %v755_v3 = vld [vmem:[#allocation9] sm:$0xff]  ;;  %v756_v5 = vld [vmem:[#allocation9 + $0x8] sm:$0xff]  ;;  %v757_v10 = vld [vmem:[#allocation9 + $0x10] sm:$0xff]  ;;  %v5425_v29 = vmov 0.0   ;;  %v1028_v34 = vlaneseq }
  0xd7   : > { %5399 = vsyncadd (%p7011_p1), [#allocation11], 4294966784  ;;  %v4884_v8 = vpack.c.bf16 %v756_v5, %v755_v3  ;;  %v758_v11 = vld [vmem:[#allocation9 + $0x18] sm:$0xff]  ;;  %v630_v12 = vld [vmem:[%s5792_s16] sm:$0xff]  ;;  %vm5426_vm2 = vmmov 0   ;;  %s7015_s28 = sld [smem:[#allocation23_spill]] }
  0xd8   : > { %vm5816_vm1 = vmpackc.low %vm645_vm0, %vm645_vm0  ;;  %v4890_v13 = vpack.c.bf16 %v758_v11, %v757_v10  ;;  %4598 = vmatprep.mubr.msk.f32.mxu0 %vm645_vm0, %v630_v12  ;;  %v5837_v14 = vld [vmem:[%s5785_s0] sm:$0xff]  ;;  %v631_v15 = vld [vmem:[%s5792_s16 + $0x8] sm:$0xff]  ;;  %v5427_v32 = vmov 1983009808   ;;  %v5428_v35 = vmov 1934713408  }
  0xd9   : > { %v5841_v16 = vld [vmem:[%s5785_s0 + $0x8] sm:$0xff]  ;;  %4886 = vmatprep.subr.msk.bf16.mxu1 %vm5816_vm1, %v4884_v8  ;;  %4612 = vmatprep.mubr.msk.f32.mxu1 %vm645_vm0, %v5837_v14  ;;  %v632_v18 = vld [vmem:[%s5792_s16 + $0x10] sm:$0xff]  ;;  %v633_v20 = vld [vmem:[%s5792_s16 + $0x18] sm:$0xff]  ;;  %v875_v28 = vsub.f32 %v5837_v14, %v630_v12  ;;  %v1026_v33 = vunpack.c.l.s4 %v5427_v32  ;;  %v1058_v36 = vunpack.c.l.s4 %v5428_v35  ;;  %v1029_v40 = vshrl.u32 %v1028_v34, 7  ;;  %s7016_s13 = sld [smem:[#allocation25_spill]]  ;;  %s5429_s14 = smov 120  }
  0xda   : > { %v876_v17 = vsub.f32 %v5841_v16, %v631_v15  ;;  %4889 = vmatpush3.bf16.xpose.msk.msra.mxu1 %vm5816_vm1, %v4884_v8  ;;  %v5862_v19 = vld [vmem:[%s5785_s0 + $0x10] sm:$0xff]  ;;  %v5872_v21 = vld [vmem:[%s5785_s0 + $0x18] sm:$0xff]  ;;  %v879_v22 = vld [vmem:[#allocation10] sm:$0xff]  ;;  %vm1523_vm3 = vcmask 64512   ;;  %s5430_s1 = smov 112   ;;  %s5431_s9 = smov 104  }
  0xdb   : > { %4892 = vmatprep.subr.msk.bf16.mxu1 %vm5816_vm1, %v4890_v13  ;;  %v880_v23 = vld [vmem:[#allocation10 + $0x8] sm:$0xff]  ;;  %v881_v25 = vld [vmem:[#allocation10 + $0x10] sm:$0xff]  ;;  %v882_v26 = vld [vmem:[#allocation10 + $0x18] sm:$0xff]  ;;  %v877_v30 = vsub.f32 %v5862_v19, %v632_v18  ;;  %v878_v31 = vsub.f32 %v5872_v21, %v633_v20  ;;  %v1027_v39 = vunpack.c.0.s8 %v1026_v33  ;;  %v1059_v44 = vunpack.c.0.s8 %v1058_v36  ;;  %s7018_s10 = sld [smem:[#allocation26_spill]]  ;;  %s5432_s23 = smov 32  }
  0xdc   : > { %v634_v1 = vld [vmem:[%s7014_s12] sm:$0xff]  ;;  %v635_v2 = vld [vmem:[%s7014_s12 + $0x8] sm:$0xff]  ;;  %v636_v6 = vld [vmem:[%s7014_s12 + $0x10] sm:$0xff]  ;;  %v4896_v24 = vpack.c.bf16 %v880_v23, %v879_v22  ;;  %v4902_v27 = vpack.c.bf16 %v882_v26, %v881_v25  ;;  %s5433_s18 = smov 64   ;;  %vm3628_vm4 = vcmask 523264   ;;  %vm3657_vm5 = vcmask 1041408  }
  0xdd   : > { %v4872_v4 = vpack.c.bf16 %v635_v2, %v634_v1  ;;  %v637_v7 = vld [vmem:[%s7014_s12 + $0x18] sm:$0xff]  ;;  %v4412_v38 = vld [vmem:[%s7015_s28] ss:$0 sm:$0xff]  ;;  %v5904_v49 = vsub.s32 %v1027_v39, %v1029_v40  ;;  %v5906_v56 = vsub.s32 %v1059_v44, %v1029_v40  ;;  %vm1900_vm6 = vcmask 27648   ;;  %s7020_s22 = sld [smem:[#allocation28_spill]]  ;;  %s7021_s24 = sld [smem:[#allocation27_spill]] }
  0xde   : > { %v4878_v9 = vpack.c.bf16 %v637_v7, %v636_v6  ;;  %vm3653_vm7 = vcmask 31744   ;;  %s5434_s6 = smov 96   ;;  %vm4111_vm8 = vcmask 257024   ;;  %vm4146_vm9 = vcmask 125952   ;;  %p617_p7 = scmp.lt.s32.totalorder %s5524_s29, 1 }
  0xdf   : > { %4874 = vmatprep.subr.msk.bf16.mxu0 %vm5816_vm1, %v4872_v4  ;;  %v4421_v45 = vld [vmem:[%s7016_s13] ss:$0 sm:$0xff]  ;;  %7017 = vst [vmem:[#allocation19_spill] sm:$0xff] %v5904_v49  ;;  %s7024_s15 = sld [smem:[#allocation29_spill]] }
  0xe0   : > { %4877 = vmatpush3.bf16.xpose.msk.msra.mxu0 %vm5816_vm1, %v4872_v4 }
  0xe1   : > { %4880 = vmatprep.subr.msk.bf16.mxu0 %vm5816_vm1, %v4878_v9 }
  0xe2   : > { %4895 = vmatpush3.bf16.xpose.msk.msra.mxu1 %vm5816_vm1, %v4890_v13 }
  0xe3   : > { %4632 = vmatprep.subr.bf16.mxu1 %v5425_v29 }
  0xe8   : > { %4883 = vmatpush3.bf16.xpose.msk.msra.mxu0 %vm5816_vm1, %v4878_v9 }
  0xe9   : > { %4613 = vmatmul.mubr.msk.f32.vlgmr.msra.gmra.mrb[0].mxu1 %vm645_vm0, %v5841_v16  ;;  %4898 = vmatprep.subr.msk.bf16.mxu0 %vm5816_vm1, %v4896_v24 }
  0xea   : > { %4615 = vmatprep.mubr.msk.f32.mxu1 %vm645_vm0, %v5862_v19 }
  0xed   : > { %4616 = vmatmul.mubr.msk.f32.gmra.mrb[2].mxu1 %vm645_vm0, %v5872_v21 }
  0xee   : > { %4634 = vmatprep.mubr.msk.bf16.mxu1 %vm5426_vm2, %v5425_v29 }
  0xef   : > { %4599 = vmatmul.mubr.msk.f32.vlgmr.msra.gmra.mrb[0].mxu0 %vm645_vm0, %v631_v15 }
  0xf0   : > { %4601 = vmatprep.mubr.msk.f32.mxu0 %vm645_vm0, %v632_v18  ;;  %4901 = vmatpush3.bf16.xpose.msk.msra.mxu0 %vm5816_vm1, %v4896_v24 }
  0xf1   : > { %4904 = vmatprep.subr.msk.bf16.mxu0 %vm5816_vm1, %v4902_v27 }
  0xf3   : > { %4602 = vmatmul.mubr.msk.f32.gmra.mrb[2].mxu0 %vm645_vm0, %v633_v20 }
  0xf4   : > { %4626 = vmatprep.mubr.msk.f32.mxu0 %vm645_vm0, %v875_v28 }
  0xf8   : > { %4907 = vmatpush3.bf16.xpose.msk.msra.mxu0 %vm5816_vm1, %v4902_v27 }
  0xf9   : > { %4644 = vmatprep.subr.bf16.mxu0 %v5425_v29 }
  0xff   : > { %4627 = vmatmul.mubr.msk.f32.vlgmr.msra.gmra.mrb[4].mxu0 %vm645_vm0, %v876_v17 }
 0x100   : > { %4629 = vmatprep.mubr.msk.f32.mxu0 %vm645_vm0, %v877_v30 }
 0x103   : > { %4630 = vmatmul.mubr.msk.f32.gmra.mrb[6].mxu0 %vm645_vm0, %v878_v31 }
 0x104   : > { %4646 = vmatprep.mubr.msk.bf16.mxu0 %vm5426_vm2, %v5425_v29 }
 0x1bc   : > { %v4614_v41 = vpop.f32.mrb[0].mxu1 }
 0x1bd   : > { %v856_v43 = vpop.f32.mrb[1].mxu1  ;;  %v862_v53 = vadd.f32 %v4614_v41, %v4421_v45 }
 0x1be   : > { %v857_v58 = vadd.f32 %v4421_v45, %v856_v43 }
 0x1c0   : > { %v4617_v51 = vpop.f32.mrb[2].mxu1 }
 0x1c1   : > { %v872_v54 = vadd.f32 %v4617_v51, %v4421_v45  ;;  %v866_v57 = vpop.f32.mrb[3].mxu1 }
 0x1c2   : > { %v4600_v37 = vpop.f32.mrb[0].mxu0  ;;  %v867_v61 = vadd.f32 %v4421_v45, %v866_v57 }
 0x1c3   : > { %v736_v42 = vpop.f32.mrb[1].mxu0  ;;  %v742_v46 = vadd.f32 %v4600_v37, %v4412_v38  ;;  %v1107_v62 = vcombine.low %v862_v53, %v872_v54  ;;  %v1108_v63 = vcombine.high %v862_v53, %v872_v54 }
 0x1c4   : > { %v737_v47 = vadd.f32 %v4412_v38, %v736_v42  ;;  %v1091_v4 = vcombine.low %v857_v58, %v867_v61  ;;  %v1092_v5 = vcombine.high %v857_v58, %v867_v61 }
 0x1c5   : > { %v1115_v6 = vrot.slane %v1107_v62, %v5904_v49  ;;  %v1122_v7 = vrot.slane %v1108_v63, %v5904_v49 }
 0x1c6   : > { %v4603_v48 = vpop.f32.mrb[2].mxu0  ;;  %v1099_v10 = vrot.slane %v1091_v4, %v5904_v49  ;;  %v1106_v11 = vrot.slane %v1092_v5, %v5904_v49  ;;  %v1243_v4 = vcombine.low %v5841_v16, %v5872_v21 }
 0x1c7   : > { %v752_v50 = vadd.f32 %v4603_v48, %v4412_v38  ;;  %v746_v52 = vpop.f32.mrb[3].mxu0 }
 0x1c8   : > { %v747_v55 = vadd.f32 %v4412_v38, %v746_v52  ;;  %v1123_v18 = vcombine.low %v1099_v10, %v1115_v6  ;;  %v1124_v20 = vcombine.high %v1099_v10, %v1115_v6  ;;  %v1139_v22 = vcombine.low %v1106_v11, %v1122_v7  ;;  %v5028_v10 = vld [vmem:[%s5798_s19] ss:$16 sps:$4 sm:$0xff]  }
 0x1c9   : > { %v1039_v59 = vcombine.low %v742_v46, %v752_v50  ;;  %v1040_v60 = vcombine.high %v742_v46, %v752_v50  ;;  %v1140_v23 = vcombine.high %v1106_v11, %v1122_v7  ;;  %v1251_v6 = vrot.slane %v1243_v4, %v5904_v49  ;;  %v5031_v11 = vld [vmem:[%s5798_s19 + $0x8] ss:$16 sps:$4 sm:$0xff]  }
 0x1ca   : > { %v1023_v0 = vcombine.low %v737_v47, %v747_v55  ;;  %v1024_v1 = vcombine.high %v737_v47, %v747_v55  ;;  %v1131_v25 = vrot.slane %v1123_v18, %v5906_v56  ;;  %v1138_v26 = vrot.slane %v1124_v20, %v5906_v56 }
 0x1cb   : > { %v1047_v2 = vrot.slane %v1039_v59, %v5904_v49  ;;  %v5910_v3 = vrot.slane %v1040_v60, %v5904_v49  ;;  %v1147_v34 = vrot.slane %v1139_v22, %v5906_v56  ;;  %v1154_v44 = vrot.slane %v1140_v23, %v5906_v56 }
 0x1cc   : > { %v1031_v8 = vrot.slane %v1023_v0, %v5904_v49  ;;  %v5916_v9 = vrot.slane %v1024_v1, %v5904_v49  ;;  %v5929_v28 = vpack.c.bf16 %v1138_v26, %v1138_v26  ;;  %v5931_v30 = vpack.c.bf16 %v1131_v25, %v1131_v25 }
 0x1cd   : > { %v1155_v31 = vcombine.high %v1131_v25, %v5425_v29  ;;  %v1156_v35 = vcombine.high %v1138_v26, %v5425_v29  ;;  %v5954_v39 = vpack.c.bf16 %v1147_v34, %v1147_v34  ;;  %v1157_v46 = vcombine.high %v1147_v34, %v5425_v29 }
 0x1ce   : > { %v1055_v12 = vcombine.low %v1031_v8, %v1047_v2  ;;  %v1056_v13 = vcombine.high %v1031_v8, %v1047_v2  ;;  %v1071_v15 = vcombine.low %v5916_v9, %v5910_v3  ;;  %v1072_v17 = vcombine.high %v5916_v9, %v5910_v3  ;;  %2001 = vrot.lane.b32.xlu0 %v5931_v30, %s5429_s14 }
 0x1cf   : > { %v1528_v32 = vsel %vm1523_vm3, %v5931_v30, 0  ;;  %v1620_v33 = vsel %vm1523_vm3, %v5929_v28, 0  ;;  %v5945_v37 = vpack.c.bf16 %v1155_v31, %v1155_v31  ;;  %v5956_v40 = vpack.c.bf16 %v1156_v35, %v1156_v35 }
 0x1d0   : > { %v1063_v24 = vrot.slane %v1055_v12, %v5906_v56  ;;  %4633 = vmatpush3.bf16.xpose.msra.mxu1 %v1528_v32  ;;  %4645 = vmatpush3.bf16.xpose.msra.mxu0 %v1620_v33  ;;  %v1070_v36 = vrot.slane %v1056_v13, %v5906_v56  ;;  %v1712_v45 = vsel %vm1523_vm3, %v5954_v39, 0  ;;  %v1079_v47 = vrot.slane %v1071_v15, %v5906_v56  ;;  %v4430_v15 = vld [vmem:[%s7018_s10] ss:$0 sm:$0xff] }
 0x1d1   : > { %4656 = vmatprep.subr.bf16.mxu0 %v5425_v29  ;;  %4638 = vmatprep.subr.bf16.mxu1 %v5425_v29  ;;  %v1574_v43 = vsel %vm1523_vm3, %v5945_v37, 0  ;;  %v5986_v50 = vpack.c.bf16 %v1154_v44, %v1154_v44  ;;  %v5990_v51 = vpack.c.bf16 %v1157_v46, %v1157_v46  ;;  %v1666_v54 = vsel %vm1523_vm3, %v5956_v40, 0 }
 0x1d2   : > { %v5927_v27 = vpack.c.bf16 %v1063_v24, %v1063_v24  ;;  %v1087_v38 = vcombine.high %v1063_v24, %v5425_v29  ;;  %2053 = vrot.lane.b32.xlu0 %v5945_v37, %s5429_s14  ;;  %v5958_v41 = vpack.c.bf16 %v1070_v36, %v1070_v36  ;;  %v1088_v48 = vcombine.high %v1070_v36, %v5425_v29  ;;  %v4628_v13 = vpop.f32.mrb[4].mxu0 }
 0x1d3   : > { %v5992_v52 = vpack.c.bf16 %v1079_v47, %v1079_v47  ;;  %v1804_v55 = vsel %vm1523_vm3, %v5986_v50, 0  ;;  %v1158_v57 = vcombine.high %v1154_v44, %v5425_v29  ;;  %v1086_v58 = vrot.slane %v1072_v17, %v5906_v56 }
 0x1d4   : > { %1998 = vrot.lane.b32.xlu1 %v5927_v27, %s5429_s14  ;;  %v5962_v42 = vpack.c.bf16 %v1087_v38, %v1087_v38  ;;  %v5996_v53 = vpack.c.bf16 %v1088_v48, %v1088_v48  ;;  %v1089_v59 = vcombine.high %v1079_v47, %v5425_v29  ;;  %v1758_v63 = vsel %vm1523_vm3, %v5990_v51, 0 }
 0x1d5   : > { %v6023_v60 = vpack.c.bf16 %v1158_v57, %v1158_v57  ;;  %v6026_v61 = vpack.c.bf16 %v1086_v58, %v1086_v58  ;;  %v1090_v0 = vcombine.high %v1086_v58, %v5425_v29  ;;  %v1227_v3 = vcombine.low %v5837_v14, %v5862_v19 }
 0x1d6   : > { %2050 = vrot.lane.b32.xlu0 %v5962_v42, %s5429_s14  ;;  %v6030_v62 = vpack.c.bf16 %v1089_v59, %v1089_v59  ;;  %v1228_v8 = vcombine.high %v5837_v14, %v5862_v19  ;;  %v1244_v9 = vcombine.high %v5841_v16, %v5872_v21  ;;  %v986_v19 = vadd.f32 %v4628_v13, %v4430_v15  ;;  %v980_v16 = vpop.f32.mrb[5].mxu0 }
 0x1d7   : > { %4647 = vmatmul.mubr.msk.bf16.vlgmr.msra.gmra.mrb[8].mxu0 %vm1523_vm3, %v5958_v41  ;;  %4635 = vmatmul.mubr.msk.bf16.vlgmr.msra.gmra.mrb[4].mxu1 %vm1523_vm3, %v5927_v27  ;;  %v6052_v1 = vpack.c.bf16 %v1090_v0, %v1090_v0  ;;  %v1850_v2 = vsel %vm1523_vm3, %v6023_v60, 0  ;;  %v1235_v5 = vrot.slane %v1227_v3, %v5904_v49  ;;  %v1375_v17 = vrot.slane %v5028_v10, %v5904_v49  ;;  %v4631_v26 = vpop.f32.mrb[6].mxu0 }
 0x1d8   : > { %2105 = vrot.lane.b32.xlu1 %v5929_v28, %s5429_s14  ;;  %4639 = vmatpush3.bf16.xpose.msra.mxu1 %v1574_v43  ;;  %v6134_v14 = vrot.slane %v1228_v8, %v5904_v49  ;;  %v6137_v21 = vrot.slane %v1244_v9, %v5904_v49  ;;  %v1391_v18 = vrot.slane %v5031_v11, %v5904_v49  ;;  %v4440_v22 = vmul.f32 -1.442695, %v986_v19 }
 0x1d9   : > { %4657 = vmatpush3.bf16.xpose.msra.mxu0 %v1712_v45  ;;  %4640 = vmatprep.mubr.msk.bf16.mxu1 %vm5426_vm2, %v5425_v29  ;;  %v1259_v7 = vcombine.low %v1235_v5, %v1251_v6  ;;  %v981_v20 = vadd.f32 %v4430_v15, %v980_v16  ;;  %v1260_v24 = vcombine.high %v1235_v5, %v1251_v6 }
 0x1da   : > { %4658 = vmatprep.mubr.msk.bf16.mxu0 %vm5426_vm2, %v5425_v29  ;;  %4668 = vmatprep.subr.bf16.mxu0 %v5425_v29  ;;  %5040 = vpow2.f32 %v4440_v22  ;;  %v1275_v31 = vcombine.low %v6134_v14, %v6137_v21  ;;  %v1400_v38 = vcombine.high %v1375_v17, %v1391_v18 }
 0x1db   : > { %4650 = vmatprep.subr.bf16.mxu1 %v5425_v29  ;;  %2102 = vrot.lane.b32.xlu0 %v5958_v41, %s5429_s14  ;;  %v1267_v12 = vrot.slane %v1259_v7, %v5906_v56  ;;  %v4439_v25 = vmul.f32 -1.442695, %v981_v20  ;;  %v1274_v35 = vrot.slane %v1260_v24, %v5906_v56 }
 0x1dc   : > { %2157 = vrot.lane.b32.xlu1 %v5956_v40, %s5429_s14 }
 0x1dd   : > { %v1291_v23 = vcombine.high %v1267_v12, %v5425_v29  ;;  %5042 = vpow2.f32 %v4439_v25 }
 0x1df   : > { %4641 = vmatmul.mubr.msk.bf16.vlgmr.msra.gmra.mrb[8].mxu1 %vm1523_vm3, %v5962_v42  ;;  %2154 = vrot.lane.b32.xlu0 %v5996_v53, %s5429_s14  ;;  %v5000_v34 = vpack.i.bf16 %v1291_v23, %v1267_v12 }
 0x1e0   : > { %2209 = vrot.lane.b32.xlu1 %v5954_v39, %s5429_s14  ;;  %4659 = vmatmul.mubr.msk.bf16.vlgmr.msra.gmra.mrb[12].mxu0 %vm1523_vm3, %v5992_v52 }
 0x1e1   : > { %4651 = vmatpush3.bf16.xpose.msra.mxu1 %v1666_v54  ;;  %4669 = vmatpush3.bf16.xpose.msra.mxu0 %v1804_v55 }
 0x1e2   : > { %4652 = vmatprep.mubr.msk.bf16.mxu1 %vm5426_vm2, %v5425_v29  ;;  %4670 = vmatprep.mubr.msk.bf16.mxu0 %vm5426_vm2, %v5425_v29 }
 0x1e3   : > { %4662 = vmatprep.subr.bf16.mxu1 %v5425_v29  ;;  %2206 = vrot.lane.b32.xlu0 %v5992_v52, %s5429_s14 }
 0x1e4   : > { %2261 = vrot.lane.b32.xlu1 %v5990_v51, %s5429_s14  ;;  %4680 = vmatprep.subr.bf16.mxu0 %v5425_v29  ;;  %v5041_v44 = vpop.eup %5040 }
 0x1e5   : > { %v1012_v47 = vadd.f32 1.0, %v5041_v44 }
 0x1e7   : > { %2258 = vrot.lane.b32.xlu0 %v6030_v62, %s5429_s14  ;;  %v5043_v45 = vpop.eup %5042 }
 0x1e8   : > { %2313 = vrot.lane.b32.xlu1 %v5986_v50, %s5429_s14  ;;  %4671 = vmatmul.mubr.msk.bf16.vlgmr.msra.gmra.mrb[16].mxu0 %vm1523_vm3, %v6026_v61  ;;  %v1011_v48 = vadd.f32 1.0, %v5043_v45 }
 0x1e9   : > { %4653 = vmatmul.mubr.msk.bf16.vlgmr.msra.gmra.mrb[12].mxu1 %vm1523_vm3, %v5996_v53  ;;  %4682 = vmatprep.mubr.msk.bf16.mxu0 %vm5426_vm2, %v5425_v29 }
 0x1ea   : > { %4663 = vmatpush3.bf16.xpose.msra.mxu1 %v1758_v63  ;;  %4664 = vmatprep.mubr.msk.bf16.mxu1 %vm5426_vm2, %v5425_v29 }
 0x1eb   : > { %4674 = vmatprep.subr.bf16.mxu1 %v5425_v29  ;;  %2310 = vrot.lane.b32.xlu0 %v6026_v61, %s5429_s14 }
 0x1ec   : > { %2365 = vrot.lane.b32.xlu1 %v6023_v60, %s5429_s14 }
 0x1ef   : > { %2362 = vrot.lane.b32.xlu0 %v6052_v1, %s5429_s14 }
 0x1f0   : > { %2519 = vrot.lane.b32.xlu1 %v5931_v30, %s5430_s1 }
 0x1f1   : > { %4665 = vmatmul.mubr.msk.bf16.vlgmr.msra.gmra.mrb[16].mxu1 %vm1523_vm3, %v6030_v62 }
 0x1f2   : > { %4675 = vmatpush3.bf16.xpose.msra.mxu1 %v1850_v2  ;;  %4676 = vmatprep.mubr.msk.bf16.mxu1 %vm5426_vm2, %v5425_v29 }
 0x1f3   : > { %4686 = vmatprep.subr.bf16.mxu1 %v5425_v29  ;;  %2517 = vrot.lane.b32.xlu0 %v5927_v27, %s5430_s1 }
 0x1f4   : > { %2569 = vrot.lane.b32.xlu1 %v5945_v37, %s5430_s1 }
 0x1f7   : > { %2567 = vrot.lane.b32.xlu0 %v5962_v42, %s5430_s1 }
 0x1f8   : > { %2619 = vrot.lane.b32.xlu1 %v5929_v28, %s5430_s1 }
 0x1f9   : > { %4677 = vmatmul.mubr.msk.bf16.vlgmr.msra.gmra.mrb[20].mxu1 %vm1523_vm3, %v6052_v1 }
 0x1fa   : > { %4688 = vmatprep.mubr.msk.bf16.mxu1 %vm5426_vm2, %v5425_v29 }
 0x1fb   : > { %2617 = vrot.lane.b32.xlu0 %v5958_v41, %s5430_s1 }
 0x1fc   : > { %2669 = vrot.lane.b32.xlu1 %v5956_v40, %s5430_s1 }
 0x1ff   : > { %2667 = vrot.lane.b32.xlu0 %v5996_v53, %s5430_s1 }
 0x200   : > { %2719 = vrot.lane.b32.xlu1 %v5954_v39, %s5430_s1 }
 0x203   : > { %2717 = vrot.lane.b32.xlu0 %v5992_v52, %s5430_s1 }
 0x204   : > { %2769 = vrot.lane.b32.xlu1 %v5990_v51, %s5430_s1 }
 0x207   : > { %2767 = vrot.lane.b32.xlu0 %v6030_v62, %s5430_s1 }
 0x208   : > { %2819 = vrot.lane.b32.xlu1 %v5986_v50, %s5430_s1 }
 0x20b   : > { %2817 = vrot.lane.b32.xlu0 %v6026_v61, %s5430_s1 }
 0x20c   : > { %2869 = vrot.lane.b32.xlu1 %v6023_v60, %s5430_s1 }
 0x20f   : > { %2867 = vrot.lane.b32.xlu0 %v6052_v1, %s5430_s1 }
 0x210   : > { %3023 = vrot.lane.b32.xlu1 %v5931_v30, %s5431_s9  ;;  %v1399_v30 = vcombine.low %v1375_v17, %v1391_v18 }
 0x213   : > { %3021 = vrot.lane.b32.xlu0 %v5927_v27, %s5431_s9  ;;  %v996_v27 = vadd.f32 %v4631_v26, %v4430_v15 }
 0x214   : > { %3073 = vrot.lane.b32.xlu1 %v5945_v37, %s5431_s9  ;;  %v1407_v37 = vrot.slane %v1399_v30, %v5906_v56 }
 0x215   : > { %v4442_v33 = vmul.f32 -1.442695, %v996_v27 }
 0x217   : > { %3071 = vrot.lane.b32.xlu0 %v5962_v42, %s5431_s9  ;;  %5044 = vpow2.f32 %v4442_v33  ;;  %v1414_v42 = vrot.slane %v1400_v38, %v5906_v56 }
 0x218   : > { %3123 = vrot.lane.b32.xlu1 %v5929_v28, %s5431_s9  ;;  %v990_v28 = vpop.f32.mrb[7].mxu0 }
 0x219   : > { %v991_v32 = vadd.f32 %v4430_v15, %v990_v28 }
 0x21b   : > { %3121 = vrot.lane.b32.xlu0 %v5958_v41, %s5431_s9  ;;  %v4441_v36 = vmul.f32 -1.442695, %v991_v32  ;;  %v1292_v41 = vcombine.high %v1274_v35, %v5425_v29 }
 0x21c   : > { %3173 = vrot.lane.b32.xlu1 %v5956_v40, %s5431_s9  ;;  %v1431_v40 = vcombine.high %v1407_v37, %v5425_v29 }
 0x21d   : > { %5046 = vpow2.f32 %v4441_v36  ;;  %v5005_v46 = vpack.i.bf16 %v1292_v41, %v1274_v35 }
 0x21e   : > { %5048 = vrcp.f32 %v1012_v47 }
 0x21f   : > { %3171 = vrot.lane.b32.xlu0 %v5996_v53, %s5431_s9  ;;  %v1432_v53 = vcombine.high %v1414_v42, %v5425_v29  ;;  %5050 = vrcp.f32 %v1011_v48 }
 0x220   : > { %3223 = vrot.lane.b32.xlu1 %v5954_v39, %s5431_s9  ;;  %v1283_v39 = vrot.slane %v1275_v31, %v5906_v56 }
 0x222   : > { %v1293_v43 = vcombine.high %v1283_v39, %v5425_v29 }
 0x223   : > { %3221 = vrot.lane.b32.xlu0 %v5992_v52, %s5431_s9 }
 0x224   : > { %3273 = vrot.lane.b32.xlu1 %v5990_v51, %s5431_s9  ;;  %v5045_v51 = vpop.eup %5044 }
 0x225   : > { %v1014_v54 = vadd.f32 1.0, %v5045_v51 }
 0x227   : > { %3271 = vrot.lane.b32.xlu0 %v6030_v62, %s5431_s9  ;;  %v5047_v52 = vpop.eup %5046  ;;  %5052 = vrcp.f32 %v1014_v54 }
 0x228   : > { %3323 = vrot.lane.b32.xlu1 %v5986_v50, %s5431_s9  ;;  %v5010_v50 = vpack.i.bf16 %v1293_v43, %v1283_v39  ;;  %v1013_v55 = vadd.f32 1.0, %v5047_v52  ;;  %v5049_v57 = vpop.eup %5048 }
 0x229   : > { %v5051_v59 = vpop.eup %5050 }
 0x22a   : > { %5054 = vrcp.f32 %v1013_v55 }
 0x22b   : > { %3321 = vrot.lane.b32.xlu0 %v6026_v61, %s5431_s9 }
 0x22c   : > { %3373 = vrot.lane.b32.xlu1 %v6023_v60, %s5431_s9 }
 0x22f   : > { %3596 = vrot.lane.b32.xlu0 %v1407_v37, %s5433_s18 }
 0x230   : > { %3371 = vrot.lane.b32.xlu1 %v6052_v1, %s5431_s9  ;;  %s7025_s9 = sld [smem:[#allocation30_spill]] }
 0x231   : > { %v5053_v61 = vpop.eup %5052 }
 0x232   : > { %v1175_v0 = vcombine.low %v5049_v57, %v5053_v61  ;;  %v1176_v11 = vcombine.high %v5049_v57, %v5053_v61 }
 0x233   : > { %3600 = vrot.lane.b32.xlu0 %v1414_v42, %s5433_s18 }
 0x234   : > { %5001 = vrot.lane.b32.xlu1 %v5000_v34, %s5432_s23  ;;  %v5055_v63 = vpop.eup %5054  ;;  %v6172_v4 = vrot.slane %v1175_v0, %v5904_v49  ;;  %v6191_v19 = vrot.slane %v1176_v11, %v5904_v49 }
 0x235   : > { %v1159_v2 = vcombine.low %v5051_v59, %v5055_v63  ;;  %v1160_v10 = vcombine.high %v5051_v59, %v5055_v63 }
 0x237   : > { %5011 = vrot.lane.b32.xlu0 %v5010_v50, %s5432_s23  ;;  %v6176_v6 = vrot.slane %v1159_v2, %v5904_v49  ;;  %v6188_v15 = vrot.slane %v1160_v10, %v5904_v49 }
 0x238   : > { %3598 = vrot.lane.b32.xlu1 %v1431_v40, %s5433_s18 }
 0x239   : > { %v1191_v8 = vcombine.low %v6176_v6, %v6172_v4  ;;  %v1192_v9 = vcombine.high %v6176_v6, %v6172_v4 }
 0x23c   : > { %5006 = vrot.lane.b32.xlu1 %v5005_v46, %s5432_s23 }
 0x240   : > { %3602 = vrot.lane.b32.xlu1 %v1432_v53, %s5433_s18  ;;  %v2002_v60 = vpop.permute.xlu0 %2001 }
 0x241   : > { %v2007_v62 = vsel %vm1523_vm3, %v2002_v60, 0 }
 0x242   : > { %4681 = vmatpush3.bf16.xpose.msra.mxu0 %v2007_v62 }
 0x243   : > { %4692 = vmatprep.subr.bf16.mxu0 %v5425_v29 }
 0x244   : > { %v2054_v3 = vpop.permute.xlu0 %2053 }
 0x245   : > { %v2059_v5 = vsel %vm1523_vm3, %v2054_v3, 0 }
 0x246   : > { %v1999_v58 = vpop.permute.xlu1 %1998  ;;  %4687 = vmatpush3.bf16.xpose.msra.mxu1 %v2059_v5 }
 0x247   : > { %4698 = vmatprep.subr.bf16.mxu1 %v5425_v29 }
 0x248   : > { %v2051_v13 = vpop.permute.xlu0 %2050 }
 0x249   : > { %4683 = vmatmul.mubr.msk.bf16.vlgmr.msra.gmra.mrb[20].mxu0 %vm1523_vm3, %v1999_v58 }
 0x24a   : > { %v2106_v1 = vpop.permute.xlu1 %2105  ;;  %4694 = vmatprep.mubr.msk.bf16.mxu0 %vm5426_vm2, %v5425_v29 }
 0x24b   : > { %v2111_v12 = vsel %vm1523_vm3, %v2106_v1, 0 }
 0x24c   : > { %4693 = vmatpush3.bf16.xpose.msra.mxu0 %v2111_v12 }
 0x24d   : > { %4704 = vmatprep.subr.bf16.mxu0 %v5425_v29  ;;  %v2103_v22 = vpop.permute.xlu0 %2102  ;;  %4689 = vmatmul.mubr.msk.bf16.vlgmr.msra.gmra.mrb[24].mxu1 %vm1523_vm3, %v2051_v13 }
 0x24e   : > { %v2158_v7 = vpop.permute.xlu1 %2157  ;;  %4700 = vmatprep.mubr.msk.bf16.mxu1 %vm5426_vm2, %v5425_v29 }
 0x24f   : > { %v2163_v20 = vsel %vm1523_vm3, %v2158_v7, 0 }
 0x250   : > { %4699 = vmatpush3.bf16.xpose.msra.mxu1 %v2163_v20 }
 0x251   : > { %4710 = vmatprep.subr.bf16.mxu1 %v5425_v29  ;;  %v2155_v25 = vpop.permute.xlu0 %2154 }
 0x252   : > { %v2210_v16 = vpop.permute.xlu1 %2209 }
 0x253   : > { %v2215_v24 = vsel %vm1523_vm3, %v2210_v16, 0  ;;  %4695 = vmatmul.mubr.msk.bf16.vlgmr.msra.gmra.mrb[24].mxu0 %vm1523_vm3, %v2103_v22 }
 0x254   : > { %4705 = vmatpush3.bf16.xpose.msra.mxu0 %v2215_v24  ;;  %4706 = vmatprep.mubr.msk.bf16.mxu0 %vm5426_vm2, %v5425_v29 }
 0x255   : > { %4716 = vmatprep.subr.bf16.mxu0 %v5425_v29  ;;  %v2207_v28 = vpop.permute.xlu0 %2206 }
 0x256   : > { %v2262_v23 = vpop.permute.xlu1 %2261 }
 0x257   : > { %v2267_v27 = vsel %vm1523_vm3, %v2262_v23, 0  ;;  %4701 = vmatmul.mubr.msk.bf16.vlgmr.msra.gmra.mrb[28].mxu1 %vm1523_vm3, %v2155_v25 }
 0x258   : > { %4711 = vmatpush3.bf16.xpose.msra.mxu1 %v2267_v27  ;;  %4712 = vmatprep.mubr.msk.bf16.mxu1 %vm5426_vm2, %v5425_v29 }
 0x259   : > { %4722 = vmatprep.subr.bf16.mxu1 %v5425_v29  ;;  %v2259_v32 = vpop.permute.xlu0 %2258 }
 0x25a   : > { %v2314_v26 = vpop.permute.xlu1 %2313 }
 0x25b   : > { %v2319_v31 = vsel %vm1523_vm3, %v2314_v26, 0  ;;  %4707 = vmatmul.mubr.msk.bf16.vlgmr.msra.gmra.mrb[28].mxu0 %vm1523_vm3, %v2207_v28 }
 0x25c   : > { %4717 = vmatpush3.bf16.xpose.msra.mxu0 %v2319_v31  ;;  %4718 = vmatprep.mubr.msk.bf16.mxu0 %vm5426_vm2, %v5425_v29 }
 0x25d   : > { %4728 = vmatprep.subr.bf16.mxu0 %v5425_v29  ;;  %v2311_v35 = vpop.permute.xlu0 %2310 }
 0x25e   : > { %v2366_v30 = vpop.permute.xlu1 %2365 }
 0x25f   : > { %v2371_v34 = vsel %vm1523_vm3, %v2366_v30, 0  ;;  %4713 = vmatmul.mubr.msk.bf16.vlgmr.msra.gmra.mrb[32].mxu1 %vm1523_vm3, %v2259_v32  ;;  %v1199_v30 = vrot.slane %v1191_v8, %v5906_v56 }
 0x260   : > { %4723 = vmatpush3.bf16.xpose.msra.mxu1 %v2371_v34  ;;  %4724 = vmatprep.mubr.msk.bf16.mxu1 %vm5426_vm2, %v5425_v29 }
 0x261   : > { %4734 = vmatprep.subr.bf16.mxu1 %v5425_v29  ;;  %v2363_v38 = vpop.permute.xlu0 %2362  ;;  %v1223_v34 = vcombine.high %v1199_v30, %v5425_v29 }
 0x262   : > { %v2520_v33 = vpop.permute.xlu1 %2519 }
 0x263   : > { %v2525_v37 = vsel %vm1523_vm3, %v2520_v33, 0  ;;  %4719 = vmatmul.mubr.msk.bf16.vlgmr.msra.gmra.mrb[32].mxu0 %vm1523_vm3, %v2311_v35 }
 0x264   : > { %4729 = vmatpush3.bf16.xpose.msra.mxu0 %v2525_v37  ;;  %4730 = vmatprep.mubr.msk.bf16.mxu0 %vm5426_vm2, %v5425_v29 }
 0x265   : > { %4740 = vmatprep.subr.bf16.mxu0 %v5425_v29  ;;  %v2518_v41 = vpop.permute.xlu0 %2517 }
 0x266   : > { %v2570_v36 = vpop.permute.xlu1 %2569 }
 0x267   : > { %v2575_v40 = vsel %vm1523_vm3, %v2570_v36, 0  ;;  %4725 = vmatmul.mubr.msk.bf16.vlgmr.msra.gmra.mrb[36].mxu1 %vm1523_vm3, %v2363_v38 }
 0x268   : > { %4735 = vmatpush3.bf16.xpose.msra.mxu1 %v2575_v40  ;;  %4736 = vmatprep.mubr.msk.bf16.mxu1 %vm5426_vm2, %v5425_v29  ;;  %v1206_v40 = vrot.slane %v1192_v9, %v5906_v56 }
 0x269   : > { %4746 = vmatprep.subr.bf16.mxu1 %v5425_v29  ;;  %v2568_v44 = vpop.permute.xlu0 %2567 }
 0x26a   : > { %v2620_v39 = vpop.permute.xlu1 %2619 }
 0x26b   : > { %v2625_v43 = vsel %vm1523_vm3, %v2620_v39, 0  ;;  %4731 = vmatmul.mubr.msk.bf16.vlgmr.msra.gmra.mrb[36].mxu0 %vm1523_vm3, %v2518_v41 }
 0x26c   : > { %4741 = vmatpush3.bf16.xpose.msra.mxu0 %v2625_v43  ;;  %4742 = vmatprep.mubr.msk.bf16.mxu0 %vm5426_vm2, %v5425_v29 }
 0x26d   : > { %4752 = vmatprep.subr.bf16.mxu0 %v5425_v29  ;;  %v2618_v47 = vpop.permute.xlu0 %2617 }
 0x26e   : > { %v2670_v42 = vpop.permute.xlu1 %2669 }
 0x26f   : > { %v2675_v46 = vsel %vm1523_vm3, %v2670_v42, 0  ;;  %4737 = vmatmul.mubr.msk.bf16.vlgmr.msra.gmra.mrb[40].mxu1 %vm1523_vm3, %v2568_v44 }
 0x270   : > { %4747 = vmatpush3.bf16.xpose.msra.mxu1 %v2675_v46  ;;  %4748 = vmatprep.mubr.msk.bf16.mxu1 %vm5426_vm2, %v5425_v29  ;;  %v1224_v46 = vcombine.high %v1206_v40, %v5425_v29 }
 0x271   : > { %4758 = vmatprep.subr.bf16.mxu1 %v5425_v29  ;;  %v2668_v51 = vpop.permute.xlu0 %2667 }
 0x272   : > { %v2720_v45 = vpop.permute.xlu1 %2719 }
 0x273   : > { %v2725_v50 = vsel %vm1523_vm3, %v2720_v45, 0  ;;  %4743 = vmatmul.mubr.msk.bf16.vlgmr.msra.gmra.mrb[40].mxu0 %vm1523_vm3, %v2618_v47 }
 0x274   : > { %4753 = vmatpush3.bf16.xpose.msra.mxu0 %v2725_v50  ;;  %4754 = vmatprep.mubr.msk.bf16.mxu0 %vm5426_vm2, %v5425_v29 }
 0x275   : > { %4764 = vmatprep.subr.bf16.mxu0 %v5425_v29  ;;  %v2718_v54 = vpop.permute.xlu0 %2717 }
 0x276   : > { %v2770_v48 = vpop.permute.xlu1 %2769 }
 0x277   : > { %v2775_v53 = vsel %vm1523_vm3, %v2770_v48, 0  ;;  %4749 = vmatmul.mubr.msk.bf16.vlgmr.msra.gmra.mrb[44].mxu1 %vm1523_vm3, %v2668_v51 }
 0x278   : > { %4759 = vmatpush3.bf16.xpose.msra.mxu1 %v2775_v53  ;;  %4760 = vmatprep.mubr.msk.bf16.mxu1 %vm5426_vm2, %v5425_v29 }
 0x279   : > { %4770 = vmatprep.subr.bf16.mxu1 %v5425_v29  ;;  %v2768_v58 = vpop.permute.xlu0 %2767 }
 0x27a   : > { %v2820_v52 = vpop.permute.xlu1 %2819 }
 0x27b   : > { %v2825_v57 = vsel %vm1523_vm3, %v2820_v52, 0  ;;  %4755 = vmatmul.mubr.msk.bf16.vlgmr.msra.gmra.mrb[44].mxu0 %vm1523_vm3, %v2718_v54 }
 0x27c   : > { %4765 = vmatpush3.bf16.xpose.msra.mxu0 %v2825_v57  ;;  %4766 = vmatprep.mubr.msk.bf16.mxu0 %vm5426_vm2, %v5425_v29 }
 0x27d   : > { %4776 = vmatprep.subr.bf16.mxu0 %v5425_v29  ;;  %v2818_v61 = vpop.permute.xlu0 %2817 }
 0x27e   : > { %v2870_v55 = vpop.permute.xlu1 %2869 }
 0x27f   : > { %v2875_v60 = vsel %vm1523_vm3, %v2870_v55, 0  ;;  %4761 = vmatmul.mubr.msk.bf16.vlgmr.msra.gmra.mrb[48].mxu1 %vm1523_vm3, %v2768_v58 }
 0x280   : > { %4771 = vmatpush3.bf16.xpose.msra.mxu1 %v2875_v60  ;;  %4772 = vmatprep.mubr.msk.bf16.mxu1 %vm5426_vm2, %v5425_v29 }
 0x281   : > { %4782 = vmatprep.subr.bf16.mxu1 %v5425_v29  ;;  %v2868_v0 = vpop.permute.xlu0 %2867 }
 0x282   : > { %v3024_v59 = vpop.permute.xlu1 %3023 }
 0x283   : > { %v3029_v63 = vsel %vm1523_vm3, %v3024_v59, 0  ;;  %4767 = vmatmul.mubr.msk.bf16.vlgmr.msra.gmra.mrb[48].mxu0 %vm1523_vm3, %v2818_v61 }
 0x284   : > { %4777 = vmatpush3.bf16.xpose.msra.mxu0 %v3029_v63  ;;  %4778 = vmatprep.mubr.msk.bf16.mxu0 %vm5426_vm2, %v5425_v29 }
 0x285   : > { %4788 = vmatprep.subr.bf16.mxu0 %v5425_v29  ;;  %v3022_v3 = vpop.permute.xlu0 %3021 }
 0x286   : > { %v3074_v62 = vpop.permute.xlu1 %3073 }
 0x287   : > { %v3079_v2 = vsel %vm1523_vm3, %v3074_v62, 0  ;;  %4773 = vmatmul.mubr.msk.bf16.vlgmr.msra.gmra.mrb[52].mxu1 %vm1523_vm3, %v2868_v0 }
 0x288   : > { %4783 = vmatpush3.bf16.xpose.msra.mxu1 %v3079_v2  ;;  %4784 = vmatprep.mubr.msk.bf16.mxu1 %vm5426_vm2, %v5425_v29 }
 0x289   : > { %4794 = vmatprep.subr.bf16.mxu1 %v5425_v29  ;;  %v3072_v10 = vpop.permute.xlu0 %3071 }
 0x28a   : > { %v3124_v1 = vpop.permute.xlu1 %3123 }
 0x28b   : > { %v3129_v7 = vsel %vm1523_vm3, %v3124_v1, 0  ;;  %4779 = vmatmul.mubr.msk.bf16.vlgmr.msra.gmra.mrb[52].mxu0 %vm1523_vm3, %v3022_v3 }
 0x28c   : > { %4789 = vmatpush3.bf16.xpose.msra.mxu0 %v3129_v7  ;;  %4790 = vmatprep.mubr.msk.bf16.mxu0 %vm5426_vm2, %v5425_v29 }
 0x28d   : > { %4800 = vmatprep.subr.bf16.mxu0 %v5425_v29  ;;  %v3122_v13 = vpop.permute.xlu0 %3121 }
 0x28e   : > { %v3174_v5 = vpop.permute.xlu1 %3173 }
 0x28f   : > { %v3179_v12 = vsel %vm1523_vm3, %v3174_v5, 0  ;;  %4785 = vmatmul.mubr.msk.bf16.vlgmr.msra.gmra.mrb[56].mxu1 %vm1523_vm3, %v3072_v10 }
 0x290   : > { %4795 = vmatpush3.bf16.xpose.msra.mxu1 %v3179_v12  ;;  %4796 = vmatprep.mubr.msk.bf16.mxu1 %vm5426_vm2, %v5425_v29 }
 0x291   : > { %4806 = vmatprep.subr.bf16.mxu1 %v5425_v29  ;;  %v3172_v22 = vpop.permute.xlu0 %3171 }
 0x292   : > { %v3224_v11 = vpop.permute.xlu1 %3223 }
 0x293   : > { %v3229_v20 = vsel %vm1523_vm3, %v3224_v11, 0  ;;  %4791 = vmatmul.mubr.msk.bf16.vlgmr.msra.gmra.mrb[56].mxu0 %vm1523_vm3, %v3122_v13 }
 0x294   : > { %4801 = vmatpush3.bf16.xpose.msra.mxu0 %v3229_v20  ;;  %4802 = vmatprep.mubr.msk.bf16.mxu0 %vm5426_vm2, %v5425_v29 }
 0x295   : > { %4812 = vmatprep.subr.bf16.mxu0 %v5425_v29  ;;  %v3222_v25 = vpop.permute.xlu0 %3221 }
 0x296   : > { %v3274_v16 = vpop.permute.xlu1 %3273 }
 0x297   : > { %v3279_v24 = vsel %vm1523_vm3, %v3274_v16, 0  ;;  %4797 = vmatmul.mubr.msk.bf16.vlgmr.msra.gmra.mrb[60].mxu1 %vm1523_vm3, %v3172_v22 }
 0x298   : > { %4807 = vmatpush3.bf16.xpose.msra.mxu1 %v3279_v24  ;;  %4808 = vmatprep.mubr.msk.bf16.mxu1 %vm5426_vm2, %v5425_v29 }
 0x299   : > { %4818 = vmatprep.subr.bf16.mxu1 %v5425_v29  ;;  %v3272_v28 = vpop.permute.xlu0 %3271 }
 0x29a   : > { %v3324_v23 = vpop.permute.xlu1 %3323 }
 0x29b   : > { %v3329_v27 = vsel %vm1523_vm3, %v3324_v23, 0  ;;  %4803 = vmatmul.mubr.msk.bf16.vlgmr.msra.gmra.mrb[60].mxu0 %vm1523_vm3, %v3222_v25 }
 0x29c   : > { %4813 = vmatpush3.bf16.xpose.msra.mxu0 %v3329_v27  ;;  %4814 = vmatprep.mubr.msk.bf16.mxu0 %vm5426_vm2, %v5425_v29 }
 0x29d   : > { %4824 = vmatprep.subr.bf16.mxu0 %v5425_v29  ;;  %v3322_v33 = vpop.permute.xlu0 %3321 }
 0x29e   : > { %v3374_v26 = vpop.permute.xlu1 %3373 }
 0x29f   : > { %v3379_v32 = vsel %vm1523_vm3, %v3374_v26, 0  ;;  %4809 = vmatmul.mubr.msk.bf16.vlgmr.msra.gmra.mrb[64].mxu1 %vm1523_vm3, %v3272_v28 }
 0x2a0   : > { %4819 = vmatpush3.bf16.xpose.msra.mxu1 %v3379_v32  ;;  %4820 = vmatprep.mubr.msk.bf16.mxu1 %vm5426_vm2, %v5425_v29 }
 0x2a1   : > { %4830 = vmatprep.subr.bf16.mxu1 %v5425_v29  ;;  %v3597_v38 = vpop.permute.xlu0 %3596 }
 0x2a2   : > { %v3372_v31 = vpop.permute.xlu1 %3371 }
 0x2a3   : > { %4815 = vmatmul.mubr.msk.bf16.vlgmr.msra.gmra.mrb[64].mxu0 %vm1523_vm3, %v3322_v33 }
 0x2a4   : > { %4826 = vmatprep.mubr.msk.bf16.mxu0 %vm5426_vm2, %v5425_v29 }
 0x2a5   : > { %v3601_v9 = vpop.permute.xlu0 %3600 }
 0x2a6   : > { %v5002_v35 = vpop.permute.xlu1 %5001 }
 0x2a7   : > { %v5004_v36 = vunpack.i.h.bf16 %v5002_v35  ;;  %v5003_v37 = vunpack.i.l.bf16 %v5002_v35  ;;  %4821 = vmatmul.mubr.msk.bf16.vlgmr.msra.gmra.mrb[68].mxu1 %vm1523_vm3, %v3372_v31 }
 0x2a8   : > { %4832 = vmatprep.mubr.msk.bf16.mxu1 %vm5426_vm2, %v5425_v29 }
 0x2a9   : > { %v3620_v8 = vsel %vm645_vm0, %v1199_v30, %v5003_v37  ;;  %v3621_v39 = vsel %vm645_vm0, %v1223_v34, %v5004_v36 }
 0x2aa   : > { %v3629_v41 = vsel %vm3628_vm4, %v3620_v8, %v3597_v38  ;;  %v3599_v42 = vpop.permute.xlu1 %3598  ;;  %v1564_v51 = vpop.f32.mrb[4].mxu1 }
 0x2ab   : > { %v3645_v43 = vpack.c.bf16 %v3629_v41, %v3629_v41  ;;  %v3630_v44 = vsel %vm3628_vm4, %v3621_v39, %v3599_v42  ;;  %v1656_v52 = vpop.f32.mrb[8].mxu0  ;;  %v6327_v53 = vmul.f32 0.35355338, %v1564_v51  ;;  %v4636_v55 = vpop.f32.mrb[5].mxu1 }
 0x2ac   : > { %v3646_v45 = vpack.c.bf16 %v3630_v44, %v3630_v44  ;;  %v6329_v54 = vmul.f32 0.35355338, %v1656_v52  ;;  %v4648_v57 = vpop.f32.mrb[9].mxu0  ;;  %v1567_v60 = vpop.f32.mrb[6].mxu1 }
 0x2ad   : > { %v3659_v47 = vsel %vm3657_vm5, %v3645_v43, 0  ;;  %v1659_v61 = vpop.f32.mrb[10].mxu0  ;;  %v4637_v63 = vpop.f32.mrb[7].mxu1  ;;  %v1901_v2 = vsel %vm1900_vm6, %v6327_v53, -inf }
 0x2ae   : > { %v5007_v4 = vpop.permute.xlu1 %5006  ;;  %4825 = vmatpush3.bf16.msra.mxu0 %v3659_v47  ;;  %v3705_v6 = vsel %vm3657_vm5, %v3646_v45, 0  ;;  %v4649_v0 = vpop.f32.mrb[11].mxu0  ;;  %v1907_v1 = vsel %vm1900_vm6, %v6329_v54, -inf  ;;  %1902 = vmax.xlane.f32.xlu0 %v1901_v2 }
 0x2af   : > { %v5009_v48 = vunpack.i.h.bf16 %v5007_v4  ;;  %v5008_v50 = vunpack.i.l.bf16 %v5007_v4  ;;  %4831 = vmatpush3.bf16.msra.mxu1 %v3705_v6  ;;  %4836 = vmatprep.subr.bf16.mxu0 %v5425_v29 }
 0x2b0   : > { %4842 = vmatprep.subr.bf16.mxu1 %v5425_v29  ;;  %1908 = vmax.xlane.f32.xlu1 %v1907_v1 }
 0x2b1   : > { %v3622_v58 = vsel %vm645_vm0, %v1206_v40, %v5008_v50  ;;  %v6333_v59 = vsel %vm645_vm0, %v1224_v46, %v5009_v48 }
 0x2b2   : > { %v6336_v62 = vsel %vm3628_vm4, %v3622_v58, %v3601_v9  ;;  %v1610_v3 = vpop.f32.mrb[8].mxu1 }
 0x2b3   : > { %v6342_v5 = vmul.f32 0.35355338, %v1610_v3  ;;  %v1748_v7 = vpop.f32.mrb[12].mxu0  ;;  %v4642_v10 = vpop.f32.mrb[9].mxu1 }
 0x2b4   : > { %v6344_v11 = vmul.f32 0.35355338, %v1748_v7  ;;  %v4660_v12 = vpop.f32.mrb[13].mxu0  ;;  %v1613_v13 = vpop.f32.mrb[10].mxu1 }
 0x2b5   : > { %v1751_v16 = vpop.f32.mrb[14].mxu0  ;;  %v4643_v20 = vpop.f32.mrb[11].mxu1  ;;  %v1904_v22 = vsel %vm1900_vm6, %v6342_v5, -inf }
 0x2b6   : > { %v4661_v23 = vpop.f32.mrb[15].mxu0  ;;  %v1913_v24 = vsel %vm1900_vm6, %v6344_v11, -inf  ;;  %1905 = vmax.xlane.f32.xlu0 %v1904_v22 }
 0x2b7   : > { %1914 = vmax.xlane.f32.xlu1 %v1913_v24 }
 0x2bb   : > { %v1840_v25 = vpop.f32.mrb[16].mxu0 }
 0x2bc   : > { %v1702_v26 = vpop.f32.mrb[12].mxu1  ;;  %v4672_v27 = vpop.f32.mrb[17].mxu0  ;;  %v6352_v34 = vmul.f32 0.35355338, %v1840_v25 }
 0x2bd   : > { %v6350_v28 = vmul.f32 0.35355338, %v1702_v26  ;;  %v4654_v30 = vpop.f32.mrb[13].mxu1  ;;  %v1843_v31 = vpop.f32.mrb[18].mxu0 }
 0x2be   : > { %v1705_v32 = vpop.f32.mrb[14].mxu1  ;;  %v4673_v33 = vpop.f32.mrb[19].mxu0  ;;  %v1919_v37 = vsel %vm1900_vm6, %v6352_v34, -inf }
 0x2bf   : > { %v4655_v35 = vpop.f32.mrb[15].mxu1  ;;  %v1910_v36 = vsel %vm1900_vm6, %v6350_v28, -inf }
 0x2c0   : > { %1911 = vmax.xlane.f32.xlu1 %v1910_v36 }
 0x2c4   : > { %1920 = vmax.xlane.f32.xlu1 %v1919_v37  ;;  %v1794_v8 = vpop.f32.mrb[16].mxu1 }
 0x2c5   : > { %v6358_v38 = vmul.f32 0.35355338, %v1794_v8  ;;  %v4666_v39 = vpop.f32.mrb[17].mxu1 }
 0x2c6   : > { %v1797_v40 = vpop.f32.mrb[18].mxu1 }
 0x2c7   : > { %v4667_v41 = vpop.f32.mrb[19].mxu1  ;;  %v1916_v42 = vsel %vm1900_vm6, %v6358_v38, -inf  ;;  %v6390_v40 = vpop.permute.xlu0 %5011 }
 0x2c8   : > { %1917 = vmax.xlane.f32.xlu1 %v1916_v42 }
 0x2cc   : > { %v1886_v43 = vpop.f32.mrb[20].mxu1 }
 0x2cd   : > { %v6362_v44 = vmul.f32 0.35355338, %v1886_v43  ;;  %v4678_v45 = vpop.f32.mrb[21].mxu1  ;;  %v6394_v43 = vpop.permute.xlu1 %3602 }
 0x2ce   : > { %v1889_v46 = vpop.f32.mrb[22].mxu1 }
 0x2cf   : > { %v4679_v47 = vpop.f32.mrb[23].mxu1  ;;  %v1922_v4 = vsel %vm1900_vm6, %v6362_v44, -inf }
 0x2d0   : > { %1923 = vmax.xlane.f32.xlu1 %v1922_v4 }
 0x31c   : > { %v2043_v6 = vpop.f32.mrb[20].mxu0 }
 0x31d   : > { %v6366_v9 = vmul.f32 0.35355338, %v2043_v6  ;;  %v4684_v48 = vpop.f32.mrb[21].mxu0 }
 0x31e   : > { %v2046_v50 = vpop.f32.mrb[22].mxu0 }
 0x31f   : > { %v4685_v51 = vpop.f32.mrb[23].mxu0  ;;  %v2421_v52 = vsel %vm1900_vm6, %v6366_v9, -inf }
 0x320   : > { %2422 = vmax.xlane.f32.xlu1 %v2421_v52  ;;  %v2095_v55 = vpop.f32.mrb[24].mxu1 }
 0x321   : > { %v6370_v57 = vmul.f32 0.35355338, %v2095_v55  ;;  %v4690_v58 = vpop.f32.mrb[25].mxu1 }
 0x322   : > { %v2098_v60 = vpop.f32.mrb[26].mxu1 }
 0x323   : > { %v4691_v61 = vpop.f32.mrb[27].mxu1  ;;  %v2424_v63 = vsel %vm1900_vm6, %v6370_v57, -inf }
 0x324   : > { %2425 = vmax.xlane.f32.xlu0 %v2424_v63 }
 0x326   : > { %v2147_v0 = vpop.f32.mrb[24].mxu0 }
 0x327   : > { %v6374_v1 = vmul.f32 0.35355338, %v2147_v0  ;;  %v4696_v2 = vpop.f32.mrb[25].mxu0 }
 0x328   : > { %v2150_v3 = vpop.f32.mrb[26].mxu0 }
 0x329   : > { %v4697_v7 = vpop.f32.mrb[27].mxu0  ;;  %v2427_v10 = vsel %vm1900_vm6, %v6374_v1, -inf }
 0x32a   : > { %2428 = vmax.xlane.f32.xlu0 %v2427_v10  ;;  %v2199_v12 = vpop.f32.mrb[28].mxu1 }
 0x32b   : > { %v6378_v13 = vmul.f32 0.35355338, %v2199_v12  ;;  %v4702_v16 = vpop.f32.mrb[29].mxu1 }
 0x32c   : > { %v2202_v20 = vpop.f32.mrb[30].mxu1 }
 0x32d   : > { %v4703_v22 = vpop.f32.mrb[31].mxu1  ;;  %v2430_v23 = vsel %vm1900_vm6, %v6378_v13, -inf }
 0x32e   : > { %v2251_v24 = vpop.f32.mrb[28].mxu0  ;;  %2431 = vmax.xlane.f32.xlu0 %v2430_v23 }
 0x32f   : > { %v6382_v25 = vmul.f32 0.35355338, %v2251_v24  ;;  %v4708_v26 = vpop.f32.mrb[29].mxu0 }
 0x330   : > { %v2254_v27 = vpop.f32.mrb[30].mxu0 }
 0x331   : > { %v4709_v30 = vpop.f32.mrb[31].mxu0  ;;  %v2433_v31 = vsel %vm1900_vm6, %v6382_v25, -inf }
 0x332   : > { %2434 = vmax.xlane.f32.xlu0 %v2433_v31  ;;  %v2303_v32 = vpop.f32.mrb[32].mxu1 }
 0x333   : > { %v6386_v33 = vmul.f32 0.35355338, %v2303_v32  ;;  %v4714_v35 = vpop.f32.mrb[33].mxu1 }
 0x334   : > { %v2306_v36 = vpop.f32.mrb[34].mxu1 }
 0x335   : > { %v4715_v37 = vpop.f32.mrb[35].mxu1  ;;  %v2436_v8 = vsel %vm1900_vm6, %v6386_v33, -inf }
 0x336   : > { %v2355_v39 = vpop.f32.mrb[32].mxu0  ;;  %2437 = vmax.xlane.f32.xlu0 %v2436_v8 }
 0x337   : > { %v6392_v41 = vmul.f32 0.35355338, %v2355_v39  ;;  %v4720_v42 = vpop.f32.mrb[33].mxu0 }
 0x338   : > { %v2358_v45 = vpop.f32.mrb[34].mxu0 }
 0x339   : > { %v4721_v46 = vpop.f32.mrb[35].mxu0  ;;  %v2439_v47 = vsel %vm1900_vm6, %v6392_v41, -inf }
 0x33a   : > { %2440 = vmax.xlane.f32.xlu0 %v2439_v47  ;;  %v2407_v4 = vpop.f32.mrb[36].mxu1 }
 0x33b   : > { %v6398_v6 = vmul.f32 0.35355338, %v2407_v4  ;;  %v4726_v48 = vpop.f32.mrb[37].mxu1  ;;  %v1903_v51 = vpop.xlane.xlu0 %1902 }
 0x33c   : > { %v1925_v55 = vsub.f32 %v6327_v53, %v1903_v51  ;;  %v2410_v58 = vpop.f32.mrb[38].mxu1 }
 0x33d   : > { %v1909_v50 = vpop.xlane.xlu1 %1908  ;;  %v2442_v60 = vsel %vm1900_vm6, %v6398_v6, -inf  ;;  %v4727_v61 = vpop.f32.mrb[39].mxu1 }
 0x33e   : > { %v1927_v52 = vsub.f32 %v6329_v54, %v1909_v50  ;;  %v2561_v63 = vpop.f32.mrb[36].mxu0  ;;  %2443 = vmax.xlane.f32.xlu0 %v2442_v60  ;;  %v1933_v0 = vmul.f32 1.442695, %v1925_v55 }
 0x33f   : > { %v6404_v2 = vmul.f32 0.35355338, %v2561_v63  ;;  %v4732_v7 = vpop.f32.mrb[37].mxu0 }
 0x340   : > { %v1937_v3 = vmul.f32 1.442695, %v1927_v52  ;;  %v2564_v10 = vpop.f32.mrb[38].mxu0  ;;  %5056 = vpow2.f32 %v1933_v0 }
 0x341   : > { %v2925_v12 = vsel %vm1900_vm6, %v6404_v2, -inf  ;;  %v4733_v54 = vpop.f32.mrb[39].mxu0 }
 0x342   : > { %2926 = vmax.xlane.f32.xlu1 %v2925_v12  ;;  %v2611_v53 = vpop.f32.mrb[40].mxu1  ;;  %5058 = vpow2.f32 %v1937_v3 }
 0x343   : > { %v6408_v16 = vmul.f32 0.35355338, %v2611_v53  ;;  %v4738_v20 = vpop.f32.mrb[41].mxu1  ;;  %v1906_v22 = vpop.xlane.xlu0 %1905 }
 0x344   : > { %v2614_v23 = vpop.f32.mrb[42].mxu1  ;;  %v1915_v24 = vpop.xlane.xlu1 %1914  ;;  %v1926_v26 = vsub.f32 %v6342_v5, %v1906_v22 }
 0x345   : > { %v4739_v27 = vpop.f32.mrb[43].mxu1  ;;  %v2928_v30 = vsel %vm1900_vm6, %v6408_v16, -inf  ;;  %v1929_v36 = vsub.f32 %v6344_v11, %v1915_v24 }
 0x346   : > { %v2661_v31 = vpop.f32.mrb[40].mxu0  ;;  %2929 = vmax.xlane.f32.xlu0 %v2928_v30  ;;  %v1935_v37 = vmul.f32 1.442695, %v1926_v26 }
 0x347   : > { %v6413_v32 = vmul.f32 0.35355338, %v2661_v31  ;;  %v4744_v35 = vpop.f32.mrb[41].mxu0  ;;  %v1941_v4 = vmul.f32 1.442695, %v1929_v36 }
 0x348   : > { %v2664_v8 = vpop.f32.mrb[42].mxu0  ;;  %5060 = vpow2.f32 %v1935_v37 }
 0x349   : > { %v4745_v39 = vpop.f32.mrb[43].mxu0  ;;  %v2931_v42 = vsel %vm1900_vm6, %v6413_v32, -inf  ;;  %5062 = vpow2.f32 %v1941_v4 }
 0x34a   : > { %2932 = vmax.xlane.f32.xlu1 %v2931_v42  ;;  %v2711_v45 = vpop.f32.mrb[44].mxu1  ;;  %v6420_v47 = vpop.eup %5056 }
 0x34b   : > { %v6418_v5 = vmul.f32 0.35355338, %v2711_v45  ;;  %v4750_v46 = vpop.f32.mrb[45].mxu1  ;;  %v1949_v11 = vsel %vm1900_vm6, %v6420_v47, 0.0 }
 0x34c   : > { %v2714_v48 = vpop.f32.mrb[46].mxu1  ;;  %v6426_v52 = vpop.eup %5058 }
 0x34d   : > { %v4751_v50 = vpop.f32.mrb[47].mxu1  ;;  %v2934_v51 = vsel %vm1900_vm6, %v6418_v5, -inf  ;;  %v1912_v55 = vpop.xlane.xlu1 %1911  ;;  %v1955_v7 = vsel %vm1900_vm6, %v6426_v52, 0.0 }
 0x34e   : > { %v2761_v58 = vpop.f32.mrb[44].mxu0  ;;  %1950 = vadd.xlane.f32.xlu1 %v1949_v11  ;;  %2935 = vmax.xlane.f32.xlu0 %v2934_v51  ;;  %v1928_v61 = vsub.f32 %v6350_v28, %v1912_v55 }
 0x34f   : > { %v4756_v60 = vpop.f32.mrb[45].mxu0  ;;  %v6429_v0 = vmul.f32 0.35355338, %v2761_v58 }
 0x350   : > { %v2764_v63 = vpop.f32.mrb[46].mxu0  ;;  %v1939_v20 = vmul.f32 1.442695, %v1928_v61 }
 0x351   : > { %v4757_v3 = vpop.f32.mrb[47].mxu0  ;;  %v1921_v10 = vpop.xlane.xlu1 %1920  ;;  %v2937_v28 = vsel %vm1900_vm6, %v6429_v0, -inf }
 0x352   : > { %1956 = vadd.xlane.f32.xlu1 %v1955_v7  ;;  %v2811_v12 = vpop.f32.mrb[48].mxu1  ;;  %v1931_v22 = vsub.f32 %v6352_v34, %v1921_v10  ;;  %v6440_v27 = vpop.eup %5060  ;;  %5064 = vpow2.f32 %v1939_v20 }
 0x353   : > { %v6433_v54 = vmul.f32 0.35355338, %v2811_v12  ;;  %v4762_v53 = vpop.f32.mrb[49].mxu1  ;;  %v1952_v34 = vsel %vm1900_vm6, %v6440_v27, 0.0  ;;  %v6444_v39 = vpop.eup %5062 }
 0x354   : > { %v2814_v23 = vpop.f32.mrb[50].mxu1  ;;  %v1945_v35 = vmul.f32 1.442695, %v1931_v22  ;;  %v1961_v51 = vsel %vm1900_vm6, %v6444_v39, 0.0 }
 0x355   : > { %v4763_v24 = vpop.f32.mrb[51].mxu1  ;;  %v2940_v26 = vsel %vm1900_vm6, %v6433_v54, -inf  ;;  %v1918_v37 = vpop.xlane.xlu1 %1917 }
 0x356   : > { %v2861_v30 = vpop.f32.mrb[48].mxu0  ;;  %2938 = vmax.xlane.f32.xlu1 %v2937_v28  ;;  %2941 = vmax.xlane.f32.xlu0 %v2940_v26  ;;  %5066 = vpow2.f32 %v1945_v35  ;;  %v1930_v4 = vsub.f32 %v6358_v38, %v1918_v37 }
 0x357   : > { %v4768_v31 = vpop.f32.mrb[49].mxu0  ;;  %v6449_v50 = vmul.f32 0.35355338, %v2861_v30 }
 0x358   : > { %v2864_v36 = vpop.f32.mrb[50].mxu0  ;;  %v1943_v61 = vmul.f32 1.442695, %v1930_v4 }
 0x359   : > { %v4769_v8 = vpop.f32.mrb[51].mxu0  ;;  %v2943_v38 = vsel %vm1900_vm6, %v6449_v50, -inf }
 0x35a   : > { %1953 = vadd.xlane.f32.xlu1 %v1952_v34  ;;  %v2911_v42 = vpop.f32.mrb[52].mxu1  ;;  %5068 = vpow2.f32 %v1943_v61 }
 0x35b   : > { %v6446_v45 = vmul.f32 0.35355338, %v2911_v42  ;;  %v4774_v46 = vpop.f32.mrb[53].mxu1 }
 0x35c   : > { %v2914_v48 = vpop.f32.mrb[54].mxu1  ;;  %v6457_v10 = vpop.eup %5064 }
 0x35d   : > { %v4775_v11 = vpop.f32.mrb[55].mxu1  ;;  %v2946_v55 = vsel %vm1900_vm6, %v6446_v45, -inf  ;;  %v1924_v3 = vpop.xlane.xlu1 %1923  ;;  %v1958_v28 = vsel %vm1900_vm6, %v6457_v10, 0.0 }
 0x35e   : > { %v3065_v58 = vpop.f32.mrb[52].mxu0  ;;  %1962 = vadd.xlane.f32.xlu1 %v1961_v51  ;;  %2947 = vmax.xlane.f32.xlu0 %v2946_v55  ;;  %v1932_v22 = vsub.f32 %v6362_v44, %v1924_v3 }
 0x35f   : > { %v4780_v60 = vpop.f32.mrb[53].mxu0  ;;  %v6468_v8 = vmul.f32 0.35355338, %v3065_v58 }
 0x360   : > { %v3068_v63 = vpop.f32.mrb[54].mxu0  ;;  %v6466_v30 = vpop.eup %5066  ;;  %v1947_v36 = vmul.f32 1.442695, %v1932_v22 }
 0x361   : > { %v4781_v7 = vpop.f32.mrb[55].mxu0  ;;  %v1967_v44 = vsel %vm1900_vm6, %v6466_v30, 0.0  ;;  %v3429_v51 = vsel %vm1900_vm6, %v6468_v8, -inf }
 0x362   : > { %2944 = vmax.xlane.f32.xlu1 %v2943_v38  ;;  %v3115_v12 = vpop.f32.mrb[56].mxu1  ;;  %5070 = vpow2.f32 %v1947_v36 }
 0x363   : > { %v6459_v53 = vmul.f32 0.35355338, %v3115_v12  ;;  %v4786_v20 = vpop.f32.mrb[57].mxu1 }
 0x364   : > { %v3118_v23 = vpop.f32.mrb[58].mxu1  ;;  %v6478_v58 = vpop.eup %5068 }
 0x365   : > { %v4787_v24 = vpop.f32.mrb[59].mxu1  ;;  %v3432_v26 = vsel %vm1900_vm6, %v6459_v53, -inf  ;;  %v1964_v38 = vsel %vm1900_vm6, %v6478_v58, 0.0 }
 0x366   : > { %v3165_v31 = vpop.f32.mrb[56].mxu0  ;;  %1959 = vadd.xlane.f32.xlu1 %v1958_v28  ;;  %3433 = vmax.xlane.f32.xlu0 %v3432_v26 }
 0x367   : > { %v4792_v35 = vpop.f32.mrb[57].mxu0  ;;  %v6480_v3 = vmul.f32 0.35355338, %v3165_v31 }
 0x368   : > { %v3168_v37 = vpop.f32.mrb[58].mxu0 }
 0x369   : > { %v4793_v34 = vpop.f32.mrb[59].mxu0  ;;  %v3435_v28 = vsel %vm1900_vm6, %v6480_v3, -inf }
 0x36a   : > { %1968 = vadd.xlane.f32.xlu1 %v1967_v44  ;;  %v3215_v42 = vpop.f32.mrb[60].mxu1 }
 0x36b   : > { %v6472_v46 = vmul.f32 0.35355338, %v3215_v42  ;;  %v4798_v4 = vpop.f32.mrb[61].mxu1 }
 0x36c   : > { %v3218_v48 = vpop.f32.mrb[62].mxu1  ;;  %v6490_v35 = vpop.eup %5070 }
 0x36d   : > { %v4799_v11 = vpop.f32.mrb[63].mxu1  ;;  %v3438_v55 = vsel %vm1900_vm6, %v6472_v46, -inf  ;;  %v1970_v42 = vsel %vm1900_vm6, %v6490_v35, 0.0 }
 0x36e   : > { %v3265_v60 = vpop.f32.mrb[60].mxu0  ;;  %3430 = vmax.xlane.f32.xlu1 %v3429_v51  ;;  %3439 = vmax.xlane.f32.xlu0 %v3438_v55 }
 0x36f   : > { %v4804_v61 = vpop.f32.mrb[61].mxu0  ;;  %v6492_v34 = vmul.f32 0.35355338, %v3265_v60 }
 0x370   : > { %v3268_v63 = vpop.f32.mrb[62].mxu0 }
 0x371   : > { %v4805_v7 = vpop.f32.mrb[63].mxu0  ;;  %v3441_v63 = vsel %vm1900_vm6, %v6492_v34, -inf }
 0x372   : > { %1965 = vadd.xlane.f32.xlu1 %v1964_v38  ;;  %v3315_v12 = vpop.f32.mrb[64].mxu1  ;;  %v5030_v38 = vld [vmem:[%s5798_s19 + $0x4] ss:$16 sps:$4 sm:$0xff]  }
 0x373   : > { %v6484_v20 = vmul.f32 0.35355338, %v3315_v12  ;;  %v4810_v22 = vpop.f32.mrb[65].mxu1  ;;  %v5033_v12 = vld [vmem:[%s5798_s19 + $0xc] ss:$16 sps:$4 sm:$0xff]   ;;  %s4408_s19 = sshll.u32 %s5524_s29, 3 }
 0x374   : > { %v3318_v23 = vpop.f32.mrb[66].mxu1  ;;  %v6509_v22 = vrot.slane %v5030_v38, %v5904_v49  ;;  %p612_p6 = scmp.lt.s32.totalorder %s4408_s19, 15  ;;  %s7034_s29 = smov (!%p617_p7, %s5524_s29), 1 }
 0x375   : > { %v4811_v24 = vpop.f32.mrb[67].mxu1  ;;  %v3444_v26 = vsel %vm1900_vm6, %v6484_v20, -inf  ;;  %v6512_v23 = vrot.slane %v5033_v12, %v5904_v49 }
 0x376   : > { %v3365_v31 = vpop.f32.mrb[64].mxu0  ;;  %3436 = vmax.xlane.f32.xlu1 %v3435_v28  ;;  %3445 = vmax.xlane.f32.xlu0 %v3444_v26  ;;  %s7032_s19 = smov (!%p612_p6, %s4408_s19), 15 }
 0x377   : > { %v4816_v36 = vpop.f32.mrb[65].mxu0  ;;  %v6498_v55 = vmul.f32 0.35355338, %v3365_v31  ;;  %v1415_v24 = vcombine.low %v6509_v22, %v6512_v23  ;;  %s4409_s5 = sshll.u32 %s7032_s19, 2 }
 0x378   : > { %v3368_v37 = vpop.f32.mrb[66].mxu0  ;;  %s6724_s20 = scalar_lea.vmem %s7020_s22, %s4409_s5 }
 0x379   : > { %v4817_v44 = vpop.f32.mrb[67].mxu0  ;;  %v3447_v7 = vsel %vm1900_vm6, %v6498_v55, -inf  ;;  %v6517_v28 = vrot.slane %v1415_v24, %v5906_v56 }
 0x37a   : > { %1971 = vadd.xlane.f32.xlu1 %v1970_v42  ;;  %v3415_v4 = vpop.f32.mrb[68].mxu1 }
 0x37b   : > { %v6496_v48 = vmul.f32 0.35355338, %v3415_v4  ;;  %v4822_v11 = vpop.f32.mrb[69].mxu1 }
 0x37c   : > { %v3418_v51 = vpop.f32.mrb[70].mxu1 }
 0x37d   : > { %v4823_v61 = vpop.f32.mrb[71].mxu1  ;;  %v3450_v60 = vsel %vm1900_vm6, %v6496_v48, -inf }
 0x37e   : > { %3442 = vmax.xlane.f32.xlu1 %v3441_v63  ;;  %3451 = vmax.xlane.f32.xlu0 %v3450_v60 }
 0x382   : > { %3448 = vmax.xlane.f32.xlu1 %v3447_v7 }
 0x393   : > { %3604 = vrot.lane.b32.xlu1 %v6517_v28, %s5433_s18 }
 0x3ad   : > { %v2423_v26 = vpop.xlane.xlu1 %2422 }
 0x3ae   : > { %v2445_v31 = vsub.f32 %v6366_v9, %v2423_v26 }
 0x3b0   : > { %v2453_v36 = vmul.f32 1.442695, %v2445_v31 }
 0x3b1   : > { %v2426_v37 = vpop.xlane.xlu0 %2425 }
 0x3b2   : > { %5072 = vpow2.f32 %v2453_v36  ;;  %v2446_v44 = vsub.f32 %v6370_v57, %v2426_v37 }
 0x3b4   : > { %v2455_v42 = vmul.f32 1.442695, %v2446_v44 }
 0x3b6   : > { %5074 = vpow2.f32 %v2455_v42 }
 0x3b7   : > { %v2429_v4 = vpop.xlane.xlu0 %2428 }
 0x3b8   : > { %v2447_v11 = vsub.f32 %v6374_v1, %v2429_v4 }
 0x3ba   : > { %v2457_v51 = vmul.f32 1.442695, %v2447_v11 }
 0x3bb   : > { %v2432_v61 = vpop.xlane.xlu0 %2431 }
 0x3bc   : > { %5076 = vpow2.f32 %v2457_v51  ;;  %v2448_v63 = vsub.f32 %v6378_v13, %v2432_v61  ;;  %v6525_v60 = vpop.eup %5072 }
 0x3bd   : > { %v2469_v9 = vsel %vm1900_vm6, %v6525_v60, 0.0 }
 0x3be   : > { %v2459_v7 = vmul.f32 1.442695, %v2448_v63  ;;  %2470 = vadd.xlane.f32.xlu0 %v2469_v9 }
 0x3bf   : > { %v2435_v38 = vpop.xlane.xlu0 %2434 }
 0x3c0   : > { %5078 = vpow2.f32 %v2459_v7  ;;  %v2449_v57 = vsub.f32 %v6382_v25, %v2435_v38  ;;  %v6530_v12 = vpop.eup %5074 }
 0x3c1   : > { %v2472_v26 = vsel %vm1900_vm6, %v6530_v12, 0.0 }
 0x3c2   : > { %v2461_v24 = vmul.f32 1.442695, %v2449_v57  ;;  %2473 = vadd.xlane.f32.xlu0 %v2472_v26 }
 0x3c3   : > { %v2438_v1 = vpop.xlane.xlu0 %2437 }
 0x3c4   : > { %5080 = vpow2.f32 %v2461_v24  ;;  %v2450_v13 = vsub.f32 %v6386_v33, %v2438_v1 }
 0x3c6   : > { %v6535_v31 = vpop.eup %5076  ;;  %v2463_v36 = vmul.f32 1.442695, %v2450_v13 }
 0x3c7   : > { %v2441_v37 = vpop.xlane.xlu0 %2440  ;;  %v2475_v44 = vsel %vm1900_vm6, %v6535_v31, 0.0 }
 0x3c8   : > { %5082 = vpow2.f32 %v2463_v36  ;;  %v2451_v25 = vsub.f32 %v6392_v41, %v2441_v37  ;;  %2476 = vadd.xlane.f32.xlu0 %v2475_v44 }
 0x3ca   : > { %v6540_v42 = vpop.eup %5078  ;;  %v2465_v4 = vmul.f32 1.442695, %v2451_v25 }
 0x3cb   : > { %v2444_v11 = vpop.xlane.xlu0 %2443  ;;  %v2478_v51 = vsel %vm1900_vm6, %v6540_v42, 0.0 }
 0x3cc   : > { %5084 = vpow2.f32 %v2465_v4  ;;  %v2452_v33 = vsub.f32 %v6398_v6, %v2444_v11  ;;  %2479 = vadd.xlane.f32.xlu0 %v2478_v51 }
 0x3ce   : > { %v6545_v61 = vpop.eup %5080  ;;  %v2467_v63 = vmul.f32 1.442695, %v2452_v33 }
 0x3cf   : > { %v2927_v7 = vpop.xlane.xlu1 %2926  ;;  %v2481_v38 = vsel %vm1900_vm6, %v6545_v61, 0.0 }
 0x3d0   : > { %5086 = vpow2.f32 %v2467_v63  ;;  %v2949_v41 = vsub.f32 %v6404_v2, %v2927_v7  ;;  %2482 = vadd.xlane.f32.xlu0 %v2481_v38 }
 0x3d2   : > { %v6550_v9 = vpop.eup %5082  ;;  %v2957_v57 = vmul.f32 1.442695, %v2949_v41 }
 0x3d3   : > { %v2930_v24 = vpop.xlane.xlu0 %2929  ;;  %v2484_v1 = vsel %vm1900_vm6, %v6550_v9, 0.0 }
 0x3d4   : > { %5088 = vpow2.f32 %v2957_v57  ;;  %v2950_v6 = vsub.f32 %v6408_v16, %v2930_v24  ;;  %2485 = vadd.xlane.f32.xlu0 %v2484_v1 }
 0x3d6   : > { %v6555_v26 = vpop.eup %5084  ;;  %v2959_v13 = vmul.f32 1.442695, %v2950_v6 }
 0x3d7   : > { %v2933_v36 = vpop.xlane.xlu1 %2932  ;;  %v2487_v37 = vsel %vm1900_vm6, %v6555_v26, 0.0 }
 0x3d8   : > { %5090 = vpow2.f32 %v2959_v13  ;;  %v2951_v2 = vsub.f32 %v6413_v32, %v2933_v36  ;;  %2488 = vadd.xlane.f32.xlu0 %v2487_v37 }
 0x3da   : > { %v6560_v44 = vpop.eup %5086  ;;  %v2961_v25 = vmul.f32 1.442695, %v2951_v2 }
 0x3db   : > { %v6562_v4 = vpop.xlane.xlu1 %1950  ;;  %v2936_v11 = vpop.xlane.xlu0 %2935  ;;  %v2490_v16 = vsel %vm1900_vm6, %v6560_v44, 0.0 }
 0x3dc   : > { %5092 = vpow2.f32 %v2961_v25  ;;  %v2952_v51 = vsub.f32 %v6418_v5, %v2936_v11  ;;  %2491 = vadd.xlane.f32.xlu0 %v2490_v16 }
 0x3de   : > { %v6567_v33 = vpop.eup %5088  ;;  %v2963_v63 = vmul.f32 1.442695, %v2952_v51 }
 0x3df   : > { %v6569_v7 = vpop.xlane.xlu1 %1956  ;;  %v2973_v32 = vsel %vm1900_vm6, %v6567_v33, 0.0 }
 0x3e0   : > { %5094 = vpow2.f32 %v2963_v63  ;;  %2974 = vadd.xlane.f32.xlu1 %v2973_v32 }
 0x3e2   : > { %v6573_v38 = vpop.eup %5090 }
 0x3e3   : > { %v2939_v41 = vpop.xlane.xlu1 %2938  ;;  %v2942_v57 = vpop.xlane.xlu0 %2941  ;;  %v2976_v24 = vsel %vm1900_vm6, %v6573_v38, 0.0 }
 0x3e4   : > { %v2953_v5 = vsub.f32 %v6429_v0, %v2939_v41  ;;  %v2954_v1 = vsub.f32 %v6433_v54, %v2942_v57  ;;  %2977 = vadd.xlane.f32.xlu0 %v2976_v24 }
 0x3e6   : > { %v6579_v6 = vpop.eup %5092  ;;  %v2965_v13 = vmul.f32 1.442695, %v2953_v5  ;;  %v2967_v36 = vmul.f32 1.442695, %v2954_v1 }
 0x3e7   : > { %v6581_v37 = vpop.xlane.xlu1 %1953  ;;  %v2979_v2 = vsel %vm1900_vm6, %v6579_v6, 0.0 }
 0x3e8   : > { %5096 = vpow2.f32 %v2965_v13  ;;  %2980 = vadd.xlane.f32.xlu1 %v2979_v2 }
 0x3e9   : > { %5098 = vpow2.f32 %v2967_v36 }
 0x3ea   : > { %v6585_v25 = vpop.eup %5094 }
 0x3eb   : > { %v6587_v11 = vpop.xlane.xlu1 %1962  ;;  %v2948_v0 = vpop.xlane.xlu0 %2947  ;;  %v2982_v54 = vsel %vm1900_vm6, %v6585_v25, 0.0 }
 0x3ec   : > { %v2956_v16 = vsub.f32 %v6446_v45, %v2948_v0  ;;  %2983 = vadd.xlane.f32.xlu0 %v2982_v54 }
 0x3ee   : > { %v2971_v51 = vmul.f32 1.442695, %v2956_v16 }
 0x3ef   : > { %v2945_v63 = vpop.xlane.xlu1 %2944 }
 0x3f0   : > { %5100 = vpow2.f32 %v2971_v51  ;;  %v2955_v32 = vsub.f32 %v6449_v50, %v2945_v63 }
 0x3f2   : > { %v6593_v41 = vpop.eup %5096  ;;  %v2969_v57 = vmul.f32 1.442695, %v2955_v32 }
 0x3f3   : > { %v6595_v24 = vpop.eup %5098  ;;  %v6597_v5 = vpop.xlane.xlu1 %1959  ;;  %v2985_v13 = vsel %vm1900_vm6, %v6593_v41, 0.0 }
 0x3f4   : > { %v3434_v1 = vpop.xlane.xlu0 %3433  ;;  %5102 = vpow2.f32 %v2969_v57  ;;  %2986 = vadd.xlane.f32.xlu1 %v2985_v13  ;;  %v2988_v36 = vsel %vm1900_vm6, %v6595_v24, 0.0 }
 0x3f5   : > { %v3454_v45 = vsub.f32 %v6459_v53, %v3434_v1  ;;  %2989 = vadd.xlane.f32.xlu0 %v2988_v36 }
 0x3f7   : > { %v3463_v50 = vmul.f32 1.442695, %v3454_v45  ;;  %v6604_v2 = vpop.xlane.xlu1 %1968 }
 0x3f9   : > { %5104 = vpow2.f32 %v3463_v50 }
 0x3fa   : > { %v6606_v0 = vpop.eup %5100 }
 0x3fb   : > { %v3431_v54 = vpop.xlane.xlu1 %3430  ;;  %v3440_v16 = vpop.xlane.xlu0 %3439  ;;  %v2994_v51 = vsel %vm1900_vm6, %v6606_v0, 0.0 }
 0x3fc   : > { %v3453_v63 = vsub.f32 %v6468_v8, %v3431_v54  ;;  %v3456_v53 = vsub.f32 %v6472_v46, %v3440_v16  ;;  %2995 = vadd.xlane.f32.xlu0 %v2994_v51 }
 0x3fe   : > { %v6612_v32 = vpop.eup %5102  ;;  %v3461_v57 = vmul.f32 1.442695, %v3453_v63  ;;  %v3467_v1 = vmul.f32 1.442695, %v3456_v53 }
 0x3ff   : > { %v6614_v13 = vpop.xlane.xlu1 %1965  ;;  %v2991_v45 = vsel %vm1900_vm6, %v6612_v32, 0.0 }
 0x400   : > { %5106 = vpow2.f32 %v3461_v57  ;;  %2992 = vadd.xlane.f32.xlu1 %v2991_v45 }
 0x401   : > { %5108 = vpow2.f32 %v3467_v1  ;;  %v1276_v1 = vcombine.high %v6134_v14, %v6137_v21 }
 0x403   : > { %v6618_v36 = vpop.eup %5104  ;;  %v3437_v50 = vpop.xlane.xlu1 %3436  ;;  %v1290_v45 = vrot.slane %v1276_v1, %v5906_v56 }
 0x404   : > { %v3480_v8 = vsel %vm1900_vm6, %v6618_v36, 0.0  ;;  %v3455_v46 = vsub.f32 %v6480_v3, %v3437_v50 }
 0x405   : > { %3481 = vadd.xlane.f32.xlu0 %v3480_v8  ;;  %v1294_v50 = vcombine.high %v1290_v45, %v5425_v29  ;;  %v1433_v8 = vcombine.high %v6517_v28, %v5425_v29 }
 0x406   : > { %v3465_v54 = vmul.f32 1.442695, %v3455_v46 }
 0x407   : > { %v5015_v46 = vpack.i.bf16 %v1294_v50, %v1290_v45 }
 0x408   : > { %5110 = vpow2.f32 %v3465_v54  ;;  %v1972_v54 = vpop.xlane.xlu1 %1971 }
 0x40a   : > { %v6623_v16 = vpop.eup %5106 }
 0x40b   : > { %v6625_v51 = vpop.eup %5108  ;;  %v3477_v63 = vsel %vm1900_vm6, %v6623_v16, 0.0 }
 0x40c   : > { %3478 = vadd.xlane.f32.xlu1 %v3477_v63  ;;  %v3486_v53 = vsel %vm1900_vm6, %v6625_v51, 0.0  ;;  %v3446_v63 = vpop.xlane.xlu0 %3445  ;;  %v3443_v18 = vpop.xlane.xlu1 %3442 }
 0x40d   : > { %3487 = vadd.xlane.f32.xlu0 %v3486_v53  ;;  %v3458_v53 = vsub.f32 %v6484_v20, %v3446_v63  ;;  %v3457_v21 = vsub.f32 %v6492_v34, %v3443_v18 }
 0x40f   : > { %v3471_v17 = vmul.f32 1.442695, %v3458_v53  ;;  %v3469_v28 = vmul.f32 1.442695, %v3457_v21  ;;  %v1416_v53 = vcombine.high %v6509_v22, %v6512_v23 }
 0x410   : > { %v3449_v49 = vpop.xlane.xlu1 %3448 }
 0x411   : > { %5112 = vpow2.f32 %v3471_v17  ;;  %v3459_v45 = vsub.f32 %v6498_v55, %v3449_v49 }
 0x412   : > { %v6631_v57 = vpop.eup %5110 }
 0x413   : > { %v3483_v3 = vsel %vm1900_vm6, %v6631_v57, 0.0  ;;  %v3473_v50 = vmul.f32 1.442695, %v3459_v45 }
 0x414   : > { %3484 = vadd.xlane.f32.xlu1 %v3483_v3  ;;  %v3452_v3 = vpop.xlane.xlu0 %3451 }
 0x415   : > { %v3460_v14 = vsub.f32 %v6496_v48, %v3452_v3 }
 0x417   : > { %v3475_v1 = vmul.f32 1.442695, %v3460_v14  ;;  %v1430_v14 = vrot.slane %v1416_v53, %v5906_v56 }
 0x419   : > { %5114 = vpow2.f32 %v3475_v1  ;;  %v1434_v1 = vcombine.high %v1430_v14, %v5425_v29 }
 0x41a   : > { %5116 = vpow2.f32 %v3469_v28 }
 0x41b   : > { %5118 = vpow2.f32 %v3473_v50 }
 0x41c   : > { %5120 = vrcp.f32 %v6587_v11 }
 0x423   : > { %3606 = vrot.lane.b32.xlu0 %v1433_v8, %s5433_s18  ;;  %v6647_v8 = vpop.eup %5112 }
 0x424   : > { %v3492_v20 = vsel %vm1900_vm6, %v6647_v8, 0.0 }
 0x425   : > { %5016 = vrot.lane.b32.xlu1 %v5015_v46, %s5432_s23  ;;  %v6651_v46 = vpop.eup %5114 }
 0x426   : > { %v6653_v48 = vpop.eup %5116  ;;  %v3498_v17 = vsel %vm1900_vm6, %v6651_v46, 0.0 }
 0x427   : > { %v3489_v49 = vsel %vm1900_vm6, %v6653_v48, 0.0  ;;  %v6659_v18 = vpop.eup %5118 }
 0x428   : > { %v3495_v34 = vsel %vm1900_vm6, %v6659_v18, 0.0  ;;  %v5121_v23 = vpop.eup %5120 }
 0x442   : > { %3493 = vadd.xlane.f32.xlu0 %v3492_v20  ;;  %v1982_v20 = vmul.f32 %v5121_v23, %v6444_v39 }
 0x446   : > { %3499 = vadd.xlane.f32.xlu0 %v3498_v17 }
 0x449   : > { %3490 = vadd.xlane.f32.xlu1 %v3489_v49 }
 0x44b   : > { %v6663_v55 = vpop.xlane.xlu0 %2470 }
 0x44d   : > { %3496 = vadd.xlane.f32.xlu1 %v3495_v34 }
 0x44f   : > { %v2474_v63 = vpop.xlane.xlu0 %2473 }
 0x455   : > { %v6667_v3 = vpop.xlane.xlu0 %2476 }
 0x459   : > { %v6670_v21 = vpop.xlane.xlu0 %2479 }
 0x45c   : > { %3608 = vrot.lane.b32.xlu0 %v1430_v14, %s5433_s18 }
 0x45d   : > { %v2483_v28 = vpop.xlane.xlu0 %2482 }
 0x45e   : > { %5122 = vrcp.f32 %v2483_v28  ;;  %3610 = vrot.lane.b32.xlu1 %v1434_v1, %s5433_s18 }
 0x45f   : > { %5124 = vrcp.f32 %v6614_v13 }
 0x461   : > { %v2486_v45 = vpop.xlane.xlu0 %2485 }
 0x462   : > { %5126 = vrcp.f32 %v2486_v45 }
 0x463   : > { %5128 = vrcp.f32 %v6604_v2 }
 0x465   : > { %v2489_v22 = vpop.xlane.xlu0 %2488 }
 0x466   : > { %5130 = vrcp.f32 %v2489_v22 }
 0x467   : > { %5132 = vrcp.f32 %v1972_v54 }
 0x468   : > { %v5123_v50 = vpop.eup %5122 }
 0x469   : > { %v2502_v11 = vmul.f32 %v5123_v50, %v6545_v61  ;;  %v2492_v17 = vpop.xlane.xlu0 %2491  ;;  %v5125_v49 = vpop.eup %5124 }
 0x46a   : > { %5134 = vrcp.f32 %v2492_v17  ;;  %v1984_v13 = vmul.f32 %v5125_v49, %v6478_v58  ;;  %v6685_v50 = vpop.permute.xlu1 %3604 }
 0x46b   : > { %v2513_v34 = vadd.f32 %v2502_v11, %v1982_v20 }
 0x46c   : > { %v5127_v53 = vpop.eup %5126 }
 0x46d   : > { %v2504_v14 = vmul.f32 %v5127_v53, %v6550_v9  ;;  %v5129_v1 = vpop.eup %5128 }
 0x46e   : > { %v1986_v45 = vmul.f32 %v5129_v1, %v6466_v30  ;;  %v2975_v58 = vpop.xlane.xlu1 %2974 }
 0x46f   : > { %v2514_v2 = vadd.f32 %v2504_v14, %v1984_v13 }
 0x470   : > { %v5131_v28 = vpop.eup %5130 }
 0x471   : > { %v2506_v54 = vmul.f32 %v5131_v28, %v6555_v26  ;;  %v5133_v22 = vpop.eup %5132  ;;  %v2978_v17 = vpop.xlane.xlu0 %2977 }
 0x472   : > { %v1988_v61 = vmul.f32 %v5133_v22, %v6490_v35 }
 0x473   : > { %v2515_v39 = vadd.f32 %v2506_v54, %v1986_v45 }
 0x474   : > { %v5135_v23 = vpop.eup %5134 }
 0x475   : > { %v2508_v20 = vmul.f32 %v5135_v23, %v6560_v44  ;;  %v2981_v9 = vpop.xlane.xlu1 %2980 }
 0x477   : > { %v2516_v11 = vadd.f32 %v2508_v20, %v1988_v61 }
 0x479   : > { %v2984_v49 = vpop.xlane.xlu0 %2983 }
 0x481   : > { %v2987_v53 = vpop.xlane.xlu1 %2986 }
 0x482   : > { %5136 = vrcp.f32 %v2987_v53  ;;  %v2990_v13 = vpop.xlane.xlu0 %2989 }
 0x483   : > { %5138 = vrcp.f32 %v2990_v13  ;;  %v3632_v13 = vsel %vm3628_vm4, %v6333_v59, %v6394_v43 }
 0x484   : > { %5140 = vrcp.f32 %v2474_v63 }
 0x489   : > { %v2996_v30 = vpop.xlane.xlu0 %2995 }
 0x48a   : > { %5142 = vrcp.f32 %v2996_v30 }
 0x48b   : > { %5144 = vrcp.f32 %v6581_v37 }
 0x48c   : > { %v5137_v35 = vpop.eup %5136  ;;  %5146 = vrcp.f32 %v2978_v17 }
 0x48d   : > { %v5139_v26 = vpop.eup %5138  ;;  %v3006_v44 = vmul.f32 %v5137_v35, %v6593_v41  ;;  %v2993_v14 = vpop.xlane.xlu1 %2992 }
 0x48e   : > { %v3008_v1 = vmul.f32 %v5139_v26, %v6595_v24  ;;  %5148 = vrcp.f32 %v2993_v14  ;;  %v5141_v45 = vpop.eup %5140 }
 0x48f   : > { %5150 = vrcp.f32 %v6562_v4  ;;  %v6692_v28 = vadd.f32 %v3006_v44, %v2513_v34 }
 0x490   : > { %5152 = vrcp.f32 %v6597_v5  ;;  %v6695_v63 = vadd.f32 %v3008_v1, %v2514_v2  ;;  %v2496_v5 = vmul.f32 %v5141_v45, %v6530_v12  ;;  %v3648_v1 = vpack.c.bf16 %v3632_v13, %v3632_v13 }
 0x491   : > { %5154 = vrcp.f32 %v6663_v55 }
 0x492   : > { %v3482_v37 = vpop.xlane.xlu0 %3481 }
 0x493   : > { %5156 = vrcp.f32 %v3482_v37 }
 0x494   : > { %5158 = vrcp.f32 %v6670_v21  ;;  %v5143_v41 = vpop.eup %5142 }
 0x495   : > { %5160 = vrcp.f32 %v2975_v58  ;;  %v5145_v24 = vpop.eup %5144  ;;  %v3012_v4 = vmul.f32 %v5143_v41, %v6606_v0 }
 0x496   : > { %5162 = vrcp.f32 %v2984_v49  ;;  %v5147_v34 = vpop.eup %5146  ;;  %v1976_v22 = vmul.f32 %v5145_v24, %v6440_v27 }
 0x497   : > { %v6702_v2 = vadd.f32 %v3012_v4, %v2516_v11  ;;  %5164 = vrcp.f32 %v6569_v7  ;;  %v3000_v21 = vmul.f32 %v5147_v34, %v6573_v38 }
 0x498   : > { %v5149_v54 = vpop.eup %5148  ;;  %5166 = vrcp.f32 %v6667_v3  ;;  %v2510_v11 = vadd.f32 %v2496_v5, %v1976_v22 }
 0x499   : > { %v5151_v55 = vpop.eup %5150  ;;  %v3010_v23 = vmul.f32 %v5149_v54, %v6612_v32  ;;  %v3479_v0 = vpop.xlane.xlu1 %3478 }
 0x49a   : > { %v5153_v61 = vpop.eup %5152  ;;  %5168 = vrcp.f32 %v3479_v0  ;;  %v3488_v20 = vpop.xlane.xlu0 %3487  ;;  %v3014_v27 = vadd.f32 %v3000_v21, %v2510_v11  ;;  %v1974_v59 = vmul.f32 %v5151_v55, %v6420_v47  ;;  %v5014_v47 = vunpack.i.h.bf16 %v6390_v40 }
 0x49b   : > { %v5155_v12 = vpop.eup %5154  ;;  %v6709_v58 = vadd.f32 %v3010_v23, %v2515_v39  ;;  %5170 = vrcp.f32 %v3488_v20  ;;  %v7019_v39 = vcombine.low %v6188_v15, %v6191_v19  ;;  %v3797_v0 = vsel %vm3657_vm5, %v3648_v1, 0 }
 0x49c   : > { %5172 = vrcp.f32 %v2981_v9  ;;  %v2494_v32 = vmul.f32 %v5155_v12, %v6525_v60  ;;  %v6729_v60 = vld [vmem:[%s7021_s24] ss:$0 sm:$0xff] }
 0x49d   : > { %v5157_v7 = vpop.eup %5156  ;;  %v1215_v30 = vrot.slane %v7019_v39, %v5906_v56 }
 0x49e   : > { %v5159_v17 = vpop.eup %5158  ;;  %v3504_v3 = vmul.f32 %v5157_v7, %v6618_v36  ;;  %v2509_v37 = vadd.f32 %v2494_v32, %v1974_v59  ;;  %v3607_v22 = vpop.permute.xlu0 %3606  ;;  %v5013_v7 = vunpack.i.l.bf16 %v6390_v40 }
 0x49f   : > { %v5161_v38 = vpop.eup %5160  ;;  %v2500_v9 = vmul.f32 %v5159_v17, %v6540_v42  ;;  %v1980_v42 = vmul.f32 %v5153_v61, %v6457_v10 }
 0x4a0   : > { %v5163_v49 = vpop.eup %5162  ;;  %v3518_v53 = vadd.f32 %v3504_v3, %v3014_v27  ;;  %v2998_v43 = vmul.f32 %v5161_v38, %v6567_v33  ;;  %v1225_v33 = vcombine.high %v1215_v30, %v5425_v29  ;;  %v3647_v3 = vpack.c.bf16 %v6336_v62, %v6336_v62 }
 0x4a1   : > { %v3485_v35 = vpop.xlane.xlu1 %3484  ;;  %v5165_v26 = vpop.eup %5164  ;;  %v3004_v44 = vmul.f32 %v5163_v49, %v6585_v25  ;;  %v2512_v24 = vadd.f32 %v2500_v9, %v1980_v42  ;;  %v3624_v13 = vsel %vm645_vm0, %v1215_v30, %v5013_v7 }
 0x4a2   : > { %v3526_v36 = vmul.f32 0.25, %v3518_v53  ;;  %5174 = vrcp.f32 %v3485_v35  ;;  %v5167_v14 = vpop.eup %5166  ;;  %v3013_v34 = vadd.f32 %v2998_v43, %v2509_v37  ;;  %v3625_v20 = vsel %vm645_vm0, %v1225_v33, %v5014_v47 }
 0x4a3   : > { %v3016_v54 = vadd.f32 %v3004_v44, %v2512_v24  ;;  %v2498_v21 = vmul.f32 %v5167_v14, %v6535_v31  ;;  %v3634_v31 = vsel %vm3628_vm4, %v3625_v20, %v3607_v22  ;;  %v3751_v9 = vsel %vm3657_vm5, %v3647_v3, 0 }
 0x4a4   : > { %3534 = vst.msk [vmem:[%s6724_s20 + $0x4] sm:$0xf] %vm1900_vm6, %v3526_v36  ;;  %v3549_v45 = vmul.f32 %v6729_v60, %v3526_v36  ;;  %v5169_v41 = vpop.eup %5168  ;;  %v3633_v62 = vsel %vm3628_vm4, %v3624_v13, %v6685_v50  ;;  %v7022_v14 = vcombine.high %v6188_v15, %v6191_v19 }
 0x4a5   : > { %v5171_v4 = vpop.eup %5170  ;;  %v3502_v10 = vmul.f32 %v5169_v41, %v6623_v16  ;;  %v1978_v16 = vmul.f32 %v5165_v26, %v6426_v52  ;;  %v3650_v52 = vpack.c.bf16 %v3634_v31, %v3634_v31  ;;  %v5017_v26 = vpop.permute.xlu1 %5016 }
 0x4a6   : > { %v3638_v25 = vpack.c.bf16 %v3549_v45, %v3549_v45  ;;  %v5173_v5 = vpop.eup %5172  ;;  %v3508_v55 = vmul.f32 %v5171_v4, %v6625_v51  ;;  %v1222_v1 = vrot.slane %v7022_v14, %v5906_v56  ;;  %v5019_v45 = vunpack.i.h.bf16 %v5017_v26 }
 0x4a7   : > { %v3517_v23 = vadd.f32 %v3502_v10, %v3013_v34  ;;  %v3002_v51 = vmul.f32 %v5173_v5, %v6579_v6  ;;  %v2511_v17 = vadd.f32 %v2498_v21, %v1978_v16  ;;  %v3889_v59 = vsel %vm3657_vm5, %v3650_v52, 0 }
 0x4a8   : > { %4833 = vmatmul.mubr.msk.bf16.vlgmr.msra.gmra.mrb[72].mxu1 %vm3653_vm7, %v3638_v25  ;;  %v3520_v61 = vadd.f32 %v3508_v55, %v3016_v54  ;;  %v1226_v24 = vcombine.high %v1222_v1, %v5425_v29  ;;  %v5018_v19 = vunpack.i.l.bf16 %v5017_v26 }
 0x4a9   : > { %4843 = vmatpush3.bf16.msra.mxu1 %v3797_v0  ;;  %4844 = vmatprep.mubr.msk.bf16.mxu1 %vm5426_vm2, %v5425_v29  ;;  %v3525_v12 = vmul.f32 0.25, %v3517_v23  ;;  %v3015_v49 = vadd.f32 %v3002_v51, %v2511_v17 }
 0x4aa   : > { %4854 = vmatprep.subr.bf16.mxu1 %v5425_v29  ;;  %v3528_v11 = vmul.f32 0.25, %v3520_v61  ;;  %v3627_v10 = vsel %vm645_vm0, %v1226_v24, %v5019_v45  ;;  %v3626_v20 = vsel %vm645_vm0, %v1222_v1, %v5018_v19  ;;  %v5187_v19 = vld [vmem:[%s5792_s16 + $0x18] sm:$0xff] }
 0x4ab   : > { %3533 = vst.msk [vmem:[%s6724_s20] sm:$0xf] %vm1900_vm6, %v3525_v12  ;;  %v3548_v27 = vmul.f32 %v6729_v60, %v3525_v12 }
 0x4ac   : > { %v5175_v38 = vpop.eup %5174  ;;  %3536 = vst.msk [vmem:[%s6724_s20 + $0xc] sm:$0xf] %vm1900_vm6, %v3528_v11  ;;  %v3551_v6 = vmul.f32 %v6729_v60, %v3528_v11 }
 0x4ad   : > { %v3506_v32 = vmul.f32 %v5175_v38, %v6631_v57  ;;  %v3637_v53 = vpack.c.bf16 %v3548_v27, %v3548_v27  ;;  %v3649_v57 = vpack.c.bf16 %v3633_v62, %v3633_v62 }
 0x4ae   : > { %v3640_v40 = vpack.c.bf16 %v3551_v6, %v3551_v6 }
 0x4af   : > { %v3519_v39 = vadd.f32 %v3506_v32, %v3015_v49  ;;  %4827 = vmatmul.mubr.msk.bf16.vlgmr.msra.gmra.mrb[68].mxu0 %vm3653_vm7, %v3637_v53  ;;  %v3843_v36 = vsel %vm3657_vm5, %v3649_v57, 0 }
 0x4b0   : > { %4837 = vmatpush3.bf16.msra.mxu0 %v3751_v9  ;;  %4845 = vmatmul.mubr.msk.bf16.vlgmr.msra.gmra.mrb[76].mxu1 %vm3653_vm7, %v3640_v40 }
 0x4b1   : > { %v3527_v43 = vmul.f32 0.25, %v3519_v39  ;;  %4855 = vmatpush3.bf16.msra.mxu1 %v3889_v59  ;;  %4838 = vmatprep.mubr.msk.bf16.mxu0 %vm5426_vm2, %v5425_v29 }
 0x4b2   : > { %4848 = vmatprep.subr.bf16.mxu0 %v5425_v29  ;;  %4856 = vmatprep.mubr.msk.bf16.mxu1 %vm5426_vm2, %v5425_v29 }
 0x4b3   : > { %3535 = vst.msk [vmem:[%s6724_s20 + $0x8] sm:$0xf] %vm1900_vm6, %v3527_v43  ;;  %v3550_v50 = vmul.f32 %v6729_v60, %v3527_v43  ;;  %4866 = vmatprep.subr.bf16.mxu1 %v5425_v29 }
 0x4b5   : > { %v3639_v30 = vpack.c.bf16 %v3550_v50, %v3550_v50 }
 0x4b7   : > { %4839 = vmatmul.mubr.msk.bf16.vlgmr.msra.gmra.mrb[72].mxu0 %vm3653_vm7, %v3639_v30 }
 0x4b8   : > { %4849 = vmatpush3.bf16.msra.mxu0 %v3843_v36  ;;  %4850 = vmatprep.mubr.msk.bf16.mxu0 %vm5426_vm2, %v5425_v29 }
 0x4b9   : > { %4860 = vmatprep.subr.bf16.mxu0 %v5425_v29 }
 0x4cf   : > { %v3494_v35 = vpop.xlane.xlu0 %3493 }
 0x4d0   : > { %5176 = vrcp.f32 %v3494_v35 }
 0x4d3   : > { %v3500_v42 = vpop.xlane.xlu0 %3499 }
 0x4d4   : > { %5178 = vrcp.f32 %v3500_v42 }
 0x4d6   : > { %v3491_v44 = vpop.xlane.xlu1 %3490 }
 0x4d7   : > { %5180 = vrcp.f32 %v3491_v44  ;;  %v3609_v21 = vpop.permute.xlu0 %3608 }
 0x4da   : > { %v5177_v37 = vpop.eup %5176  ;;  %v3497_v41 = vpop.xlane.xlu1 %3496 }
 0x4db   : > { %v3512_v47 = vmul.f32 %v5177_v37, %v6647_v8  ;;  %5182 = vrcp.f32 %v3497_v41 }
 0x4dd   : > { %v3522_v33 = vadd.f32 %v3512_v47, %v6695_v63 }
 0x4de   : > { %v5179_v4 = vpop.eup %5178  ;;  %v3611_v34 = vpop.permute.xlu1 %3610 }
 0x4df   : > { %v3530_v25 = vmul.f32 0.25, %v3522_v33  ;;  %v3516_v5 = vmul.f32 %v5179_v4, %v6651_v46  ;;  %v3636_v15 = vsel %vm3628_vm4, %v3627_v10, %v3611_v34  ;;  %v5184_v10 = vld [vmem:[%s5792_s16] sm:$0xff] }
 0x4e0   : > { %v3652_v54 = vpack.c.bf16 %v3636_v15, %v3636_v15  ;;  %v5186_v15 = vld [vmem:[%s5792_s16 + $0x8] sm:$0xff] }
 0x4e1   : > { %v5181_v55 = vpop.eup %5180  ;;  %3538 = vst.msk [vmem:[%s6724_s20 + $0x14] sm:$0xf] %vm1900_vm6, %v3530_v25  ;;  %v3524_v8 = vadd.f32 %v3516_v5, %v6702_v2  ;;  %v3553_v22 = vmul.f32 %v6729_v60, %v3530_v25  ;;  %v3635_v2 = vsel %vm3628_vm4, %v3626_v20, %v3609_v21  ;;  %v5185_v25 = vld [vmem:[%s5792_s16 + $0x10] sm:$0xff]  ;;  %s4410_s16 = sshll.u32 %s7034_s29, 3 }
 0x4e2   : > { %v3510_v63 = vmul.f32 %v5181_v55, %v6653_v48  ;;  %v3981_v46 = vsel %vm3657_vm5, %v3652_v54, 0  ;;  %v1295_v5 = vcombine.low %v5184_v10, %v5185_v25  ;;  %v1311_v54 = vcombine.low %v5186_v15, %v5187_v19  ;;  %v7023_v55 = vld [vmem:[#allocation19_spill] sm:$0xff]  ;;  %s620_s21 = scalar_lea.vmem %s7024_s15, %s4410_s16  ;;  %s624_s0 = scalar_lea.vmem %s7025_s9, %s4410_s16 }
 0x4e3   : > { %v3532_v23 = vmul.f32 0.25, %v3524_v8  ;;  %v3642_v0 = vpack.c.bf16 %v3553_v22, %v3553_v22 }
 0x4e4   : > { %v3521_v61 = vadd.f32 %v3510_v63, %v6692_v28  ;;  %v3651_v28 = vpack.c.bf16 %v3635_v2, %v3635_v2  ;;  %v1303_v8 = vrot.slane %v1295_v5, %v7023_v55  ;;  %v1319_v22 = vrot.slane %v1311_v54, %v7023_v55 }
 0x4e5   : > { %v5183_v16 = vpop.eup %5182  ;;  %3540 = vst.msk [vmem:[%s6724_s20 + $0x1c] sm:$0xf] %vm1900_vm6, %v3532_v23  ;;  %4857 = vmatmul.mubr.msk.bf16.vlgmr.msra.gmra.mrb[80].mxu1 %vm3653_vm7, %v3642_v0  ;;  %v3555_v12 = vmul.f32 %v6729_v60, %v3532_v23 }
 0x4e6   : > { %v3529_v51 = vmul.f32 0.25, %v3521_v61  ;;  %v3514_v48 = vmul.f32 %v5183_v16, %v6659_v18  ;;  %4867 = vmatpush3.bf16.msra.mxu1 %v3981_v46  ;;  %4868 = vmatprep.mubr.msk.bf16.mxu1 %vm5426_vm2, %v5425_v29  ;;  %v3935_v18 = vsel %vm3657_vm5, %v3651_v28, 0  ;;  %v1327_v63 = vcombine.low %v1303_v8, %v1319_v22 }
 0x4e7   : > { %v3644_v27 = vpack.c.bf16 %v3555_v12, %v3555_v12  ;;  %v1328_v23 = vcombine.high %v1303_v8, %v1319_v22 }
 0x4e8   : > { %3537 = vst.msk [vmem:[%s6724_s20 + $0x10] sm:$0xf] %vm1900_vm6, %v3529_v51  ;;  %v3523_v31 = vadd.f32 %v3514_v48, %v6709_v58  ;;  %v3552_v11 = vmul.f32 %v6729_v60, %v3529_v51  ;;  %v1335_v21 = vrot.slane %v1327_v63, %v5906_v56 }
 0x4e9   : > { %v1342_v16 = vrot.slane %v1328_v23, %v5906_v56 }
 0x4ea   : > { %v3531_v7 = vmul.f32 0.25, %v3523_v31  ;;  %v3641_v17 = vpack.c.bf16 %v3552_v11, %v3552_v11  ;;  %v1359_v20 = vcombine.high %v1335_v21, %v5425_v29 }
 0x4eb   : > { %v1360_v28 = vcombine.high %v1342_v16, %v5425_v29 }
 0x4ec   : > { %3539 = vst.msk [vmem:[%s6724_s20 + $0x18] sm:$0xf] %vm1900_vm6, %v3531_v7  ;;  %4851 = vmatmul.mubr.msk.bf16.vlgmr.msra.gmra.mrb[76].mxu0 %vm3653_vm7, %v3641_v17  ;;  %v3554_v3 = vmul.f32 %v6729_v60, %v3531_v7 }
 0x4ed   : > { %4861 = vmatpush3.bf16.msra.mxu0 %v3935_v18  ;;  %4869 = vmatmul.mubr.msk.bf16.vlgmr.msra.gmra.mrb[84].mxu1 %vm3653_vm7, %v3644_v27 }
 0x4ee   : > { %4862 = vmatprep.mubr.msk.bf16.mxu0 %vm5426_vm2, %v5425_v29  ;;  %v3643_v58 = vpack.c.bf16 %v3554_v3, %v3554_v3 }
 0x4f4   : > { %4863 = vmatmul.mubr.msk.bf16.vlgmr.msra.gmra.mrb[80].mxu0 %vm3653_vm7, %v3643_v58 }
 0x57b   : > { %v6822_v38 = vpop.f32.mrb[72].mxu1 }
 0x57c   : > { %v4834_v52 = vpop.f32.mrb[73].mxu1 }
 0x57d   : > { %v3744_v6 = vpop.f32.mrb[74].mxu1 }
 0x57e   : > { %v4835_v49 = vpop.f32.mrb[75].mxu1 }
 0x582   : > { %v3695_v32 = vpop.f32.mrb[68].mxu0 }
 0x583   : > { %v6824_v53 = vpop.f32.mrb[76].mxu1  ;;  %4071 = vrot.lane.b32.xlu1 %v3695_v32, %s5433_s18  ;;  %4031 = vrot.lane.b32.xlu0 %v3695_v32, %s5434_s6  ;;  %v4828_v40 = vpop.f32.mrb[69].mxu0 }
 0x584   : > { %v4846_v13 = vpop.f32.mrb[77].mxu1  ;;  %v3698_v39 = vpop.f32.mrb[70].mxu0 }
 0x585   : > { %v3836_v60 = vpop.f32.mrb[78].mxu1  ;;  %v4829_v9 = vpop.f32.mrb[71].mxu0 }
 0x586   : > { %v4847_v62 = vpop.f32.mrb[79].mxu1 }
 0x587   : > { %4073 = vrot.lane.b32.xlu0 %v6822_v38, %s5433_s18  ;;  %4033 = vrot.lane.b32.xlu1 %v6822_v38, %s5434_s6  ;;  %v5034_v62 = vld [vmem:[%s5800_s11] ss:$16 sps:$4 sm:$0xff]  }
 0x58a   : > { %v6832_v59 = vpop.f32.mrb[72].mxu0 }
 0x58b   : > { %v4840_v43 = vpop.f32.mrb[73].mxu0  ;;  %4035 = vrot.lane.b32.xlu0 %v6832_v59, %s5434_s6  ;;  %4037 = vrot.lane.b32.xlu1 %v6824_v53, %s5434_s6 }
 0x58c   : > { %v3790_v57 = vpop.f32.mrb[74].mxu0  ;;  %v5036_v43 = vld [vmem:[%s5800_s11 + $0x8] ss:$16 sps:$4 sm:$0xff]  }
 0x58d   : > { %v4841_v50 = vpop.f32.mrb[75].mxu0  ;;  %v1447_v57 = vrot.slane %v5034_v62, %v7023_v55 }
 0x58e   : > { %v1463_v50 = vrot.slane %v5036_v43, %v7023_v55 }
 0x58f   : > { %4075 = vrot.lane.b32.xlu0 %v6832_v59, %s5433_s18 }
 0x593   : > { %4077 = vrot.lane.b32.xlu0 %v6824_v53, %s5433_s18 }
 0x5b8   : > { %v6842_v30 = vpop.f32.mrb[80].mxu1 }
 0x5b9   : > { %v4858_v36 = vpop.f32.mrb[81].mxu1 }
 0x5ba   : > { %v3928_v35 = vpop.f32.mrb[82].mxu1  ;;  %v1312_v36 = vcombine.high %v5186_v15, %v5187_v19 }
 0x5bb   : > { %v4859_v26 = vpop.f32.mrb[83].mxu1  ;;  %v1471_v35 = vcombine.low %v1447_v57, %v1463_v50 }
 0x5bc   : > { %v5039_v26 = vld [vmem:[%s5800_s11 + $0xc] ss:$16 sps:$4 sm:$0xff]  }
 0x5bf   : > { %v6844_v42 = vpop.f32.mrb[76].mxu0 }
 0x5c0   : > { %v6846_v44 = vpop.f32.mrb[84].mxu1  ;;  %v4852_v14 = vpop.f32.mrb[77].mxu0  ;;  %4079 = vrot.lane.b32.xlu0 %v6844_v42, %s5433_s18  ;;  %4039 = vrot.lane.b32.xlu1 %v6844_v42, %s5434_s6 }
 0x5c1   : > { %v4870_v1 = vpop.f32.mrb[85].mxu1  ;;  %v3882_v37 = vpop.f32.mrb[78].mxu0 }
 0x5c2   : > { %v4020_v45 = vpop.f32.mrb[86].mxu1  ;;  %v4853_v41 = vpop.f32.mrb[79].mxu0  ;;  %v1326_v1 = vrot.slane %v1312_v36, %v7023_v55 }
 0x5c3   : > { %v4871_v47 = vpop.f32.mrb[87].mxu1  ;;  %v1479_v45 = vrot.slane %v1471_v35, %v5906_v56  ;;  %v1472_v41 = vcombine.high %v1447_v57, %v1463_v50 }
 0x5c4   : > { %4081 = vrot.lane.b32.xlu0 %v6842_v30, %s5433_s18  ;;  %4041 = vrot.lane.b32.xlu1 %v6842_v30, %s5434_s6 }
 0x5c7   : > { %v6856_v24 = vpop.f32.mrb[80].mxu0 }
 0x5c8   : > { %v4864_v33 = vpop.f32.mrb[81].mxu0  ;;  %4083 = vrot.lane.b32.xlu0 %v6856_v24, %s5433_s18  ;;  %4043 = vrot.lane.b32.xlu1 %v6856_v24, %s5434_s6 }
 0x5c9   : > { %v3974_v4 = vpop.f32.mrb[82].mxu0  ;;  %v1470_v33 = vrot.slane %v5039_v26, %v7023_v55 }
 0x5ca   : > { %v4865_v34 = vpop.f32.mrb[83].mxu0 }
 0x5cb   : > { %v1503_v34 = vcombine.high %v1479_v45, %v5425_v29 }
 0x5cc   : > { %4045 = vrot.lane.b32.xlu1 %v6846_v44, %s5434_s6 }
 0x5d0   : > { %4085 = vrot.lane.b32.xlu1 %v6846_v44, %s5433_s18 }
 0x5f5   : > { %v4072_v0 = vpop.permute.xlu1 %4071  ;;  %v4032_v46 = vpop.permute.xlu0 %4031 }
 0x5f6   : > { %v4055_v61 = vsub.f32 %v1335_v21, %v4032_v46  ;;  %v4095_v8 = vsub.f32 %v1479_v45, %v4072_v0 }
 0x5f8   : > { %v4063_v2 = vmul.f32 %v4055_v61, %v3695_v32 }
 0x5f9   : > { %v4074_v51 = vpop.permute.xlu0 %4073  ;;  %v4034_v48 = vpop.permute.xlu1 %4033 }
 0x5fa   : > { %v4056_v12 = vsub.f32 %v1359_v20, %v4034_v48  ;;  %v4103_v31 = vmul.f32 %v4063_v2, %v4063_v2  ;;  %v4096_v19 = vsub.f32 %v1503_v34, %v4074_v51  ;;  %v4138_v51 = vmul.f32 %v4095_v8, %v4095_v8 }
 0x5fc   : > { %v4064_v11 = vmul.f32 %v4056_v12, %v6822_v38  ;;  %v4112_v58 = vsel %vm4111_vm8, %v4103_v31, 0.0 }
 0x5fd   : > { %v4036_v7 = vpop.permute.xlu0 %4035  ;;  %v4038_v17 = vpop.permute.xlu1 %4037 }
 0x5fe   : > { %v4104_v27 = vmul.f32 %v4064_v11, %v4064_v11  ;;  %v4057_v18 = vsub.f32 %v1342_v16, %v4036_v7  ;;  %v4058_v3 = vsub.f32 %v1360_v28, %v4038_v17  ;;  %v4139_v16 = vmul.f32 %v4096_v19, %v4096_v19 }
 0x600   : > { %v4113_v52 = vsel %vm4111_vm8, %v4104_v27, 0.0  ;;  %v4065_v6 = vmul.f32 %v4057_v18, %v6832_v59  ;;  %v4066_v49 = vmul.f32 %v4058_v3, %v6824_v53  ;;  %v1296_v59 = vcombine.high %v5184_v10, %v5185_v25  ;;  %v5038_v53 = vld [vmem:[%s5800_s11 + $0x4] ss:$16 sps:$4 sm:$0xff]  }
 0x601   : > { %v4114_v32 = vadd.f32 %v4113_v52, %v4112_v58  ;;  %v4076_v37 = vpop.permute.xlu0 %4075  ;;  %v1454_v47 = vrot.slane %v5038_v53, %v7023_v55  ;;  %v1486_v10 = vrot.slane %v1472_v41, %v5906_v56  ;;  %v4148_v3 = vsel %vm4146_vm9, %v4139_v16, 0.0 }
 0x602   : > { %v4105_v38 = vmul.f32 %v4065_v6, %v4065_v6  ;;  %v4106_v40 = vmul.f32 %v4066_v49, %v4066_v49  ;;  %v1310_v14 = vrot.slane %v1296_v59, %v7023_v55  ;;  %v4147_v49 = vsel %vm4146_vm9, %v4138_v51, 0.0 }
 0x603   : > { %v1487_v5 = vcombine.low %v1454_v47, %v1470_v33  ;;  %v1504_v54 = vcombine.high %v1486_v10, %v5425_v29  ;;  %v4097_v22 = vsub.f32 %v1486_v10, %v4076_v37  ;;  %v1488_v23 = vcombine.high %v1454_v47, %v1470_v33 }
 0x604   : > { %v4115_v13 = vsel %vm4111_vm8, %v4105_v38, 0.0  ;;  %v4117_v60 = vsel %vm4111_vm8, %v4106_v40, 0.0  ;;  %v1343_v4 = vcombine.low %v1310_v14, %v1326_v1  ;;  %v1344_v20 = vcombine.high %v1310_v14, %v1326_v1 }
 0x605   : > { %v4116_v39 = vadd.f32 %v4115_v13, %v4114_v32  ;;  %v4078_v25 = vpop.permute.xlu0 %4077  ;;  %v1495_v46 = vrot.slane %v1487_v5, %v5906_v56  ;;  %v4140_v28 = vmul.f32 %v4097_v22, %v4097_v22  ;;  %v1502_v11 = vrot.slane %v1488_v23, %v5906_v56 }
 0x606   : > { %v1351_v15 = vrot.slane %v1343_v4, %v5906_v56  ;;  %v4098_v2 = vsub.f32 %v1504_v54, %v4078_v25  ;;  %v1358_v18 = vrot.slane %v1344_v20, %v5906_v56  ;;  %v4149_v57 = vadd.f32 %v4148_v3, %v4147_v49 }
 0x607   : > { %v4118_v9 = vadd.f32 %v4117_v60, %v4116_v39  ;;  %v1505_v12 = vcombine.high %v1495_v46, %v5425_v29  ;;  %v4150_v32 = vsel %vm4146_vm9, %v4140_v28, 0.0 }
 0x608   : > { %v1361_v61 = vcombine.high %v1351_v15, %v5425_v29  ;;  %v4141_v58 = vmul.f32 %v4098_v2, %v4098_v2  ;;  %v1362_v39 = vcombine.high %v1358_v18, %v5425_v29  ;;  %v4151_v35 = vadd.f32 %v4150_v32, %v4149_v57 }
 0x60a   : > { %v4152_v50 = vsel %vm4146_vm9, %v4141_v58, 0.0 }
 0x60b   : > { %v4153_v41 = vadd.f32 %v4152_v50, %v4151_v35 }
 0x632   : > { %v4080_v63 = vpop.permute.xlu0 %4079  ;;  %v4040_v21 = vpop.permute.xlu1 %4039 }
 0x633   : > { %v4059_v55 = vsub.f32 %v1351_v15, %v4040_v21  ;;  %v4099_v7 = vsub.f32 %v1495_v46, %v4080_v63 }
 0x635   : > { %v4067_v48 = vmul.f32 %v4059_v55, %v6844_v42  ;;  %v4142_v60 = vmul.f32 %v4099_v7, %v4099_v7 }
 0x636   : > { %v4082_v0 = vpop.permute.xlu0 %4081  ;;  %v4042_v31 = vpop.permute.xlu1 %4041 }
 0x637   : > { %v4107_v17 = vmul.f32 %v4067_v48, %v4067_v48  ;;  %v4060_v27 = vsub.f32 %v1361_v61, %v4042_v31  ;;  %v4100_v42 = vsub.f32 %v1505_v12, %v4082_v0  ;;  %v4154_v14 = vsel %vm4146_vm9, %v4142_v60, 0.0 }
 0x638   : > { %v4155_v34 = vadd.f32 %v4154_v14, %v4153_v41 }
 0x639   : > { %v4119_v52 = vsel %vm4111_vm8, %v4107_v17, 0.0  ;;  %v4068_v6 = vmul.f32 %v4060_v27, %v6842_v30  ;;  %v4143_v59 = vmul.f32 %v4100_v42, %v4100_v42 }
 0x63a   : > { %v4120_v38 = vadd.f32 %v4119_v52, %v4118_v9  ;;  %v4084_v40 = vpop.permute.xlu0 %4083  ;;  %v4044_v13 = vpop.permute.xlu1 %4043  ;;  %v1506_v9 = vcombine.high %v1502_v11, %v5425_v29 }
 0x63b   : > { %v4108_v62 = vmul.f32 %v4068_v6, %v4068_v6  ;;  %v4101_v56 = vsub.f32 %v1502_v11, %v4084_v40  ;;  %v4061_v43 = vsub.f32 %v1358_v18, %v4044_v13  ;;  %v4156_v47 = vsel %vm4146_vm9, %v4143_v59, 0.0 }
 0x63c   : > { %v4157_v29 = vadd.f32 %v4156_v47, %v4155_v34 }
 0x63d   : > { %v4121_v36 = vsel %vm4111_vm8, %v4108_v62, 0.0  ;;  %v4069_v30 = vmul.f32 %v4061_v43, %v6856_v24  ;;  %v4144_v1 = vmul.f32 %v4101_v56, %v4101_v56 }
 0x63e   : > { %v4122_v53 = vadd.f32 %v4121_v36, %v4120_v38  ;;  %v4046_v26 = vpop.permute.xlu1 %4045 }
 0x63f   : > { %v4109_v37 = vmul.f32 %v4069_v30, %v4069_v30  ;;  %v4062_v45 = vsub.f32 %v1362_v39, %v4046_v26  ;;  %v4158_v25 = vsel %vm4146_vm9, %v4144_v1, 0.0 }
 0x640   : > { %v4159_v8 = vadd.f32 %v4158_v25, %v4157_v29 }
 0x641   : > { %v4123_v33 = vsel %vm4111_vm8, %v4109_v37, 0.0  ;;  %v4070_v4 = vmul.f32 %v4062_v45, %v6846_v44 }
 0x642   : > { %v4086_v10 = vpop.permute.xlu1 %4085  ;;  %v4124_v24 = vadd.f32 %v4123_v33, %v4122_v53 }
 0x643   : > { %v4110_v5 = vmul.f32 %v4070_v4, %v4070_v4  ;;  %v4102_v15 = vsub.f32 %v1506_v9, %v4086_v10 }
 0x645   : > { %v4145_v19 = vmul.f32 %v4102_v15, %v4102_v15  ;;  %v4125_v54 = vsel %vm4111_vm8, %v4110_v5, 0.0 }
 0x646   : > { %v4126_v22 = vadd.f32 %v4125_v54, %v4124_v24 }
 0x647   : > { %v4160_v63 = vsel %vm4146_vm9, %v4145_v19, 0.0 }
 0x648   : > { %4127 = vadd.xlane.f32.xlu0 %v4126_v22  ;;  %v4161_v21 = vadd.f32 %v4160_v63, %v4159_v8 }
 0x64a   : > { %4162 = vadd.xlane.f32.xlu1 %v4161_v21 }
 0x6d5   : > { %v4128_v23 = vpop.xlane.xlu0 %4127 }
 0x6d6   : > { %v4129_v44 = vrot.slane %v4128_v23, 4 }
 0x6d7   : > { %v4163_v46 = vpop.xlane.xlu1 %4162 }
 0x6d8   : > { %v4130_v55 = vadd.f32 %v4129_v44, %v4128_v23  ;;  %v4164_v61 = vrot.slane %v4163_v46, 4 }
 0x6da   : > { %v4131_v20 = vrot.slane %v4130_v55, 2  ;;  %v4165_v16 = vadd.f32 %v4164_v61, %v4163_v46 }
 0x6dc   : > { %v4166_v2 = vrot.slane %v4165_v16, 2  ;;  %v4132_v48 = vadd.f32 %v4131_v20, %v4130_v55 }
 0x6de   : > { %v4167_v12 = vadd.f32 %v4166_v2, %v4165_v16  ;;  %v4133_v51 = vrot.slane %v4132_v48, 1 }
 0x6e0   : > { %v4134_v28 = vadd.f32 %v4133_v51, %v4132_v48  ;;  %v4168_v0 = vrot.slane %v4167_v12, 1 }
 0x6e2   : > { %4908 = vpush %v4134_v28  ;;  %v4169_v31 = vadd.f32 %v4168_v0, %v4167_v12 }
 0x6e4   : > { %4910 = vpush %v4169_v31 }
 0x713   : > { %s4909_s13 = spop %4908 }
 0x714   : > { %v4136_v11 = vstv %s4909_s13 }
 0x715   : > { %4137 = vst [vmem:[%s620_s21] sm:$0xff] %v4136_v11  ;;  %s4911_s25 = spop %4910 }
 0x716   : > { %v4171_v7 = vstv %s4911_s25 }
 0x717   : > { %4172 = vst [vmem:[%s624_s0] sm:$0xff] %v4171_v7 }
 0x718 PF: > { %s7026_s28 = sld [smem:[#allocation17_spill]]  ;;  %s7027_s10 = sld [smem:[#allocation18_spill]] }
 0x719   : > { %s7028_s25 = smov %s5406_s26  ;;  %s7029_s26 = smov %s5410_s27 }
 0x71e   : > { %p31_p12 = scmp.ge.s32.totalorder %s7026_s28, 4   ;;  %s7030_s27 = smov %s7027_s10 }
 0x720   :  { %33 = sbr.rel (!%p31_p12) target bundleno = 20 (0x14), region = 173 }
 0x727   :  { %4223 = vsyncpa [#allocation3], 1 }
 0x728   :  { %4225 = vsyncpa [#allocation3 + $0x1], 1 }
 0x729   :  { %4226 = vsyncpa [#allocation5], 1 }
 0x72a   :  { %4228 = vsyncpa [#allocation5 + $0x1], 1 }
 0x72b   :  { %4229 = vsyncpa [#allocation8], 1 }
 0x72c   :  { %4231 = vsyncpa [#allocation8 + $0x1], 1 }
 0x72d   :  { %4232 = vsyncpa [#allocation11], 1 }

</bundles_post_ra>
